<compile_context>
chip_gen: v7x
topology: tpu7x:2x2x1
jax: 0.10.0
libtpu: 0.0.40
codegen_flags: <defaults>
</compile_context>

<pallas_src>
import functools

import jax
import jax.numpy as jnp
from jax.experimental import pallas as pl
from jax.experimental.pallas import tpu as pltpu

ALPHA = 0.01   # LeakyReLU negative slope used by the PyTorch module
LANE = 128


def _round_up(x, m):
    return (x + m - 1) // m * m


def _num_tensorcores():
    """Per-chip TensorCore count used as a grid-sizing hint (v7x/v5p/v4 -> 2)."""
    try:
        kind = jax.devices()[0].device_kind.lower()
    except Exception:
        return 1
    return 2 if ("v7" in kind or "v5p" in kind or "v4" in kind) else 1


def _pick_tiling(batch, min_grid, max_tile):
    """Pick (tile_rows, grid) such that:
       * single-TC chips collapse to grid=1 (block == full array, no step overhead),
       * dual-TC chips get a grid that is a multiple of the TensorCore count,
       * tiles stay <= max_tile rows (VMEM-safe) and are multiples of 128 whenever the
         batch is actually split, so every block satisfies the (8,128) layout rule."""
    n_steps = max(min_grid, pl.cdiv(batch, max_tile))
    if min_grid > 1 and n_steps % min_grid:
        n_steps += min_grid - (n_steps % min_grid)
    if n_steps <= 1:
        return batch, 1
    tile = _round_up(pl.cdiv(batch, n_steps), LANE)
    if tile >= batch:
        return batch, 1
    return tile, pl.cdiv(batch, tile)


def _critic_kernel(x_ref, c_ref, wx_ref, wc_ref, wh_ref, b_ref, wl_ref, o_ref,
                   *, n_hidden):
    """One batch tile of the critic MLP.

    x_ref:  (Bt, in_size)           caller dtype (cast to bf16 for the MXU)
    c_ref:  (Bt, cond_in)
    wx_ref: (in_size, Hp)  bf16     first Linear, input half
    wc_ref: (cond_in, Hp)  bf16     first Linear, context half
    wh_ref: (max(gen_l-1,1), Hp, Hp) bf16   stacked hidden weights
    b_ref:  (gen_l+1, Hp)  f32      rows 0..gen_l-1: hidden biases, row gen_l lane 0: b_out
    wl_ref: (Hp, 128)      bf16     final weight in column 0, zero elsewhere
    o_ref:  (Bt, 1)        f32      critic scores
    """
    # ---- layer 0: Linear on cat(x, ctx), split into two matmuls (no concat pass)
    h = (jnp.dot(x_ref[...].astype(jnp.bfloat16), wx_ref[...],
                 preferred_element_type=jnp.float32)
         + jnp.dot(c_ref[...].astype(jnp.bfloat16), wc_ref[...],
                   preferred_element_type=jnp.float32)
         + b_ref[pl.ds(0, 1), :])
    h = jnp.where(h > 0, h, ALPHA * h)                       # LeakyReLU in f32

    # ---- hidden layers (static unroll; bf16 matmul, f32 accumulate / activation)
    for l in range(n_hidden - 1):
        h = (jnp.dot(h.astype(jnp.bfloat16), wh_ref[l],
                     preferred_element_type=jnp.float32)
             + b_ref[pl.ds(l + 1, 1), :])
        h = jnp.where(h > 0, h, ALPHA * h)

    # ---- final Linear (gen_w -> 1): plain (Bt,Hp)x(Hp,128) matmul (real column is 0),
    #      then bias + ReLU.  No transposes anywhere in the kernel.
    z = jnp.dot(h.astype(jnp.bfloat16), wl_ref[...],
                preferred_element_type=jnp.float32)
    logit = z[:, 0:1] + b_ref[pl.ds(n_hidden, 1), pl.ds(0, 1)]
    o_ref[...] = jnp.maximum(logit, 0.0).astype(o_ref.dtype)


def pack_params(weights, biases, in_size):
    """Pad / split / stack / cast the Linear parameters ONCE (e.g. at model init).

    weights: list of (d_in, d_out) arrays in layer order (stored as (in, out))
    biases:  list of (d_out,) arrays
    Returns a dict of packed device arrays reused by every forward call.
    """
    assert len(weights) >= 2, "need at least one hidden layer plus the output layer"
    gen_w = weights[0].shape[1]
    hp = _round_up(gen_w, LANE)
    n_hidden = len(weights) - 1           # == gen_l
    cond_in = weights[0].shape[0] - in_size

    w0 = jnp.asarray(weights[0], jnp.float32)
    wx = (jnp.zeros((in_size, hp), jnp.bfloat16)
          .at[:, :gen_w].set(w0[:in_size].astype(jnp.bfloat16)))
    wc = (jnp.zeros((cond_in, hp), jnp.bfloat16)
          .at[:, :gen_w].set(w0[in_size:].astype(jnp.bfloat16)))

    w_hid = jnp.zeros((max(n_hidden - 1, 1), hp, hp), jnp.bfloat16)
    for l, w in enumerate(weights[1:-1]):
        di, do = w.shape
        w_hid = w_hid.at[l, :di, :do].set(jnp.asarray(w, jnp.bfloat16))

    # Rows 0..n_hidden-1: hidden biases; row n_hidden, lane 0: output bias.
    b_all = jnp.zeros((n_hidden + 1, hp), jnp.float32)
    for l, b in enumerate(biases[:-1]):
        b_all = b_all.at[l, :b.shape[0]].set(jnp.asarray(b, jnp.float32))
    b_all = b_all.at[n_hidden, 0].set(jnp.asarray(biases[-1], jnp.float32)[0])

    w_last = (jnp.zeros((hp, LANE), jnp.bfloat16)
              .at[:weights[-1].shape[0], 0]
              .set(jnp.asarray(weights[-1], jnp.float32)[:, 0].astype(jnp.bfloat16)))

    return dict(wx=wx, wc=wc, w_hid=w_hid, b_all=b_all, w_last=w_last,
                n_hidden=n_hidden)


def discriminator_forward(x, context, packed, *, max_tile=4096):
    """Pallas forward pass of the Wasserstein critic MLP.

    x:       (B, in_size)  f32 or bf16 (used as-is; cast to bf16 on the MXU path)
    context: (B, cond_in)
    packed:  output of pack_params (call once, reuse across forwards)
    returns: (B, 1) float32 critic scores (ReLU of the final Linear)
    """
    B, in_size = x.shape
    cond_in = context.shape[1]
    n_hidden = packed["n_hidden"]
    wx, wc = packed["wx"], packed["wc"]
    wh, b_all, wl = packed["w_hid"], packed["b_all"], packed["w_last"]

    tile, grid = _pick_tiling(B, _num_tensorcores(), max_tile)
    # No host-side pad: if B is not a multiple of tile, the last block overhangs
    # (rows are independent; out-of-bounds output writes are masked by Pallas).

    in_specs = [
        pl.BlockSpec((tile, in_size), lambda i: (i, 0)),      # x tile (streamed)
        pl.BlockSpec((tile, cond_in), lambda i: (i, 0)),      # ctx tile (streamed)
        pl.BlockSpec(wx.shape, lambda i: (0, 0)),             # resident weights
        pl.BlockSpec(wc.shape, lambda i: (0, 0)),
        pl.BlockSpec(wh.shape, lambda i: (0, 0, 0)),
        pl.BlockSpec(b_all.shape, lambda i: (0, 0)),
        pl.BlockSpec(wl.shape, lambda i: (0, 0)),
    ]
    out_spec = pl.BlockSpec((tile, 1), lambda i: (i, 0))

    kernel = functools.partial(_critic_kernel, n_hidden=n_hidden)
    return pl.pallas_call(
        kernel,
        out_shape=jax.ShapeDtypeStruct((B, 1), jnp.float32),
        grid_spec=pltpu.PrefetchScalarGridSpec(
            num_scalar_prefetch=0,
            grid=(grid,),
            in_specs=in_specs,
            out_specs=out_spec,
        ),
        compiler_params=pltpu.CompilerParams(
            dimension_semantics=("parallel",),
            # ~8 MiB peak even at tile=4096; 48 MiB leaves headroom on v7x (64 MiB).
            vmem_limit_bytes=48 * 1024 * 1024,
        ),
    )(x, context, wx, wc, wh, b_all, wl)


def _reference_forward_bf16(x, context, weights, biases):
    """Pure-JAX reference with the same bf16-weight / f32-accumulate numerics."""
    h = jnp.concatenate([x, context], axis=1)
    n = len(weights)
    for l, (w, b) in enumerate(zip(weights, biases)):
        h = jnp.dot(h.astype(jnp.bfloat16), w.astype(jnp.bfloat16),
                    preferred_element_type=jnp.float32) + b.astype(jnp.float32)
        h = jnp.where(h > 0, h, ALPHA * h) if l < n - 1 else jnp.maximum(h, 0.0)
    return h


def _reference_forward_f32(x, context, weights, biases):
    """Full-f32 reference matching the PyTorch module semantics (sanity check)."""
    h = jnp.concatenate([x, context], axis=1).astype(jnp.float32)
    n = len(weights)
    for l, (w, b) in enumerate(zip(weights, biases)):
        h = h @ w + b
        h = jnp.where(h > 0, h, ALPHA * h) if l < n - 1 else jnp.maximum(h, 0.0)
    return h


if __name__ == "__main__":
    # Module hyperparameters (consistent with the constructor).
    in_size, cond_in, gen_w, gen_l = 24, 8, 32, 3
    batch = 512

    layer_dims = [in_size + cond_in] + [gen_w] * gen_l + [1]
    key = jax.random.PRNGKey(0)
    keys = jax.random.split(key, 2 + 2 * (len(layer_dims) - 1))

    x = jax.random.normal(keys[0], (batch, in_size), jnp.float32)
    context = jax.random.normal(keys[1], (batch, cond_in), jnp.float32)

    # Deterministic synthetic parameters (normal init, stored as (in, out)).
    weights, biases = [], []
    for i, (d_in, d_out) in enumerate(zip(layer_dims[:-1], layer_dims[1:])):
        weights.append(0.1 * jax.random.normal(keys[2 + 2 * i], (d_in, d_out), jnp.float32))
        biases.append(0.1 * jax.random.normal(keys[3 + 2 * i], (d_out,), jnp.float32))

    # Pack / pad parameters ONCE (the "model init" step).
    packed = pack_params(weights, biases, in_size)

    # Default path: grid=1 on single-TC chips, grid multiple of 2 on dual-TC chips.
    pred = jax.block_until_ready(discriminator_forward(x, context, packed))
    assert pred.shape == (batch, 1), pred.shape

    ref_bf16 = _reference_forward_bf16(x, context, weights, biases)
    assert jnp.allclose(pred, ref_bf16, atol=1e-3, rtol=1e-3), (
        float(jnp.max(jnp.abs(pred - ref_bf16))))

    # Also exercise the multi-step (grid > 1) pipelined path with small tiles.
    pred_multi = jax.block_until_ready(
        discriminator_forward(x, context, packed, max_tile=128))
    assert jnp.allclose(pred_multi, ref_bf16, atol=1e-3, rtol=1e-3), (
        float(jnp.max(jnp.abs(pred_multi - ref_bf16))))

    # Informational: deviation from the exact-f32 PyTorch-equivalent math
    # (small, bounded by bf16 weight quantization).
    ref_f32 = _reference_forward_f32(x, context, weights, biases)
    _ = float(jnp.max(jnp.abs(pred - ref_f32)))

    # TODO(synk): loss()/grad_pen() (autograd gradient penalty) are training-time ops
    # and are not part of this forward kernel.
    print("KERNEL_OK")
</pallas_src>

<mosaic_0001>
module attributes {stable_mosaic.version = 11 : i64} {
  func.func @_critic_kernel(%arg0: i32, %arg1: memref<512x24xf32, #tpu.memory_space<vmem>>, %arg2: memref<512x8xf32, #tpu.memory_space<vmem>>, %arg3: memref<24x128xbf16, #tpu.memory_space<vmem>>, %arg4: memref<8x128xbf16, #tpu.memory_space<vmem>>, %arg5: memref<2x128x128xbf16, #tpu.memory_space<vmem>>, %arg6: memref<4x128xf32, #tpu.memory_space<vmem>>, %arg7: memref<128x128xbf16, #tpu.memory_space<vmem>>, %arg8: memref<512x1xf32, #tpu.memory_space<vmem>>) attributes {dimension_semantics = [#tpu.dimension_semantics<parallel>], iteration_bounds = array<i64: 1>, scalar_prefetch = 0 : i64, scratch_operands = 0 : i64, tpu.core_type = #tpu.core_type<tc>, window_params = [{transform_indices = @transform_0, window_bounds = array<i64: 512, 24>}, {transform_indices = @transform_1, window_bounds = array<i64: 512, 8>}, {pipeline_mode = #tpu.pipeline_mode<synchronous>, transform_indices = @transform_2, window_bounds = array<i64: 24, 128>}, {pipeline_mode = #tpu.pipeline_mode<synchronous>, transform_indices = @transform_3, window_bounds = array<i64: 8, 128>}, {pipeline_mode = #tpu.pipeline_mode<synchronous>, transform_indices = @transform_4, window_bounds = array<i64: 2, 128, 128>}, {pipeline_mode = #tpu.pipeline_mode<synchronous>, transform_indices = @transform_5, window_bounds = array<i64: 4, 128>}, {pipeline_mode = #tpu.pipeline_mode<synchronous>, transform_indices = @transform_6, window_bounds = array<i64: 128, 128>}, {transform_indices = @transform_7, window_bounds = array<i64: 512, 1>}]} {
    %c0 = arith.constant 0 : index
    %c0_0 = arith.constant 0 : index
    %0 = vector.load %arg1[%c0, %c0_0] : memref<512x24xf32, #tpu.memory_space<vmem>>, vector<512x24xf32>
    %1 = arith.truncf %0 : vector<512x24xf32> to vector<512x24xbf16>
    %c0_1 = arith.constant 0 : index
    %c0_2 = arith.constant 0 : index
    %2 = vector.load %arg3[%c0_1, %c0_2] : memref<24x128xbf16, #tpu.memory_space<vmem>>, vector<24x128xbf16>
    %cst = arith.constant dense<0.000000e+00> : vector<512x128xf32>
    %3 = tpu.matmul %1, %2, %cst {dimension_numbers = #tpu.dot_dimension_numbers<[1], [0], [0], [1], [0, 0, 1, 1], [], []>} : vector<512x24xbf16>, vector<24x128xbf16>, vector<512x128xf32> -> vector<512x128xf32>
    %c0_3 = arith.constant 0 : index
    %c0_4 = arith.constant 0 : index
    %4 = vector.load %arg2[%c0_3, %c0_4] : memref<512x8xf32, #tpu.memory_space<vmem>>, vector<512x8xf32>
    %5 = arith.truncf %4 : vector<512x8xf32> to vector<512x8xbf16>
    %c0_5 = arith.constant 0 : index
    %c0_6 = arith.constant 0 : index
    %6 = vector.load %arg4[%c0_5, %c0_6] : memref<8x128xbf16, #tpu.memory_space<vmem>>, vector<8x128xbf16>
    %cst_7 = arith.constant dense<0.000000e+00> : vector<512x128xf32>
    %7 = tpu.matmul %5, %6, %cst_7 {dimension_numbers = #tpu.dot_dimension_numbers<[1], [0], [0], [1], [0, 0, 1, 1], [], []>} : vector<512x8xbf16>, vector<8x128xbf16>, vector<512x128xf32> -> vector<512x128xf32>
    %8 = arith.addf %3, %7 : vector<512x128xf32>
    %c0_8 = arith.constant 0 : index
    %c0_9 = arith.constant 0 : index
    %9 = vector.load %arg6[%c0_8, %c0_9] : memref<4x128xf32, #tpu.memory_space<vmem>>, vector<1x128xf32>
    %10 = vector.broadcast %9 : vector<1x128xf32> to vector<512x128xf32>
    %11 = arith.addf %8, %10 : vector<512x128xf32>
    %cst_10 = arith.constant 0.000000e+00 : f32
    %12 = vector.broadcast %cst_10 : f32 to vector<512x128xf32>
    %13 = arith.cmpf ogt, %11, %12 : vector<512x128xf32>
    %cst_11 = arith.constant 0.00999999977 : f32
    %14 = vector.broadcast %cst_11 : f32 to vector<512x128xf32>
    %15 = arith.mulf %14, %11 : vector<512x128xf32>
    %16 = arith.select %13, %11, %15 : vector<512x128xi1>, vector<512x128xf32>
    %17 = arith.truncf %16 : vector<512x128xf32> to vector<512x128xbf16>
    %c0_12 = arith.constant 0 : index
    %c0_13 = arith.constant 0 : index
    %c0_14 = arith.constant 0 : index
    %18 = vector.load %arg5[%c0_12, %c0_13, %c0_14] : memref<2x128x128xbf16, #tpu.memory_space<vmem>>, vector<1x128x128xbf16>
    %19 = vector.shape_cast %18 : vector<1x128x128xbf16> to vector<128x128xbf16>
    %cst_15 = arith.constant dense<0.000000e+00> : vector<512x128xf32>
    %20 = tpu.matmul %17, %19, %cst_15 {dimension_numbers = #tpu.dot_dimension_numbers<[1], [0], [0], [1], [0, 0, 1, 1], [], []>} : vector<512x128xbf16>, vector<128x128xbf16>, vector<512x128xf32> -> vector<512x128xf32>
    %c1 = arith.constant 1 : index
    %c0_16 = arith.constant 0 : index
    %21 = vector.load %arg6[%c1, %c0_16] : memref<4x128xf32, #tpu.memory_space<vmem>>, vector<1x128xf32>
    %22 = vector.broadcast %21 : vector<1x128xf32> to vector<512x128xf32>
    %23 = arith.addf %20, %22 : vector<512x128xf32>
    %cst_17 = arith.constant 0.000000e+00 : f32
    %24 = vector.broadcast %cst_17 : f32 to vector<512x128xf32>
    %25 = arith.cmpf ogt, %23, %24 : vector<512x128xf32>
    %cst_18 = arith.constant 0.00999999977 : f32
    %26 = vector.broadcast %cst_18 : f32 to vector<512x128xf32>
    %27 = arith.mulf %26, %23 : vector<512x128xf32>
    %28 = arith.select %25, %23, %27 : vector<512x128xi1>, vector<512x128xf32>
    %29 = arith.truncf %28 : vector<512x128xf32> to vector<512x128xbf16>
    %c1_19 = arith.constant 1 : index
    %c0_20 = arith.constant 0 : index
    %c0_21 = arith.constant 0 : index
    %30 = vector.load %arg5[%c1_19, %c0_20, %c0_21] : memref<2x128x128xbf16, #tpu.memory_space<vmem>>, vector<1x128x128xbf16>
    %31 = vector.shape_cast %30 : vector<1x128x128xbf16> to vector<128x128xbf16>
    %cst_22 = arith.constant dense<0.000000e+00> : vector<512x128xf32>
    %32 = tpu.matmul %29, %31, %cst_22 {dimension_numbers = #tpu.dot_dimension_numbers<[1], [0], [0], [1], [0, 0, 1, 1], [], []>} : vector<512x128xbf16>, vector<128x128xbf16>, vector<512x128xf32> -> vector<512x128xf32>
    %c2 = arith.constant 2 : index
    %c0_23 = arith.constant 0 : index
    %33 = vector.load %arg6[%c2, %c0_23] : memref<4x128xf32, #tpu.memory_space<vmem>>, vector<1x128xf32>
    %34 = vector.broadcast %33 : vector<1x128xf32> to vector<512x128xf32>
    %35 = arith.addf %32, %34 : vector<512x128xf32>
    %cst_24 = arith.constant 0.000000e+00 : f32
    %36 = vector.broadcast %cst_24 : f32 to vector<512x128xf32>
    %37 = arith.cmpf ogt, %35, %36 : vector<512x128xf32>
    %cst_25 = arith.constant 0.00999999977 : f32
    %38 = vector.broadcast %cst_25 : f32 to vector<512x128xf32>
    %39 = arith.mulf %38, %35 : vector<512x128xf32>
    %40 = arith.select %37, %35, %39 : vector<512x128xi1>, vector<512x128xf32>
    %41 = arith.truncf %40 : vector<512x128xf32> to vector<512x128xbf16>
    %c0_26 = arith.constant 0 : index
    %c0_27 = arith.constant 0 : index
    %42 = vector.load %arg7[%c0_26, %c0_27] : memref<128x128xbf16, #tpu.memory_space<vmem>>, vector<128x128xbf16>
    %cst_28 = arith.constant dense<0.000000e+00> : vector<512x128xf32>
    %43 = tpu.matmul %41, %42, %cst_28 {dimension_numbers = #tpu.dot_dimension_numbers<[1], [0], [0], [1], [0, 0, 1, 1], [], []>} : vector<512x128xbf16>, vector<128x128xbf16>, vector<512x128xf32> -> vector<512x128xf32>
    %44 = vector.extract_strided_slice %43 {offsets = [0, 0], sizes = [512, 1], strides = [1, 1]} : vector<512x128xf32> to vector<512x1xf32>
    %c3 = arith.constant 3 : index
    %c0_29 = arith.constant 0 : index
    %45 = vector.load %arg6[%c3, %c0_29] : memref<4x128xf32, #tpu.memory_space<vmem>>, vector<1x1xf32>
    %46 = vector.broadcast %45 : vector<1x1xf32> to vector<512x1xf32>
    %47 = arith.addf %44, %46 : vector<512x1xf32>
    %cst_30 = arith.constant 0.000000e+00 : f32
    %48 = vector.broadcast %cst_30 : f32 to vector<512x1xf32>
    %49 = arith.maximumf %47, %48 : vector<512x1xf32>
    %c0_31 = arith.constant 0 : index
    %c0_32 = arith.constant 0 : index
    %50 = vector.load %arg8[%c0_31, %c0_32] : memref<512x1xf32, #tpu.memory_space<vmem>>, vector<512x1xf32>
    tpu.vector_store %arg8[%c0_31, %c0_32], %49 {strides = array<i32>} : memref<512x1xf32, #tpu.memory_space<vmem>>, vector<512x1xf32>,
    return
  }
  func.func @transform_0(%arg0: i32) -> (i32, i32) {
    %c0_i32 = arith.constant 0 : i32
    %c0_i32_0 = arith.constant 0 : i32
    return %arg0, %c0_i32 : i32, i32
  }
  func.func @transform_1(%arg0: i32) -> (i32, i32) {
    %c0_i32 = arith.constant 0 : i32
    %c0_i32_0 = arith.constant 0 : i32
    return %arg0, %c0_i32 : i32, i32
  }
  func.func @transform_2(%arg0: i32) -> (i32, i32) {
    %c0_i32 = arith.constant 0 : i32
    %c0_i32_0 = arith.constant 0 : i32
    %c0_i32_1 = arith.constant 0 : i32
    return %c0_i32, %c0_i32_0 : i32, i32
  }
  func.func @transform_3(%arg0: i32) -> (i32, i32) {
    %c0_i32 = arith.constant 0 : i32
    %c0_i32_0 = arith.constant 0 : i32
    %c0_i32_1 = arith.constant 0 : i32
    return %c0_i32, %c0_i32_0 : i32, i32
  }
  func.func @transform_4(%arg0: i32) -> (i32, i32, i32) {
    %c0_i32 = arith.constant 0 : i32
    %c0_i32_0 = arith.constant 0 : i32
    %c0_i32_1 = arith.constant 0 : i32
    %c0_i32_2 = arith.constant 0 : i32
    return %c0_i32, %c0_i32_0, %c0_i32_1 : i32, i32, i32
  }
  func.func @transform_5(%arg0: i32) -> (i32, i32) {
    %c0_i32 = arith.constant 0 : i32
    %c0_i32_0 = arith.constant 0 : i32
    %c0_i32_1 = arith.constant 0 : i32
    return %c0_i32, %c0_i32_0 : i32, i32
  }
  func.func @transform_6(%arg0: i32) -> (i32, i32) {
    %c0_i32 = arith.constant 0 : i32
    %c0_i32_0 = arith.constant 0 : i32
    %c0_i32_1 = arith.constant 0 : i32
    return %c0_i32, %c0_i32_0 : i32, i32
  }
  func.func @transform_7(%arg0: i32) -> (i32, i32) {
    %c0_i32 = arith.constant 0 : i32
    %c0_i32_0 = arith.constant 0 : i32
    return %arg0, %c0_i32 : i32, i32
  }
}

</mosaic_0001>

<bundles_post_ra>
// kernel: tpu_custom_call.1
= control target key start
LH: loop header
LB: loop body
LE: loop exit
PB: predicated region body
PF: predicated region fallthrough
CT: control target
= control target key end

     0   :  { %vm320_vm0 = vcmask 1043456   ;;  %vm223_vm1 = vcmask 64512   ;;  %vm622_vm2 = vcmask 195584   ;;  %s4992_s3 = inlined_call_operand.vmem [shape: bf16[8,128], index: 3, kind: input, shape index: {}]   ;;  %s4993_s1 = inlined_call_operand.vmem [shape: f32[512,8], index: 1, kind: input, shape index: {}]   ;;  %s4994_s2 = inlined_call_operand.vmem [shape: bf16[24,128], index: 2, kind: input, shape index: {}]   ;;  %s4995_s0 = inlined_call_operand.vmem [shape: f32[512,24], index: 0, kind: input, shape index: {}]   ;;  %s4996_s4 = inlined_call_operand.vmem [shape: bf16[2,128,128], index: 4, kind: input, shape index: {}]   ;;  %s4997_s5 = inlined_call_operand.vmem [shape: f32[4,128], index: 5, kind: input, shape index: {}]   ;;  %s4998_s6 = inlined_call_operand.vmem [shape: bf16[128,128], index: 6, kind: input, shape index: {}]   ;;  %s4999_s7 = inlined_call_operand.vmem [shape: f32[512,1], index: 7, kind: output, shape index: {}]  }
   0x1   :  { %v222_v0 = vld [vmem:[%s4992_s3] sm:$0xf]  ;;  %v127_v2 = vld [vmem:[%s4993_s1 + $0x8] sm:$0xff]  ;;  %v128_v5 = vld [vmem:[%s4993_s1 + $0x10] sm:$0xff] }
   0x2   :  { %v126_v1 = vld [vmem:[%s4993_s1] sm:$0xff]  ;;  %3761 = vmatprep.subr.msk.bf16.mxu0 %vm320_vm0, %v222_v0  ;;  %v322_v3 = vsel %vm320_vm0, %v222_v0, 0  ;;  %v129_v6 = vld [vmem:[%s4993_s1 + $0x18] sm:$0xff]  ;;  %3762 = vmatprep.subr.msk.bf16.mxu1 %vm320_vm0, %v222_v0  ;;  %v131_v10 = vld [vmem:[%s4993_s1 + $0x28] sm:$0xff] }
   0x3   :  { %v190_v4 = vpack.c.bf16 %v127_v2, %v126_v1  ;;  %3322 = vmatpush3.bf16.msra.mxu0 %v322_v3  ;;  %v191_v7 = vpack.c.bf16 %v129_v6, %v128_v5  ;;  %v3764_v8 = vld [vmem:[%s4994_s2] sm:$0xff]   ;;  %3696 = vmatpush3.bf16.msra.mxu1 %v322_v3  ;;  %v132_v12 = vld [vmem:[%s4993_s1 + $0x30] sm:$0xff]  ;;  %v133_v13 = vld [vmem:[%s4993_s1 + $0x38] sm:$0xff] }
   0x4   :  { %v130_v9 = vld [vmem:[%s4993_s1 + $0x20] sm:$0xff]  ;;  %3387 = vmatprep.subr.bf16.mxu0 %v3764_v8  ;;  %v135_v15 = vld [vmem:[%s4993_s1 + $0x48] sm:$0xff]  ;;  %v193_v17 = vpack.c.bf16 %v133_v13, %v132_v12  ;;  %v136_v20 = vld [vmem:[%s4993_s1 + $0x50] sm:$0xff] }
   0x5   :  { %3323 = vmatprep.mubr.msk.bf16.mxu0 %vm223_vm1, %v190_v4  ;;  %v192_v11 = vpack.c.bf16 %v131_v10, %v130_v9  ;;  %v134_v14 = vld [vmem:[%s4993_s1 + $0x40] sm:$0xff]  ;;  %v3765_v16 = vld [vmem:[%s4994_s2 + $0x8] ss:$0 sps:$4 sm:$0xff]   ;;  %v137_v21 = vld [vmem:[%s4993_s1 + $0x58] sm:$0xff] }
   0x6   :  { %3324 = vmatmul.mubr.msk.bf16.vlgmr.msra.gmra.mrb[0].mxu0 %vm223_vm1, %v191_v7  ;;  %v194_v18 = vpack.c.bf16 %v135_v15, %v134_v14  ;;  %v720_v19 = vsel %vm320_vm0, %v3765_v16, 0  ;;  %v138_v22 = vld [vmem:[%s4993_s1 + $0x60] sm:$0xff]  ;;  %v139_v23 = vld [vmem:[%s4993_s1 + $0x68] sm:$0xff]  ;;  %v195_v24 = vpack.c.bf16 %v137_v21, %v136_v20  ;;  %v140_v26 = vld [vmem:[%s4993_s1 + $0x70] sm:$0xff] }
   0x7   :  { %3388 = vmatpush3.bf16.msra.mxu0 %v3764_v8  ;;  %3327 = vmatprep.mubr.msk.bf16.mxu0 %vm223_vm1, %v192_v11  ;;  %v196_v25 = vpack.c.bf16 %v139_v23, %v138_v22  ;;  %v141_v27 = vld [vmem:[%s4993_s1 + $0x78] sm:$0xff]  ;;  %v142_v28 = vld [vmem:[%s4993_s1 + $0x80] sm:$0xff]  ;;  %v143_v29 = vld [vmem:[%s4993_s1 + $0x88] sm:$0xff] }
   0x8   :  { %3763 = vmatprep.subr.msk.bf16.mxu0 %vm320_vm0, %v3765_v16  ;;  %v158_v30 = vld [vmem:[%s4993_s1 + $0x100] sm:$0xff]  ;;  %v159_v31 = vld [vmem:[%s4993_s1 + $0x108] sm:$0xff]  ;;  %v160_v33 = vld [vmem:[%s4993_s1 + $0x110] sm:$0xff]  ;;  %v197_v35 = vpack.c.bf16 %v141_v27, %v140_v26  ;;  %v198_v37 = vpack.c.bf16 %v143_v29, %v142_v28 }
   0x9   :  { %v206_v32 = vpack.c.bf16 %v159_v31, %v158_v30  ;;  %v161_v34 = vld [vmem:[%s4993_s1 + $0x118] sm:$0xff]  ;;  %v162_v38 = vld [vmem:[%s4993_s1 + $0x120] sm:$0xff]  ;;  %v163_v39 = vld [vmem:[%s4993_s1 + $0x128] sm:$0xff] }
   0xa   :  { %v207_v36 = vpack.c.bf16 %v161_v34, %v160_v33  ;;  %v208_v40 = vpack.c.bf16 %v163_v39, %v162_v38  ;;  %v164_v41 = vld [vmem:[%s4993_s1 + $0x130] sm:$0xff]  ;;  %v165_v42 = vld [vmem:[%s4993_s1 + $0x138] sm:$0xff]  ;;  %v166_v43 = vld [vmem:[%s4993_s1 + $0x140] sm:$0xff] }
   0xb   :  { %3390 = vmatpush3.bf16.msra.mxu0 %v720_v19  ;;  %3355 = vmatprep.mubr.msk.bf16.mxu1 %vm223_vm1, %v206_v32  ;;  %v167_v44 = vld [vmem:[%s4993_s1 + $0x148] sm:$0xff]  ;;  %v144_v45 = vld [vmem:[%s4993_s1 + $0x90] sm:$0xff]  ;;  %v145_v46 = vld [vmem:[%s4993_s1 + $0x98] sm:$0xff]  ;;  %v209_v49 = vpack.c.bf16 %v165_v42, %v164_v41 }
   0xc   :  { %3356 = vmatmul.mubr.msk.bf16.vlgmr.msra.gmra.mrb[0].mxu1 %vm223_vm1, %v207_v36  ;;  %v146_v47 = vld [vmem:[%s4993_s1 + $0xa0] sm:$0xff]  ;;  %v147_v48 = vld [vmem:[%s4993_s1 + $0xa8] sm:$0xff]  ;;  %v210_v50 = vpack.c.bf16 %v167_v44, %v166_v43  ;;  %v199_v51 = vpack.c.bf16 %v145_v46, %v144_v45  ;;  %v168_v53 = vld [vmem:[%s4993_s1 + $0x150] sm:$0xff] }
   0xd   :  { %3359 = vmatprep.mubr.msk.bf16.mxu1 %vm223_vm1, %v208_v40  ;;  %v200_v52 = vpack.c.bf16 %v147_v48, %v146_v47  ;;  %v169_v54 = vld [vmem:[%s4993_s1 + $0x158] sm:$0xff]  ;;  %v170_v55 = vld [vmem:[%s4993_s1 + $0x160] sm:$0xff]  ;;  %v171_v56 = vld [vmem:[%s4993_s1 + $0x168] sm:$0xff] }
   0xe   :  { %3328 = vmatmul.mubr.msk.bf16.gmra.mrb[4].mxu0 %vm223_vm1, %v193_v17  ;;  %v148_v57 = vld [vmem:[%s4993_s1 + $0xb0] sm:$0xff]  ;;  %v149_v58 = vld [vmem:[%s4993_s1 + $0xb8] sm:$0xff]  ;;  %v150_v59 = vld [vmem:[%s4993_s1 + $0xc0] sm:$0xff]  ;;  %v211_v61 = vpack.c.bf16 %v169_v54, %v168_v53  ;;  %v212_v62 = vpack.c.bf16 %v171_v56, %v170_v55 }
   0xf   :  { %3331 = vmatprep.mubr.msk.bf16.mxu0 %vm223_vm1, %v194_v18  ;;  %v151_v60 = vld [vmem:[%s4993_s1 + $0xc8] sm:$0xff]  ;;  %v201_v63 = vpack.c.bf16 %v149_v58, %v148_v57  ;;  %v172_v1 = vld [vmem:[%s4993_s1 + $0x170] sm:$0xff]  ;;  %v173_v2 = vld [vmem:[%s4993_s1 + $0x178] sm:$0xff] }
  0x10   :  { %v202_v0 = vpack.c.bf16 %v151_v60, %v150_v59  ;;  %v174_v3 = vld [vmem:[%s4993_s1 + $0x180] sm:$0xff]  ;;  %v175_v4 = vld [vmem:[%s4993_s1 + $0x188] sm:$0xff]  ;;  %v152_v5 = vld [vmem:[%s4993_s1 + $0xd0] sm:$0xff]  ;;  %v213_v9 = vpack.c.bf16 %v173_v2, %v172_v1 }
  0x11   :  { %v153_v6 = vld [vmem:[%s4993_s1 + $0xd8] sm:$0xff]  ;;  %v154_v7 = vld [vmem:[%s4993_s1 + $0xe0] sm:$0xff]  ;;  %v155_v8 = vld [vmem:[%s4993_s1 + $0xe8] sm:$0xff]  ;;  %v214_v10 = vpack.c.bf16 %v175_v4, %v174_v3 }
  0x12   :  { %v203_v11 = vpack.c.bf16 %v153_v6, %v152_v5  ;;  %v204_v12 = vpack.c.bf16 %v155_v8, %v154_v7  ;;  %v176_v13 = vld [vmem:[%s4993_s1 + $0x190] sm:$0xff]  ;;  %v177_v14 = vld [vmem:[%s4993_s1 + $0x198] sm:$0xff]  ;;  %v178_v15 = vld [vmem:[%s4993_s1 + $0x1a0] sm:$0xff] }
  0x13   :  { %v179_v16 = vld [vmem:[%s4993_s1 + $0x1a8] sm:$0xff]  ;;  %v156_v17 = vld [vmem:[%s4993_s1 + $0xf0] sm:$0xff]  ;;  %v157_v18 = vld [vmem:[%s4993_s1 + $0xf8] sm:$0xff]  ;;  %v215_v21 = vpack.c.bf16 %v177_v14, %v176_v13 }
  0x14   :  { %3360 = vmatmul.mubr.msk.bf16.gmra.mrb[4].mxu1 %vm223_vm1, %v209_v49  ;;  %v27_v19 = vld [vmem:[%s4995_s0] sm:$0xff]  ;;  %v28_v20 = vld [vmem:[%s4995_s0 + $0x8] sm:$0xff]  ;;  %v216_v22 = vpack.c.bf16 %v179_v16, %v178_v15  ;;  %v205_v23 = vpack.c.bf16 %v157_v18, %v156_v17  ;;  %v30_v26 = vld [vmem:[%s4995_s0 + $0x18] sm:$0xff] }
  0x15   :  { %3363 = vmatprep.mubr.msk.bf16.mxu1 %vm223_vm1, %v210_v50  ;;  %v180_v27 = vld [vmem:[%s4993_s1 + $0x1b0] sm:$0xff]  ;;  %v181_v28 = vld [vmem:[%s4993_s1 + $0x1b8] sm:$0xff]  ;;  %v31_v29 = vld [vmem:[%s4995_s0 + $0x20] sm:$0xff] }
  0x16   :  { %3332 = vmatmul.mubr.msk.bf16.gmra.mrb[8].mxu0 %vm223_vm1, %v195_v24  ;;  %v91_v24 = vpack.c.bf16 %v28_v20, %v27_v19  ;;  %v32_v30 = vld [vmem:[%s4995_s0 + $0x28] sm:$0xff]  ;;  %v182_v31 = vld [vmem:[%s4993_s1 + $0x1c0] sm:$0xff]  ;;  %v217_v34 = vpack.c.bf16 %v181_v28, %v180_v27  ;;  %v184_v39 = vld [vmem:[%s4993_s1 + $0x1d0] sm:$0xff] }
  0x17   :  { %3335 = vmatprep.mubr.msk.bf16.mxu0 %vm223_vm1, %v196_v25  ;;  %v29_v25 = vld [vmem:[%s4995_s0 + $0x10] sm:$0xff]  ;;  %v183_v32 = vld [vmem:[%s4993_s1 + $0x1c8] sm:$0xff]  ;;  %v3766_v33 = vld [vmem:[%s4996_s4] sm:$0xff]   ;;  %v93_v38 = vpack.c.bf16 %v32_v30, %v31_v29 }
  0x18   :  { %v218_v36 = vpack.c.bf16 %v183_v32, %v182_v31  ;;  %3455 = vmatprep.subr.bf16.mxu1 %v3766_v33  ;;  %v185_v40 = vld [vmem:[%s4993_s1 + $0x1d8] sm:$0xff]  ;;  %v3768_v41 = vld [vmem:[%s4996_s4 + $0x10] sm:$0xff]   ;;  %v186_v42 = vld [vmem:[%s4993_s1 + $0x1e0] sm:$0xff] }
  0x19   :  { %3456 = vmatpush3.bf16.msra.mxu1 %v3766_v33  ;;  %v187_v43 = vld [vmem:[%s4993_s1 + $0x1e8] sm:$0xff]  ;;  %v33_v44 = vld [vmem:[%s4995_s0 + $0x30] sm:$0xff]  ;;  %v34_v45 = vld [vmem:[%s4995_s0 + $0x38] sm:$0xff]  ;;  %v219_v49 = vpack.c.bf16 %v185_v40, %v184_v39 }
  0x1a   :  { %v3769_v46 = vld [vmem:[%s4996_s4 + $0x18] sm:$0xff]   ;;  %v35_v47 = vld [vmem:[%s4995_s0 + $0x40] sm:$0xff]  ;;  %v36_v48 = vld [vmem:[%s4995_s0 + $0x48] sm:$0xff]  ;;  %v220_v50 = vpack.c.bf16 %v187_v43, %v186_v42 }
  0x1b   :  { %v95_v53 = vpack.c.bf16 %v36_v48, %v35_v47  ;;  %v188_v54 = vld [vmem:[%s4993_s1 + $0x1f0] sm:$0xff]  ;;  %v189_v55 = vld [vmem:[%s4993_s1 + $0x1f8] sm:$0xff]  ;;  %v3771_v58 = vld [vmem:[%s4996_s4 + $0x28] sm:$0xff]  }
  0x1c   :  { %3364 = vmatmul.mubr.msk.bf16.gmra.mrb[8].mxu1 %vm223_vm1, %v211_v61  ;;  %v37_v56 = vld [vmem:[%s4995_s0 + $0x50] sm:$0xff]  ;;  %v38_v57 = vld [vmem:[%s4995_s0 + $0x58] sm:$0xff]  ;;  %v39_v59 = vld [vmem:[%s4995_s0 + $0x60] sm:$0xff]  ;;  %v221_v61 = vpack.c.bf16 %v189_v55, %v188_v54 }
  0x1d   :  { %3367 = vmatprep.mubr.msk.bf16.mxu1 %vm223_vm1, %v212_v62  ;;  %v40_v60 = vld [vmem:[%s4995_s0 + $0x68] sm:$0xff]  ;;  %v96_v62 = vpack.c.bf16 %v38_v57, %v37_v56  ;;  %v41_v1 = vld [vmem:[%s4995_s0 + $0x70] sm:$0xff]  ;;  %v42_v2 = vld [vmem:[%s4995_s0 + $0x78] sm:$0xff] }
  0x1e   :  { %3336 = vmatmul.mubr.msk.bf16.gmra.mrb[12].mxu0 %vm223_vm1, %v197_v35  ;;  %v3767_v35 = vld [vmem:[%s4996_s4 + $0x8] sm:$0xff]   ;;  %v43_v3 = vld [vmem:[%s4995_s0 + $0x80] sm:$0xff]  ;;  %v98_v5 = vpack.c.bf16 %v42_v2, %v41_v1  ;;  %v45_v7 = vld [vmem:[%s4995_s0 + $0x90] sm:$0xff] }
  0x1f   :  { %3339 = vmatprep.mubr.msk.bf16.mxu0 %vm223_vm1, %v198_v37  ;;  %v92_v37 = vpack.c.bf16 %v30_v26, %v29_v25  ;;  %3457 = vmatprep.subr.bf16.mxu1 %v3767_v35  ;;  %v44_v4 = vld [vmem:[%s4995_s0 + $0x88] sm:$0xff]  ;;  %v46_v8 = vld [vmem:[%s4995_s0 + $0x98] sm:$0xff]  ;;  %v49_v13 = vld [vmem:[%s4995_s0 + $0xb0] sm:$0xff] }
  0x20   :  { %3458 = vmatpush3.bf16.msra.mxu1 %v3767_v35  ;;  %v99_v6 = vpack.c.bf16 %v44_v4, %v43_v3  ;;  %v50_v14 = vld [vmem:[%s4995_s0 + $0xb8] sm:$0xff]  ;;  %v51_v15 = vld [vmem:[%s4995_s0 + $0xc0] sm:$0xff]  ;;  %v52_v16 = vld [vmem:[%s4995_s0 + $0xc8] sm:$0xff] }
  0x21   :  { %3459 = vmatprep.subr.bf16.mxu1 %v3768_v41  ;;  %v102_v17 = vpack.c.bf16 %v50_v14, %v49_v13  ;;  %v103_v18 = vpack.c.bf16 %v52_v16, %v51_v15  ;;  %v53_v19 = vld [vmem:[%s4995_s0 + $0xd0] sm:$0xff]  ;;  %v54_v20 = vld [vmem:[%s4995_s0 + $0xd8] sm:$0xff]  ;;  %v59_v27 = vld [vmem:[%s4995_s0 + $0x100] sm:$0xff] }
  0x22   :  { %v57_v25 = vld [vmem:[%s4995_s0 + $0xf0] sm:$0xff]  ;;  %v58_v26 = vld [vmem:[%s4995_s0 + $0xf8] sm:$0xff]  ;;  %v60_v28 = vld [vmem:[%s4995_s0 + $0x108] sm:$0xff] }
  0x23   :  { %v106_v29 = vpack.c.bf16 %v58_v26, %v57_v25  ;;  %v107_v30 = vpack.c.bf16 %v60_v28, %v59_v27  ;;  %v61_v31 = vld [vmem:[%s4995_s0 + $0x110] sm:$0xff]  ;;  %v62_v32 = vld [vmem:[%s4995_s0 + $0x118] sm:$0xff]  ;;  %v63_v33 = vld [vmem:[%s4995_s0 + $0x120] sm:$0xff] }
  0x24   :  { %3368 = vmatmul.mubr.msk.bf16.gmra.mrb[12].mxu1 %vm223_vm1, %v213_v9  ;;  %v47_v9 = vld [vmem:[%s4995_s0 + $0xa0] sm:$0xff]  ;;  %v108_v35 = vpack.c.bf16 %v62_v32, %v61_v31  ;;  %v68_v40 = vld [vmem:[%s4995_s0 + $0x148] sm:$0xff]  ;;  %v69_v43 = vld [vmem:[%s4995_s0 + $0x150] sm:$0xff] }
  0x25   :  { %3371 = vmatprep.mubr.msk.bf16.mxu1 %vm223_vm1, %v214_v10  ;;  %3460 = vmatpush3.bf16.msra.mxu1 %v3768_v41  ;;  %v48_v10 = vld [vmem:[%s4995_s0 + $0xa8] sm:$0xff]  ;;  %v67_v39 = vld [vmem:[%s4995_s0 + $0x140] sm:$0xff]  ;;  %v77_v55 = vld [vmem:[%s4995_s0 + $0x190] sm:$0xff] }
  0x26   :  { %3340 = vmatmul.mubr.msk.bf16.gmra.mrb[16].mxu0 %vm223_vm1, %v199_v51  ;;  %v3770_v51 = vld [vmem:[%s4996_s4 + $0x20] sm:$0xff]   ;;  %3461 = vmatprep.subr.bf16.mxu1 %v3769_v46  ;;  %v111_v42 = vpack.c.bf16 %v68_v40, %v67_v39  ;;  %v78_v56 = vld [vmem:[%s4995_s0 + $0x198] sm:$0xff]  ;;  %v84_v1 = vld [vmem:[%s4995_s0 + $0x1c8] sm:$0xff] }
  0x27   :  { %3343 = vmatprep.mubr.msk.bf16.mxu0 %vm223_vm1, %v200_v52  ;;  %v94_v52 = vpack.c.bf16 %v34_v45, %v33_v44  ;;  %v70_v44 = vld [vmem:[%s4995_s0 + $0x158] sm:$0xff]  ;;  %v71_v45 = vld [vmem:[%s4995_s0 + $0x160] sm:$0xff]  ;;  %v85_v4 = vld [vmem:[%s4995_s0 + $0x1d0] sm:$0xff] }
  0x28   :  { %v112_v47 = vpack.c.bf16 %v70_v44, %v69_v43  ;;  %v3773_v57 = vld [vmem:[%s4996_s4 + $0x38] sm:$0xff]   ;;  %v3774_v28 = vld [vmem:[%s4996_s4 + $0x40] sm:$0xff]  }
  0x29   :  { %3462 = vmatpush3.bf16.msra.mxu1 %v3769_v46  ;;  %v72_v46 = vld [vmem:[%s4995_s0 + $0x168] sm:$0xff] }
  0x2a   :  { %3463 = vmatprep.subr.bf16.mxu1 %v3770_v51  ;;  %v113_v48 = vpack.c.bf16 %v72_v46, %v71_v45 }
  0x2c   :  { %3372 = vmatmul.mubr.msk.bf16.gmra.mrb[16].mxu1 %vm223_vm1, %v215_v21  ;;  %v55_v21 = vld [vmem:[%s4995_s0 + $0xe0] sm:$0xff] }
  0x2d   :  { %3375 = vmatprep.mubr.msk.bf16.mxu1 %vm223_vm1, %v216_v22  ;;  %3464 = vmatpush3.bf16.msra.mxu1 %v3770_v51  ;;  %v56_v22 = vld [vmem:[%s4995_s0 + $0xe8] sm:$0xff]  ;;  %v75_v51 = vld [vmem:[%s4995_s0 + $0x180] sm:$0xff] }
  0x2e   :  { %3344 = vmatmul.mubr.msk.bf16.gmra.mrb[20].mxu0 %vm223_vm1, %v201_v63  ;;  %v97_v63 = vpack.c.bf16 %v40_v60, %v39_v59  ;;  %3465 = vmatprep.subr.bf16.mxu1 %v3771_v58  ;;  %v80_v59 = vld [vmem:[%s4995_s0 + $0x1a8] sm:$0xff]  ;;  %v116_v60 = vpack.c.bf16 %v78_v56, %v77_v55 }
  0x2f   :  { %3347 = vmatprep.mubr.msk.bf16.mxu0 %vm223_vm1, %v202_v0  ;;  %v3772_v0 = vld [vmem:[%s4996_s4 + $0x30] sm:$0xff]  }
  0x31   :  { %3466 = vmatpush3.bf16.msra.mxu1 %v3771_v58  ;;  %v79_v58 = vld [vmem:[%s4995_s0 + $0x1a0] sm:$0xff] }
  0x32   :  { %3467 = vmatprep.subr.bf16.mxu1 %v3772_v0 }
  0x34   :  { %3376 = vmatmul.mubr.msk.bf16.gmra.mrb[20].mxu1 %vm223_vm1, %v217_v34  ;;  %v64_v34 = vld [vmem:[%s4995_s0 + $0x128] sm:$0xff] }
  0x35   :  { %3379 = vmatprep.mubr.msk.bf16.mxu1 %vm223_vm1, %v218_v36  ;;  %3468 = vmatpush3.bf16.msra.mxu1 %v3772_v0  ;;  %v109_v36 = vpack.c.bf16 %v64_v34, %v63_v33  ;;  %v83_v0 = vld [vmem:[%s4995_s0 + $0x1c0] sm:$0xff] }
  0x36   :  { %3348 = vmatmul.mubr.msk.bf16.gmra.mrb[24].mxu0 %vm223_vm1, %v203_v11  ;;  %v100_v11 = vpack.c.bf16 %v46_v8, %v45_v7  ;;  %3469 = vmatprep.subr.bf16.mxu1 %v3773_v57  ;;  %v119_v3 = vpack.c.bf16 %v84_v1, %v83_v0  ;;  %v88_v7 = vld [vmem:[%s4995_s0 + $0x1e8] sm:$0xff]  ;;  %v4362_v34 = vld [vmem:[%s4997_s5] ss:$0 sm:$0xff] }
  0x37   :  { %3351 = vmatprep.mubr.msk.bf16.mxu0 %vm223_vm1, %v204_v12  ;;  %v101_v12 = vpack.c.bf16 %v48_v10, %v47_v9  ;;  %v89_v10 = vld [vmem:[%s4995_s0 + $0x1f0] sm:$0xff] }
  0x39   :  { %3470 = vmatpush3.bf16.msra.mxu1 %v3773_v57 }
  0x3a   :  { %3535 = vmatprep.subr.bf16.mxu1 %v3774_v28 }
  0x3c   :  { %3380 = vmatmul.mubr.msk.bf16.gmra.mrb[24].mxu1 %vm223_vm1, %v219_v49  ;;  %v73_v49 = vld [vmem:[%s4995_s0 + $0x170] sm:$0xff] }
  0x3d   :  { %3383 = vmatprep.mubr.msk.bf16.mxu1 %vm223_vm1, %v220_v50  ;;  %v74_v50 = vld [vmem:[%s4995_s0 + $0x178] sm:$0xff] }
  0x3e   :  { %3352 = vmatmul.mubr.msk.bf16.gmra.mrb[28].mxu0 %vm223_vm1, %v205_v23  ;;  %v104_v23 = vpack.c.bf16 %v54_v20, %v53_v19 }
  0x3f   :  { %3391 = vmatprep.mubr.msk.bf16.mxu0 %vm622_vm2, %v91_v24  ;;  %v105_v24 = vpack.c.bf16 %v56_v22, %v55_v21 }
  0x44   :  { %3384 = vmatmul.mubr.msk.bf16.gmra.mrb[28].mxu1 %vm223_vm1, %v221_v61  ;;  %v117_v61 = vpack.c.bf16 %v80_v59, %v79_v58 }
  0x46   :  { %3392 = vmatmul.mubr.msk.bf16.vlgmr.msra.gmra.mrb[0].mxu0 %vm622_vm2, %v92_v37  ;;  %v65_v37 = vld [vmem:[%s4995_s0 + $0x130] sm:$0xff] }
  0x47   :  { %3395 = vmatprep.mubr.msk.bf16.mxu0 %vm622_vm2, %v93_v38  ;;  %v66_v38 = vld [vmem:[%s4995_s0 + $0x138] sm:$0xff] }
  0x48   :  { %v110_v41 = vpack.c.bf16 %v66_v38, %v65_v37 }
  0x4e   :  { %3396 = vmatmul.mubr.msk.bf16.gmra.mrb[4].mxu0 %vm622_vm2, %v94_v52  ;;  %v76_v52 = vld [vmem:[%s4995_s0 + $0x188] sm:$0xff] }
  0x4f   :  { %3399 = vmatprep.mubr.msk.bf16.mxu0 %vm622_vm2, %v95_v53  ;;  %v114_v53 = vpack.c.bf16 %v74_v50, %v73_v49  ;;  %v115_v54 = vpack.c.bf16 %v76_v52, %v75_v51 }
  0x56   :  { %3400 = vmatmul.mubr.msk.bf16.gmra.mrb[8].mxu0 %vm622_vm2, %v96_v62  ;;  %v81_v62 = vld [vmem:[%s4995_s0 + $0x1b0] sm:$0xff] }
  0x57   :  { %3403 = vmatprep.mubr.msk.bf16.mxu0 %vm622_vm2, %v97_v63  ;;  %v82_v63 = vld [vmem:[%s4995_s0 + $0x1b8] sm:$0xff] }
  0x58   :  { %v118_v2 = vpack.c.bf16 %v82_v63, %v81_v62 }
  0x5e   :  { %3404 = vmatmul.mubr.msk.bf16.gmra.mrb[12].mxu0 %vm622_vm2, %v98_v5  ;;  %v86_v5 = vld [vmem:[%s4995_s0 + $0x1d8] sm:$0xff] }
  0x5f   :  { %3407 = vmatprep.mubr.msk.bf16.mxu0 %vm622_vm2, %v99_v6  ;;  %v87_v6 = vld [vmem:[%s4995_s0 + $0x1e0] sm:$0xff]  ;;  %v120_v8 = vpack.c.bf16 %v86_v5, %v85_v4 }
  0x60   :  { %v121_v9 = vpack.c.bf16 %v88_v7, %v87_v6 }
  0x66   :  { %3408 = vmatmul.mubr.msk.bf16.gmra.mrb[16].mxu0 %vm622_vm2, %v100_v11  ;;  %v90_v11 = vld [vmem:[%s4995_s0 + $0x1f8] sm:$0xff] }
  0x67   :  { %3411 = vmatprep.mubr.msk.bf16.mxu0 %vm622_vm2, %v101_v12  ;;  %v122_v12 = vpack.c.bf16 %v90_v11, %v89_v10  ;;  %v3776_v11 = vld [vmem:[%s4996_s4 + $0x50] sm:$0xff]  }
  0x6e   :  { %3412 = vmatmul.mubr.msk.bf16.gmra.mrb[20].mxu0 %vm622_vm2, %v102_v17 }
  0x6f   :  { %3415 = vmatprep.mubr.msk.bf16.mxu0 %vm622_vm2, %v103_v18 }
  0x76   :  { %3416 = vmatmul.mubr.msk.bf16.gmra.mrb[24].mxu0 %vm622_vm2, %v104_v23 }
  0x77   :  { %3419 = vmatprep.mubr.msk.bf16.mxu0 %vm622_vm2, %v105_v24 }
  0x7e   :  { %3420 = vmatmul.mubr.msk.bf16.gmra.mrb[28].mxu0 %vm622_vm2, %v106_v29 }
  0x7f   :  { %3423 = vmatprep.mubr.msk.bf16.mxu0 %vm622_vm2, %v107_v30 }
  0x86   :  { %3424 = vmatmul.mubr.msk.bf16.gmra.mrb[32].mxu0 %vm622_vm2, %v108_v35 }
  0x87   :  { %3427 = vmatprep.mubr.msk.bf16.mxu0 %vm622_vm2, %v109_v36 }
  0x8e   :  { %3428 = vmatmul.mubr.msk.bf16.gmra.mrb[36].mxu0 %vm622_vm2, %v110_v41 }
  0x8f   :  { %3431 = vmatprep.mubr.msk.bf16.mxu0 %vm622_vm2, %v111_v42 }
  0x96   :  { %3432 = vmatmul.mubr.msk.bf16.gmra.mrb[40].mxu0 %vm622_vm2, %v112_v47 }
  0x97   :  { %3435 = vmatprep.mubr.msk.bf16.mxu0 %vm622_vm2, %v113_v48 }
  0x9e   :  { %3436 = vmatmul.mubr.msk.bf16.gmra.mrb[44].mxu0 %vm622_vm2, %v114_v53 }
  0x9f   :  { %3439 = vmatprep.mubr.msk.bf16.mxu0 %vm622_vm2, %v115_v54 }
  0xa6   :  { %3440 = vmatmul.mubr.msk.bf16.gmra.mrb[48].mxu0 %vm622_vm2, %v116_v60 }
  0xa7   :  { %3443 = vmatprep.mubr.msk.bf16.mxu0 %vm622_vm2, %v117_v61 }
  0xae   :  { %3444 = vmatmul.mubr.msk.bf16.gmra.mrb[52].mxu0 %vm622_vm2, %v118_v2  ;;  %v3775_v2 = vld [vmem:[%s4996_s4 + $0x48] sm:$0xff]  }
  0xaf   :  { %3447 = vmatprep.mubr.msk.bf16.mxu0 %vm622_vm2, %v119_v3 }
  0xb6   :  { %3448 = vmatmul.mubr.msk.bf16.gmra.mrb[56].mxu0 %vm622_vm2, %v120_v8 }
  0xb7   :  { %3451 = vmatprep.mubr.msk.bf16.mxu0 %vm622_vm2, %v121_v9 }
  0xbe   :  { %3452 = vmatmul.mubr.msk.bf16.gmra.mrb[60].mxu0 %vm622_vm2, %v122_v12 }
  0xdf   :  { %v4316_v13 = vpop.f32.mrb[0].mxu1 }
  0xe0   :  { %v4318_v14 = vpop.f32.mrb[1].mxu1 }
  0xe1   :  { %v4320_v15 = vpop.f32.mrb[2].mxu1 }
  0xe2   :  { %v4322_v16 = vpop.f32.mrb[3].mxu1 }
  0xe7   :  { %v4324_v17 = vpop.f32.mrb[4].mxu1 }
  0xe8   :  { %v4326_v18 = vpop.f32.mrb[5].mxu1 }
  0xe9   :  { %v4328_v19 = vpop.f32.mrb[6].mxu1 }
  0xea   :  { %v4330_v20 = vpop.f32.mrb[7].mxu1 }
  0xef   :  { %v4332_v21 = vpop.f32.mrb[8].mxu1 }
  0xf0   :  { %v4334_v22 = vpop.f32.mrb[9].mxu1 }
  0xf1   :  { %v4336_v23 = vpop.f32.mrb[10].mxu1 }
  0xf2   :  { %v4338_v24 = vpop.f32.mrb[11].mxu1 }
  0xf7   :  { %v4340_v25 = vpop.f32.mrb[12].mxu1 }
  0xf8   :  { %v4342_v26 = vpop.f32.mrb[13].mxu1 }
  0xf9   :  { %v4344_v27 = vpop.f32.mrb[14].mxu1 }
  0xfa   :  { %v4349_v29 = vpop.f32.mrb[15].mxu1 }
  0xff   :  { %v4351_v30 = vpop.f32.mrb[16].mxu1 }
 0x100   :  { %v4353_v31 = vpop.f32.mrb[17].mxu1 }
 0x101   :  { %v4355_v32 = vpop.f32.mrb[18].mxu1 }
 0x102   :  { %v4357_v33 = vpop.f32.mrb[19].mxu1 }
 0x107   :  { %v4364_v35 = vpop.f32.mrb[20].mxu1 }
 0x108   :  { %v4366_v36 = vpop.f32.mrb[21].mxu1 }
 0x109   :  { %v4368_v38 = vpop.f32.mrb[22].mxu1 }
 0x10a   :  { %v4371_v41 = vpop.f32.mrb[23].mxu1 }
 0x10f   :  { %v4376_v51 = vpop.f32.mrb[24].mxu1 }
 0x110   :  { %v4378_v54 = vpop.f32.mrb[25].mxu1 }
 0x111   :  { %v4380_v59 = vpop.f32.mrb[26].mxu1 }
 0x112   :  { %v4383_v63 = vpop.f32.mrb[27].mxu1 }
 0x117   :  { %v4391_v10 = vpop.f32.mrb[28].mxu1 }
 0x119   :  { %v3393_v37 = vpop.f32.mrb[0].mxu0 }
 0x11a   :  { %v1018_v39 = vadd.f32 %v3393_v37, %v4362_v34  ;;  %v756_v40 = vpop.f32.mrb[1].mxu0 }
 0x11b   :  { %v1016_v42 = vadd.f32 %v4362_v34, %v756_v40  ;;  %v3394_v43 = vpop.f32.mrb[2].mxu0 }
 0x11c   :  { %v1146_v44 = vmul.f32 0.01, %v1018_v39  ;;  %v1019_v45 = vadd.f32 %v3394_v43, %v4362_v34  ;;  %v759_v46 = vpop.f32.mrb[3].mxu0  ;;  %vm1082_vm3 = vcmp.gt.f32.partialorder %v1018_v39, 0.0 }
 0x11d   :  { %v1144_v47 = vmul.f32 0.01, %v1016_v42  ;;  %v1017_v48 = vadd.f32 %v4362_v34, %v759_v46  ;;  %vm1080_vm4 = vcmp.gt.f32.partialorder %v1016_v42, 0.0 }
 0x11e   :  { %vm1083_vm5 = vcmp.gt.f32.partialorder %v1019_v45, 0.0  ;;  %v1147_v49 = vmul.f32 0.01, %v1019_v45  ;;  %v1210_v52 = vsel %vm1082_vm3, %v1018_v39, %v1146_v44  ;;  %v4396_v39 = vpop.f32.mrb[29].mxu1 }
 0x11f   :  { %vm1081_vm6 = vcmp.gt.f32.partialorder %v1017_v48, 0.0  ;;  %v1145_v50 = vmul.f32 0.01, %v1017_v48  ;;  %v1208_v57 = vsel %vm1080_vm4, %v1016_v42, %v1144_v47 }
 0x120   :  { %v1211_v53 = vsel %vm1083_vm5, %v1019_v45, %v1147_v49  ;;  %v4398_v45 = vpop.f32.mrb[30].mxu1 }
 0x121   :  { %v1273_v55 = vpack.c.bf16 %v1211_v53, %v1210_v52  ;;  %v3397_v56 = vpop.f32.mrb[4].mxu0  ;;  %v1209_v58 = vsel %vm1081_vm6, %v1017_v48, %v1145_v50  ;;  %v4401_v48 = vpop.f32.mrb[31].mxu1  ;;  %v3777_v52 = vld [vmem:[%s4996_s4 + $0x58] sm:$0xff]  }
 0x122   :  { %v1022_v60 = vadd.f32 %v3397_v56, %v4362_v34  ;;  %v772_v61 = vpop.f32.mrb[5].mxu0  ;;  %v1272_v62 = vpack.c.bf16 %v1209_v58, %v1208_v57 }
 0x123   :  { %v1020_v0 = vadd.f32 %v4362_v34, %v772_v61  ;;  %v3398_v1 = vpop.f32.mrb[6].mxu0 }
 0x124   :  { %v1150_v3 = vmul.f32 0.01, %v1022_v60  ;;  %v1023_v4 = vadd.f32 %v3398_v1, %v4362_v34  ;;  %v775_v5 = vpop.f32.mrb[7].mxu0  ;;  %3471 = vmatprep.mubr.bf16.mxu1 %v1272_v62  ;;  %vm1086_vm7 = vcmp.gt.f32.partialorder %v1022_v60, 0.0  ;;  %v3778_v62 = vld [vmem:[%s4996_s4 + $0x60] sm:$0xff]  }
 0x125   :  { %v1148_v6 = vmul.f32 0.01, %v1020_v0  ;;  %v1021_v7 = vadd.f32 %v4362_v34, %v775_v5  ;;  %3472 = vmatmul.mubr.bf16.vlgmr.msra.gmra.mrb[32].mxu1 %v1273_v55  ;;  %vm1084_vm8 = vcmp.gt.f32.partialorder %v1020_v0, 0.0 }
 0x126   :  { %vm1087_vm9 = vcmp.gt.f32.partialorder %v1023_v4, 0.0  ;;  %v1151_v8 = vmul.f32 0.01, %v1023_v4  ;;  %3536 = vmatpush3.bf16.msra.mxu1 %v3774_v28  ;;  %v1214_v12 = vsel %vm1086_vm7, %v1022_v60, %v1150_v3 }
 0x127   :  { %vm1085_vm10 = vcmp.gt.f32.partialorder %v1021_v7, 0.0  ;;  %v1149_v9 = vmul.f32 0.01, %v1021_v7  ;;  %3537 = vmatprep.subr.bf16.mxu1 %v3775_v2  ;;  %v1212_v42 = vsel %vm1084_vm8, %v1020_v0, %v1148_v6 }
 0x128   :  { %v1215_v37 = vsel %vm1087_vm9, %v1023_v4, %v1151_v8 }
 0x129   :  { %v3401_v40 = vpop.f32.mrb[8].mxu0  ;;  %v1213_v43 = vsel %vm1085_vm10, %v1021_v7, %v1149_v9  ;;  %v1275_v44 = vpack.c.bf16 %v1215_v37, %v1214_v12  ;;  %v3779_v12 = vld [vmem:[%s4996_s4 + $0x68] sm:$0xff]  }
 0x12a   :  { %v1026_v28 = vadd.f32 %v3401_v40, %v4362_v34  ;;  %v788_v46 = vpop.f32.mrb[9].mxu0  ;;  %v1274_v47 = vpack.c.bf16 %v1213_v43, %v1212_v42  ;;  %3538 = vmatpush3.bf16.msra.mxu1 %v3775_v2 }
 0x12b   :  { %v1024_v49 = vadd.f32 %v4362_v34, %v788_v46  ;;  %v3402_v50 = vpop.f32.mrb[10].mxu0  ;;  %3539 = vmatprep.subr.bf16.mxu1 %v3776_v11 }
 0x12c   :  { %v1154_v53 = vmul.f32 0.01, %v1026_v28  ;;  %v1027_v55 = vadd.f32 %v3402_v50, %v4362_v34  ;;  %v791_v56 = vpop.f32.mrb[11].mxu0  ;;  %3475 = vmatprep.mubr.bf16.mxu1 %v1274_v47  ;;  %vm1090_vm11 = vcmp.gt.f32.partialorder %v1026_v28, 0.0  ;;  %v3780_v47 = vld [vmem:[%s4996_s4 + $0x70] sm:$0xff]  }
 0x12d   :  { %v1152_v57 = vmul.f32 0.01, %v1024_v49  ;;  %v1025_v58 = vadd.f32 %v4362_v34, %v791_v56  ;;  %3476 = vmatmul.mubr.bf16.gmra.mrb[36].mxu1 %v1275_v44  ;;  %vm1088_vm12 = vcmp.gt.f32.partialorder %v1024_v49, 0.0 }
 0x12e   :  { %vm1091_vm13 = vcmp.gt.f32.partialorder %v1027_v55, 0.0  ;;  %v1155_v60 = vmul.f32 0.01, %v1027_v55  ;;  %3540 = vmatpush3.bf16.msra.mxu1 %v3776_v11  ;;  %v1218_v0 = vsel %vm1090_vm11, %v1026_v28, %v1154_v53 }
 0x12f   :  { %vm1089_vm14 = vcmp.gt.f32.partialorder %v1025_v58, 0.0  ;;  %v1153_v61 = vmul.f32 0.01, %v1025_v58  ;;  %3541 = vmatprep.subr.bf16.mxu1 %v3777_v52  ;;  %v1216_v3 = vsel %vm1088_vm12, %v1024_v49, %v1152_v57 }
 0x130   :  { %v1219_v1 = vsel %vm1091_vm13, %v1027_v55, %v1155_v60 }
 0x131   :  { %v3405_v2 = vpop.f32.mrb[12].mxu0  ;;  %v1217_v4 = vsel %vm1089_vm14, %v1025_v58, %v1153_v61  ;;  %v1277_v5 = vpack.c.bf16 %v1219_v1, %v1218_v0  ;;  %v3781_v0 = vld [vmem:[%s4996_s4 + $0x78] sm:$0xff]  }
 0x132   :  { %v1030_v6 = vadd.f32 %v3405_v2, %v4362_v34  ;;  %v804_v7 = vpop.f32.mrb[13].mxu0  ;;  %v1276_v8 = vpack.c.bf16 %v1217_v4, %v1216_v3  ;;  %3542 = vmatpush3.bf16.msra.mxu1 %v3777_v52 }
 0x133   :  { %v1028_v9 = vadd.f32 %v4362_v34, %v804_v7  ;;  %v3406_v11 = vpop.f32.mrb[14].mxu0  ;;  %3543 = vmatprep.subr.bf16.mxu1 %v3778_v62 }
 0x134   :  { %v1158_v37 = vmul.f32 0.01, %v1030_v6  ;;  %v1031_v40 = vadd.f32 %v3406_v11, %v4362_v34  ;;  %v807_v42 = vpop.f32.mrb[15].mxu0  ;;  %3479 = vmatprep.mubr.bf16.mxu1 %v1276_v8  ;;  %vm1094_vm15 = vcmp.gt.f32.partialorder %v1030_v6, 0.0 }
 0x135   :  { %v1156_v43 = vmul.f32 0.01, %v1028_v9  ;;  %v1029_v44 = vadd.f32 %v4362_v34, %v807_v42  ;;  %3480 = vmatmul.mubr.bf16.gmra.mrb[40].mxu1 %v1277_v5  ;;  %vm1092_vm0 = vcmp.gt.f32.partialorder %v1028_v9, 0.0 }
 0x136   :  { %vm1095_vm1 = vcmp.gt.f32.partialorder %v1031_v40, 0.0  ;;  %v1159_v28 = vmul.f32 0.01, %v1031_v40  ;;  %3544 = vmatpush3.bf16.msra.mxu1 %v3778_v62  ;;  %v1222_v49 = vsel %vm1094_vm15, %v1030_v6, %v1158_v37 }
 0x137   :  { %vm1093_vm2 = vcmp.gt.f32.partialorder %v1029_v44, 0.0  ;;  %v1157_v46 = vmul.f32 0.01, %v1029_v44  ;;  %3545 = vmatprep.subr.bf16.mxu1 %v3779_v12  ;;  %v1220_v53 = vsel %vm1092_vm0, %v1028_v9, %v1156_v43 }
 0x138   :  { %v1223_v50 = vsel %vm1095_vm1, %v1031_v40, %v1159_v28 }
 0x139   :  { %v3409_v52 = vpop.f32.mrb[16].mxu0  ;;  %v1221_v55 = vsel %vm1093_vm2, %v1029_v44, %v1157_v46  ;;  %v1279_v56 = vpack.c.bf16 %v1223_v50, %v1222_v49 }
 0x13a   :  { %v1034_v57 = vadd.f32 %v3409_v52, %v4362_v34  ;;  %v820_v58 = vpop.f32.mrb[17].mxu0  ;;  %v1278_v60 = vpack.c.bf16 %v1221_v55, %v1220_v53  ;;  %3546 = vmatpush3.bf16.msra.mxu1 %v3779_v12 }
 0x13b   :  { %v1032_v61 = vadd.f32 %v4362_v34, %v820_v58  ;;  %v3410_v62 = vpop.f32.mrb[18].mxu0  ;;  %3547 = vmatprep.subr.bf16.mxu1 %v3780_v47 }
 0x13c   :  { %v1162_v1 = vmul.f32 0.01, %v1034_v57  ;;  %v1035_v2 = vadd.f32 %v3410_v62, %v4362_v34  ;;  %v823_v3 = vpop.f32.mrb[19].mxu0  ;;  %3483 = vmatprep.mubr.bf16.mxu1 %v1278_v60  ;;  %vm1098_vm3 = vcmp.gt.f32.partialorder %v1034_v57, 0.0 }
 0x13d   :  { %v1160_v4 = vmul.f32 0.01, %v1032_v61  ;;  %v1033_v5 = vadd.f32 %v4362_v34, %v823_v3  ;;  %3484 = vmatmul.mubr.bf16.gmra.mrb[44].mxu1 %v1279_v56  ;;  %vm1096_vm4 = vcmp.gt.f32.partialorder %v1032_v61, 0.0 }
 0x13e   :  { %vm1099_vm5 = vcmp.gt.f32.partialorder %v1035_v2, 0.0  ;;  %v1163_v6 = vmul.f32 0.01, %v1035_v2  ;;  %3548 = vmatpush3.bf16.msra.mxu1 %v3780_v47  ;;  %v1226_v8 = vsel %vm1098_vm3, %v1034_v57, %v1162_v1 }
 0x13f   :  { %vm1097_vm6 = vcmp.gt.f32.partialorder %v1033_v5, 0.0  ;;  %v1161_v7 = vmul.f32 0.01, %v1033_v5  ;;  %3549 = vmatprep.subr.bf16.mxu1 %v3781_v0  ;;  %v1224_v12 = vsel %vm1096_vm4, %v1032_v61, %v1160_v4 }
 0x140   :  { %v1227_v9 = vsel %vm1099_vm5, %v1035_v2, %v1163_v6 }
 0x141   :  { %v3413_v11 = vpop.f32.mrb[20].mxu0  ;;  %v1225_v37 = vsel %vm1097_vm6, %v1033_v5, %v1161_v7  ;;  %v1281_v40 = vpack.c.bf16 %v1227_v9, %v1226_v8 }
 0x142   :  { %v1038_v42 = vadd.f32 %v3413_v11, %v4362_v34  ;;  %v836_v43 = vpop.f32.mrb[21].mxu0  ;;  %v1280_v44 = vpack.c.bf16 %v1225_v37, %v1224_v12  ;;  %3550 = vmatpush3.bf16.msra.mxu1 %v3781_v0 }
 0x143   :  { %v1036_v28 = vadd.f32 %v4362_v34, %v836_v43  ;;  %v3414_v46 = vpop.f32.mrb[22].mxu0 }
 0x144   :  { %v1166_v49 = vmul.f32 0.01, %v1038_v42  ;;  %v1039_v47 = vadd.f32 %v3414_v46, %v4362_v34  ;;  %v839_v50 = vpop.f32.mrb[23].mxu0  ;;  %3487 = vmatprep.mubr.bf16.mxu1 %v1280_v44  ;;  %vm1102_vm7 = vcmp.gt.f32.partialorder %v1038_v42, 0.0 }
 0x145   :  { %v1164_v52 = vmul.f32 0.01, %v1036_v28  ;;  %v1037_v53 = vadd.f32 %v4362_v34, %v839_v50  ;;  %3488 = vmatmul.mubr.bf16.gmra.mrb[48].mxu1 %v1281_v40  ;;  %vm1100_vm8 = vcmp.gt.f32.partialorder %v1036_v28, 0.0 }
 0x146   :  { %vm1103_vm9 = vcmp.gt.f32.partialorder %v1039_v47, 0.0  ;;  %v1167_v55 = vmul.f32 0.01, %v1039_v47  ;;  %v1230_v57 = vsel %vm1102_vm7, %v1038_v42, %v1166_v49 }
 0x147   :  { %vm1101_vm10 = vcmp.gt.f32.partialorder %v1037_v53, 0.0  ;;  %v1165_v56 = vmul.f32 0.01, %v1037_v53  ;;  %v1228_v61 = vsel %vm1100_vm8, %v1036_v28, %v1164_v52 }
 0x148   :  { %v1231_v58 = vsel %vm1103_vm9, %v1039_v47, %v1167_v55 }
 0x149   :  { %v3417_v60 = vpop.f32.mrb[24].mxu0  ;;  %v1229_v62 = vsel %vm1101_vm10, %v1037_v53, %v1165_v56  ;;  %v1283_v0 = vpack.c.bf16 %v1231_v58, %v1230_v57 }
 0x14a   :  { %v1042_v1 = vadd.f32 %v3417_v60, %v4362_v34  ;;  %v852_v2 = vpop.f32.mrb[25].mxu0  ;;  %v1282_v3 = vpack.c.bf16 %v1229_v62, %v1228_v61 }
 0x14b   :  { %v1040_v4 = vadd.f32 %v4362_v34, %v852_v2  ;;  %v3418_v5 = vpop.f32.mrb[26].mxu0 }
 0x14c   :  { %v1170_v6 = vmul.f32 0.01, %v1042_v1  ;;  %v1043_v7 = vadd.f32 %v3418_v5, %v4362_v34  ;;  %v855_v8 = vpop.f32.mrb[27].mxu0  ;;  %3491 = vmatprep.mubr.bf16.mxu1 %v1282_v3  ;;  %vm1106_vm11 = vcmp.gt.f32.partialorder %v1042_v1, 0.0 }
 0x14d   :  { %v1168_v9 = vmul.f32 0.01, %v1040_v4  ;;  %v1041_v11 = vadd.f32 %v4362_v34, %v855_v8  ;;  %3492 = vmatmul.mubr.bf16.gmra.mrb[52].mxu1 %v1283_v0  ;;  %vm1104_vm12 = vcmp.gt.f32.partialorder %v1040_v4, 0.0 }
 0x14e   :  { %vm1107_vm13 = vcmp.gt.f32.partialorder %v1043_v7, 0.0  ;;  %v1171_v12 = vmul.f32 0.01, %v1043_v7  ;;  %v1234_v40 = vsel %vm1106_vm11, %v1042_v1, %v1170_v6 }
 0x14f   :  { %vm1105_vm14 = vcmp.gt.f32.partialorder %v1041_v11, 0.0  ;;  %v1169_v37 = vmul.f32 0.01, %v1041_v11  ;;  %v1232_v44 = vsel %vm1104_vm12, %v1040_v4, %v1168_v9 }
 0x150   :  { %v1235_v42 = vsel %vm1107_vm13, %v1043_v7, %v1171_v12 }
 0x151   :  { %v3421_v43 = vpop.f32.mrb[28].mxu0  ;;  %v1233_v28 = vsel %vm1105_vm14, %v1041_v11, %v1169_v37  ;;  %v1285_v46 = vpack.c.bf16 %v1235_v42, %v1234_v40 }
 0x152   :  { %v1046_v49 = vadd.f32 %v3421_v43, %v4362_v34  ;;  %v868_v47 = vpop.f32.mrb[29].mxu0  ;;  %v1284_v50 = vpack.c.bf16 %v1233_v28, %v1232_v44 }
 0x153   :  { %v1044_v52 = vadd.f32 %v4362_v34, %v868_v47  ;;  %v3422_v53 = vpop.f32.mrb[30].mxu0 }
 0x154   :  { %v1174_v55 = vmul.f32 0.01, %v1046_v49  ;;  %v1047_v56 = vadd.f32 %v3422_v53, %v4362_v34  ;;  %v871_v57 = vpop.f32.mrb[31].mxu0  ;;  %3495 = vmatprep.mubr.bf16.mxu1 %v1284_v50  ;;  %vm1110_vm15 = vcmp.gt.f32.partialorder %v1046_v49, 0.0 }
 0x155   :  { %v1172_v58 = vmul.f32 0.01, %v1044_v52  ;;  %v1045_v60 = vadd.f32 %v4362_v34, %v871_v57  ;;  %3496 = vmatmul.mubr.bf16.gmra.mrb[56].mxu1 %v1285_v46  ;;  %vm1108_vm0 = vcmp.gt.f32.partialorder %v1044_v52, 0.0 }
 0x156   :  { %vm1111_vm1 = vcmp.gt.f32.partialorder %v1047_v56, 0.0  ;;  %v1175_v61 = vmul.f32 0.01, %v1047_v56  ;;  %v1238_v0 = vsel %vm1110_vm15, %v1046_v49, %v1174_v55 }
 0x157   :  { %vm1109_vm2 = vcmp.gt.f32.partialorder %v1045_v60, 0.0  ;;  %v1173_v62 = vmul.f32 0.01, %v1045_v60  ;;  %v1236_v3 = vsel %vm1108_vm0, %v1044_v52, %v1172_v58 }
 0x158   :  { %v1239_v1 = vsel %vm1111_vm1, %v1047_v56, %v1175_v61 }
 0x159   :  { %v3425_v2 = vpop.f32.mrb[32].mxu0  ;;  %v1237_v4 = vsel %vm1109_vm2, %v1045_v60, %v1173_v62  ;;  %v1287_v5 = vpack.c.bf16 %v1239_v1, %v1238_v0 }
 0x15a   :  { %v893_v6 = vadd.f32 %v3425_v2, %v4316_v13  ;;  %v884_v7 = vpop.f32.mrb[33].mxu0  ;;  %v1286_v8 = vpack.c.bf16 %v1237_v4, %v1236_v3 }
 0x15b   :  { %v885_v9 = vadd.f32 %v884_v7, %v4318_v14  ;;  %v3426_v11 = vpop.f32.mrb[34].mxu0 }
 0x15c   :  { %v1050_v12 = vadd.f32 %v4362_v34, %v893_v6  ;;  %v896_v37 = vadd.f32 %v3426_v11, %v4320_v15  ;;  %v887_v40 = vpop.f32.mrb[35].mxu0  ;;  %3499 = vmatprep.mubr.bf16.mxu1 %v1286_v8 }
 0x15d   :  { %v1048_v42 = vadd.f32 %v4362_v34, %v885_v9  ;;  %v888_v43 = vadd.f32 %v887_v40, %v4322_v16  ;;  %3500 = vmatmul.mubr.bf16.gmra.mrb[60].mxu1 %v1287_v5 }
 0x15e   :  { %v1178_v44 = vmul.f32 0.01, %v1050_v12  ;;  %v1051_v28 = vadd.f32 %v4362_v34, %v896_v37  ;;  %vm1114_vm3 = vcmp.gt.f32.partialorder %v1050_v12, 0.0 }
 0x15f   :  { %v1176_v13 = vmul.f32 0.01, %v1048_v42  ;;  %v1049_v46 = vadd.f32 %v4362_v34, %v888_v43  ;;  %vm1112_vm4 = vcmp.gt.f32.partialorder %v1048_v42, 0.0 }
 0x160   :  { %vm1115_vm5 = vcmp.gt.f32.partialorder %v1051_v28, 0.0  ;;  %v1179_v14 = vmul.f32 0.01, %v1051_v28  ;;  %v1242_v52 = vsel %vm1114_vm3, %v1050_v12, %v1178_v44 }
 0x161   :  { %vm1113_vm6 = vcmp.gt.f32.partialorder %v1049_v46, 0.0  ;;  %v1177_v49 = vmul.f32 0.01, %v1049_v46  ;;  %v3429_v15 = vpop.f32.mrb[36].mxu0  ;;  %v1240_v56 = vsel %vm1112_vm4, %v1048_v42, %v1176_v13 }
 0x162   :  { %v909_v47 = vadd.f32 %v3429_v15, %v4324_v17  ;;  %v900_v50 = vpop.f32.mrb[37].mxu0  ;;  %v1243_v53 = vsel %vm1115_vm5, %v1051_v28, %v1179_v14 }
 0x163   :  { %v901_v16 = vadd.f32 %v900_v50, %v4326_v18  ;;  %v3430_v55 = vpop.f32.mrb[38].mxu0  ;;  %v1241_v57 = vsel %vm1113_vm6, %v1049_v46, %v1177_v49  ;;  %v1289_v58 = vpack.c.bf16 %v1243_v53, %v1242_v52 }
 0x164   :  { %v1054_v60 = vadd.f32 %v4362_v34, %v909_v47  ;;  %v912_v61 = vadd.f32 %v3430_v55, %v4328_v19  ;;  %v903_v62 = vpop.f32.mrb[39].mxu0  ;;  %v1288_v0 = vpack.c.bf16 %v1241_v57, %v1240_v56 }
 0x165   :  { %v1052_v1 = vadd.f32 %v4362_v34, %v901_v16  ;;  %v904_v2 = vadd.f32 %v903_v62, %v4330_v20 }
 0x166   :  { %v1182_v17 = vmul.f32 0.01, %v1054_v60  ;;  %v1055_v3 = vadd.f32 %v4362_v34, %v912_v61  ;;  %3503 = vmatprep.mubr.bf16.mxu1 %v1288_v0  ;;  %vm1118_vm7 = vcmp.gt.f32.partialorder %v1054_v60, 0.0 }
 0x167   :  { %v1180_v18 = vmul.f32 0.01, %v1052_v1  ;;  %v1053_v4 = vadd.f32 %v4362_v34, %v904_v2  ;;  %3504 = vmatmul.mubr.bf16.gmra.mrb[64].mxu1 %v1289_v58  ;;  %vm1116_vm8 = vcmp.gt.f32.partialorder %v1052_v1, 0.0 }
 0x168   :  { %vm1119_vm9 = vcmp.gt.f32.partialorder %v1055_v3, 0.0  ;;  %v1183_v5 = vmul.f32 0.01, %v1055_v3  ;;  %v1246_v9 = vsel %vm1118_vm7, %v1054_v60, %v1182_v17 }
 0x169   :  { %vm1117_vm10 = vcmp.gt.f32.partialorder %v1053_v4, 0.0  ;;  %v1181_v19 = vmul.f32 0.01, %v1053_v4  ;;  %v3433_v6 = vpop.f32.mrb[40].mxu0  ;;  %v1244_v37 = vsel %vm1116_vm8, %v1052_v1, %v1180_v18 }
 0x16a   :  { %v925_v7 = vadd.f32 %v3433_v6, %v4332_v21  ;;  %v916_v8 = vpop.f32.mrb[41].mxu0  ;;  %v1247_v20 = vsel %vm1119_vm9, %v1055_v3, %v1183_v5 }
 0x16b   :  { %v917_v11 = vadd.f32 %v916_v8, %v4334_v22  ;;  %v3434_v12 = vpop.f32.mrb[42].mxu0  ;;  %v1245_v40 = vsel %vm1117_vm10, %v1053_v4, %v1181_v19  ;;  %v1291_v42 = vpack.c.bf16 %v1247_v20, %v1246_v9 }
 0x16c   :  { %v1058_v43 = vadd.f32 %v4362_v34, %v925_v7  ;;  %v928_v44 = vadd.f32 %v3434_v12, %v4336_v23  ;;  %v919_v28 = vpop.f32.mrb[43].mxu0  ;;  %v1290_v13 = vpack.c.bf16 %v1245_v40, %v1244_v37 }
 0x16d   :  { %v1056_v46 = vadd.f32 %v4362_v34, %v917_v11  ;;  %v920_v14 = vadd.f32 %v919_v28, %v4338_v24 }
 0x16e   :  { %v1186_v21 = vmul.f32 0.01, %v1058_v43  ;;  %v1059_v49 = vadd.f32 %v4362_v34, %v928_v44  ;;  %3507 = vmatprep.mubr.bf16.mxu1 %v1290_v13  ;;  %vm1122_vm11 = vcmp.gt.f32.partialorder %v1058_v43, 0.0 }
 0x16f   :  { %v1184_v22 = vmul.f32 0.01, %v1056_v46  ;;  %v1057_v15 = vadd.f32 %v4362_v34, %v920_v14  ;;  %3508 = vmatmul.mubr.bf16.gmra.mrb[68].mxu1 %v1291_v42  ;;  %vm1120_vm12 = vcmp.gt.f32.partialorder %v1056_v46, 0.0 }
 0x170   :  { %vm1123_vm13 = vcmp.gt.f32.partialorder %v1059_v49, 0.0  ;;  %v1187_v47 = vmul.f32 0.01, %v1059_v49  ;;  %v1250_v16 = vsel %vm1122_vm11, %v1058_v43, %v1186_v21 }
 0x171   :  { %vm1121_vm14 = vcmp.gt.f32.partialorder %v1057_v15, 0.0  ;;  %v1185_v23 = vmul.f32 0.01, %v1057_v15  ;;  %v3437_v50 = vpop.f32.mrb[44].mxu0  ;;  %v1248_v57 = vsel %vm1120_vm12, %v1056_v46, %v1184_v22 }
 0x172   :  { %v941_v52 = vadd.f32 %v3437_v50, %v4340_v25  ;;  %v932_v53 = vpop.f32.mrb[45].mxu0  ;;  %v1251_v24 = vsel %vm1123_vm13, %v1059_v49, %v1187_v47 }
 0x173   :  { %v933_v55 = vadd.f32 %v932_v53, %v4342_v26  ;;  %v3438_v56 = vpop.f32.mrb[46].mxu0  ;;  %v1249_v58 = vsel %vm1121_vm14, %v1057_v15, %v1185_v23  ;;  %v1293_v60 = vpack.c.bf16 %v1251_v24, %v1250_v16 }
 0x174   :  { %v1062_v61 = vadd.f32 %v4362_v34, %v941_v52  ;;  %v944_v62 = vadd.f32 %v3438_v56, %v4344_v27  ;;  %v935_v0 = vpop.f32.mrb[47].mxu0  ;;  %v1292_v1 = vpack.c.bf16 %v1249_v58, %v1248_v57 }
 0x175   :  { %v1060_v2 = vadd.f32 %v4362_v34, %v933_v55  ;;  %v936_v17 = vadd.f32 %v935_v0, %v4349_v29 }
 0x176   :  { %v1190_v25 = vmul.f32 0.01, %v1062_v61  ;;  %v1063_v3 = vadd.f32 %v4362_v34, %v944_v62  ;;  %3511 = vmatprep.mubr.bf16.mxu1 %v1292_v1  ;;  %vm1126_vm15 = vcmp.gt.f32.partialorder %v1062_v61, 0.0 }
 0x177   :  { %v1188_v26 = vmul.f32 0.01, %v1060_v2  ;;  %v1061_v18 = vadd.f32 %v4362_v34, %v936_v17  ;;  %3512 = vmatmul.mubr.bf16.gmra.mrb[72].mxu1 %v1293_v60  ;;  %vm1124_vm0 = vcmp.gt.f32.partialorder %v1060_v2, 0.0 }
 0x178   :  { %vm1127_vm1 = vcmp.gt.f32.partialorder %v1063_v3, 0.0  ;;  %v1191_v4 = vmul.f32 0.01, %v1063_v3  ;;  %v1254_v7 = vsel %vm1126_vm15, %v1062_v61, %v1190_v25 }
 0x179   :  { %vm1125_vm2 = vcmp.gt.f32.partialorder %v1061_v18, 0.0  ;;  %v1189_v27 = vmul.f32 0.01, %v1061_v18  ;;  %v3441_v5 = vpop.f32.mrb[48].mxu0  ;;  %v1252_v20 = vsel %vm1124_vm0, %v1060_v2, %v1188_v26 }
 0x17a   :  { %v957_v19 = vadd.f32 %v3441_v5, %v4351_v30  ;;  %v948_v6 = vpop.f32.mrb[49].mxu0  ;;  %v1255_v29 = vsel %vm1127_vm1, %v1063_v3, %v1191_v4 }
 0x17b   :  { %v949_v8 = vadd.f32 %v948_v6, %v4353_v31  ;;  %v3442_v9 = vpop.f32.mrb[50].mxu0  ;;  %v1253_v11 = vsel %vm1125_vm2, %v1061_v18, %v1189_v27  ;;  %v1295_v12 = vpack.c.bf16 %v1255_v29, %v1254_v7 }
 0x17c   :  { %v1066_v37 = vadd.f32 %v4362_v34, %v957_v19  ;;  %v960_v40 = vadd.f32 %v3442_v9, %v4355_v32  ;;  %v951_v42 = vpop.f32.mrb[51].mxu0  ;;  %v1294_v43 = vpack.c.bf16 %v1253_v11, %v1252_v20 }
 0x17d   :  { %v1064_v44 = vadd.f32 %v4362_v34, %v949_v8  ;;  %v952_v28 = vadd.f32 %v951_v42, %v4357_v33 }
 0x17e   :  { %v1194_v30 = vmul.f32 0.01, %v1066_v37  ;;  %v1067_v13 = vadd.f32 %v4362_v34, %v960_v40  ;;  %3515 = vmatprep.mubr.bf16.mxu1 %v1294_v43  ;;  %vm1130_vm3 = vcmp.gt.f32.partialorder %v1066_v37, 0.0 }
 0x17f   :  { %v1192_v31 = vmul.f32 0.01, %v1064_v44  ;;  %v1065_v46 = vadd.f32 %v4362_v34, %v952_v28  ;;  %3516 = vmatmul.mubr.bf16.gmra.mrb[76].mxu1 %v1295_v12  ;;  %vm1128_vm4 = vcmp.gt.f32.partialorder %v1064_v44, 0.0 }
 0x180   :  { %vm1131_vm5 = vcmp.gt.f32.partialorder %v1067_v13, 0.0  ;;  %v1195_v14 = vmul.f32 0.01, %v1067_v13  ;;  %v1258_v15 = vsel %vm1130_vm3, %v1066_v37, %v1194_v30 }
 0x181   :  { %vm1129_vm6 = vcmp.gt.f32.partialorder %v1065_v46, 0.0  ;;  %v1193_v32 = vmul.f32 0.01, %v1065_v46  ;;  %v3445_v21 = vpop.f32.mrb[52].mxu0  ;;  %v1256_v50 = vsel %vm1128_vm4, %v1064_v44, %v1192_v31 }
 0x182   :  { %v973_v49 = vadd.f32 %v3445_v21, %v4364_v35  ;;  %v964_v22 = vpop.f32.mrb[53].mxu0  ;;  %v1259_v33 = vsel %vm1131_vm5, %v1067_v13, %v1195_v14 }
 0x183   :  { %v965_v47 = vadd.f32 %v964_v22, %v4366_v36  ;;  %v3446_v23 = vpop.f32.mrb[54].mxu0  ;;  %v1257_v52 = vsel %vm1129_vm6, %v1065_v46, %v1193_v32  ;;  %v1297_v53 = vpack.c.bf16 %v1259_v33, %v1258_v15 }
 0x184   :  { %v1070_v16 = vadd.f32 %v4362_v34, %v973_v49  ;;  %v976_v24 = vadd.f32 %v3446_v23, %v4368_v38  ;;  %v967_v55 = vpop.f32.mrb[55].mxu0  ;;  %v1296_v56 = vpack.c.bf16 %v1257_v52, %v1256_v50 }
 0x185   :  { %v1068_v57 = vadd.f32 %v4362_v34, %v965_v47  ;;  %v968_v58 = vadd.f32 %v967_v55, %v4371_v41 }
 0x186   :  { %v1198_v35 = vmul.f32 0.01, %v1070_v16  ;;  %v1071_v60 = vadd.f32 %v4362_v34, %v976_v24  ;;  %3519 = vmatprep.mubr.bf16.mxu1 %v1296_v56  ;;  %vm1134_vm7 = vcmp.gt.f32.partialorder %v1070_v16, 0.0  ;;  %v3783_v24 = vld [vmem:[%s4998_s6 + $0x8] sm:$0xff]  }
 0x187   :  { %v1196_v36 = vmul.f32 0.01, %v1068_v57  ;;  %v1069_v61 = vadd.f32 %v4362_v34, %v968_v58  ;;  %3520 = vmatmul.mubr.bf16.gmra.mrb[80].mxu1 %v1297_v53  ;;  %vm1132_vm8 = vcmp.gt.f32.partialorder %v1068_v57, 0.0  ;;  %v3782_v53 = vld [vmem:[%s4998_s6] sm:$0xff]  }
 0x188   :  { %vm1135_vm9 = vcmp.gt.f32.partialorder %v1071_v60, 0.0  ;;  %v1199_v62 = vmul.f32 0.01, %v1071_v60  ;;  %v1262_v17 = vsel %vm1134_vm7, %v1070_v16, %v1198_v35  ;;  %3615 = vmatprep.subr.bf16.mxu0 %v3782_v53 }
 0x189   :  { %vm1133_vm10 = vcmp.gt.f32.partialorder %v1069_v61, 0.0  ;;  %v1197_v38 = vmul.f32 0.01, %v1069_v61  ;;  %v3449_v0 = vpop.f32.mrb[56].mxu0  ;;  %v1260_v26 = vsel %vm1132_vm8, %v1068_v57, %v1196_v36  ;;  %3616 = vmatpush3.bf16.msra.mxu0 %v3782_v53 }
 0x18a   :  { %v989_v1 = vadd.f32 %v3449_v0, %v4376_v51  ;;  %v980_v2 = vpop.f32.mrb[57].mxu0  ;;  %v1263_v41 = vsel %vm1135_vm9, %v1071_v60, %v1199_v62  ;;  %3617 = vmatprep.subr.bf16.mxu0 %v3783_v24 }
 0x18b   :  { %v981_v25 = vadd.f32 %v980_v2, %v4378_v54  ;;  %v3450_v3 = vpop.f32.mrb[58].mxu0  ;;  %v1261_v18 = vsel %vm1133_vm10, %v1069_v61, %v1197_v38  ;;  %v1299_v4 = vpack.c.bf16 %v1263_v41, %v1262_v17  ;;  %v3785_v2 = vld [vmem:[%s4998_s6 + $0x18] sm:$0xff]  }
 0x18c   :  { %v1074_v27 = vadd.f32 %v4362_v34, %v989_v1  ;;  %v992_v5 = vadd.f32 %v3450_v3, %v4380_v59  ;;  %v983_v19 = vpop.f32.mrb[59].mxu0  ;;  %v1298_v6 = vpack.c.bf16 %v1261_v18, %v1260_v26  ;;  %v3784_v1 = vld [vmem:[%s4998_s6 + $0x10] sm:$0xff]  }
 0x18d   :  { %v1072_v7 = vadd.f32 %v4362_v34, %v981_v25  ;;  %v984_v29 = vadd.f32 %v983_v19, %v4383_v63  ;;  %3618 = vmatpush3.bf16.msra.mxu0 %v3783_v24 }
 0x18e   :  { %v1202_v51 = vmul.f32 0.01, %v1074_v27  ;;  %v1075_v8 = vadd.f32 %v4362_v34, %v992_v5  ;;  %3523 = vmatprep.mubr.bf16.mxu1 %v1298_v6  ;;  %vm1138_vm11 = vcmp.gt.f32.partialorder %v1074_v27, 0.0  ;;  %3619 = vmatprep.subr.bf16.mxu0 %v3784_v1 }
 0x18f   :  { %v1200_v54 = vmul.f32 0.01, %v1072_v7  ;;  %v1073_v9 = vadd.f32 %v4362_v34, %v984_v29  ;;  %3524 = vmatmul.mubr.bf16.gmra.mrb[84].mxu1 %v1299_v4  ;;  %vm1136_vm12 = vcmp.gt.f32.partialorder %v1072_v7, 0.0 }
 0x190   :  { %vm1139_vm13 = vcmp.gt.f32.partialorder %v1075_v8, 0.0  ;;  %v1203_v20 = vmul.f32 0.01, %v1075_v8  ;;  %v1266_v40 = vsel %vm1138_vm11, %v1074_v27, %v1202_v51 }
 0x191   :  { %vm1137_vm14 = vcmp.gt.f32.partialorder %v1073_v9, 0.0  ;;  %v1201_v59 = vmul.f32 0.01, %v1073_v9  ;;  %v3453_v11 = vpop.f32.mrb[60].mxu0  ;;  %v1264_v44 = vsel %vm1136_vm12, %v1072_v7, %v1200_v54  ;;  %3620 = vmatpush3.bf16.msra.mxu0 %v3784_v1  ;;  %v3786_v7 = vld [vmem:[%s4998_s6 + $0x20] sm:$0xff]  }
 0x192   :  { %v1005_v12 = vadd.f32 %v3453_v11, %v4391_v10  ;;  %v996_v37 = vpop.f32.mrb[61].mxu0  ;;  %v1267_v63 = vsel %vm1139_vm13, %v1075_v8, %v1203_v20  ;;  %3621 = vmatprep.subr.bf16.mxu0 %v3785_v2  ;;  %v3787_v11 = vld [vmem:[%s4998_s6 + $0x28] sm:$0xff]  }
 0x193   :  { %v997_v42 = vadd.f32 %v996_v37, %v4396_v39  ;;  %v3454_v43 = vpop.f32.mrb[62].mxu0  ;;  %v1265_v28 = vsel %vm1137_vm14, %v1073_v9, %v1201_v59  ;;  %v1301_v30 = vpack.c.bf16 %v1267_v63, %v1266_v40 }
 0x194   :  { %v1078_v13 = vadd.f32 %v4362_v34, %v1005_v12  ;;  %v1008_v31 = vadd.f32 %v3454_v43, %v4398_v45  ;;  %v999_v46 = vpop.f32.mrb[63].mxu0  ;;  %v1300_v14 = vpack.c.bf16 %v1265_v28, %v1264_v44 }
 0x195   :  { %v1076_v32 = vadd.f32 %v4362_v34, %v997_v42  ;;  %v1000_v21 = vadd.f32 %v999_v46, %v4401_v48  ;;  %3622 = vmatpush3.bf16.msra.mxu0 %v3785_v2  ;;  %v3788_v46 = vld [vmem:[%s4998_s6 + $0x30] sm:$0xff]  }
 0x196   :  { %v1206_v10 = vmul.f32 0.01, %v1078_v13  ;;  %v1079_v49 = vadd.f32 %v4362_v34, %v1008_v31  ;;  %3527 = vmatprep.mubr.bf16.mxu1 %v1300_v14  ;;  %vm1142_vm15 = vcmp.gt.f32.partialorder %v1078_v13, 0.0  ;;  %3623 = vmatprep.subr.bf16.mxu0 %v3786_v7 }
 0x197   :  { %v1204_v39 = vmul.f32 0.01, %v1076_v32  ;;  %v1077_v22 = vadd.f32 %v4362_v34, %v1000_v21  ;;  %3528 = vmatmul.mubr.bf16.gmra.mrb[88].mxu1 %v1301_v30  ;;  %vm1140_vm0 = vcmp.gt.f32.partialorder %v1076_v32, 0.0  ;;  %v4511_v34 = vld [vmem:[%s4997_s5 + $0x1] ss:$0 sm:$0xff] }
 0x198   :  { %vm1143_vm1 = vcmp.gt.f32.partialorder %v1079_v49, 0.0  ;;  %v1207_v15 = vmul.f32 0.01, %v1079_v49  ;;  %v1270_v33 = vsel %vm1142_vm15, %v1078_v13, %v1206_v10 }
 0x199   :  { %vm1141_vm2 = vcmp.gt.f32.partialorder %v1077_v22, 0.0  ;;  %v1205_v45 = vmul.f32 0.01, %v1077_v22  ;;  %v1268_v23 = vsel %vm1140_vm0, %v1076_v32, %v1204_v39  ;;  %3624 = vmatpush3.bf16.msra.mxu0 %v3786_v7 }
 0x19a   :  { %v1271_v47 = vsel %vm1143_vm1, %v1079_v49, %v1207_v15  ;;  %3625 = vmatprep.subr.bf16.mxu0 %v3787_v11  ;;  %v3789_v15 = vld [vmem:[%s4998_s6 + $0x38] sm:$0xff]  }
 0x19b   :  { %v1269_v50 = vsel %vm1141_vm2, %v1077_v22, %v1205_v45  ;;  %v1303_v52 = vpack.c.bf16 %v1271_v47, %v1270_v33 }
 0x19c   :  { %v1302_v48 = vpack.c.bf16 %v1269_v50, %v1268_v23 }
 0x19d   :  { %3626 = vmatpush3.bf16.msra.mxu0 %v3787_v11 }
 0x19e   :  { %3531 = vmatprep.mubr.bf16.mxu1 %v1302_v48  ;;  %3627 = vmatprep.subr.bf16.mxu0 %v3788_v46 }
 0x19f   :  { %3532 = vmatmul.mubr.bf16.gmra.mrb[92].mxu1 %v1303_v52 }
 0x1a1   :  { %3628 = vmatpush3.bf16.msra.mxu0 %v3788_v46 }
 0x1a2   :  { %3629 = vmatprep.subr.bf16.mxu0 %v3789_v15 }
 0x1a5   :  { %3630 = vmatpush3.bf16.msra.mxu0 %v3789_v15 }
 0x1f8   :  { %v3473_v16 = vpop.f32.mrb[32].mxu1 }
 0x1f9   :  { %v1416_v55 = vadd.f32 %v3473_v16, %v4511_v34  ;;  %v1407_v56 = vpop.f32.mrb[33].mxu1 }
 0x1fa   :  { %v1408_v57 = vadd.f32 %v4511_v34, %v1407_v56  ;;  %v3474_v58 = vpop.f32.mrb[34].mxu1 }
 0x1fb   :  { %v1728_v35 = vmul.f32 0.01, %v1416_v55  ;;  %v1419_v60 = vadd.f32 %v3474_v58, %v4511_v34  ;;  %v1410_v36 = vpop.f32.mrb[35].mxu1  ;;  %vm1664_vm3 = vcmp.gt.f32.partialorder %v1416_v55, 0.0 }
 0x1fc   :  { %v1726_v61 = vmul.f32 0.01, %v1408_v57  ;;  %v1411_v62 = vadd.f32 %v4511_v34, %v1410_v36  ;;  %vm1662_vm4 = vcmp.gt.f32.partialorder %v1408_v57, 0.0 }
 0x1fd   :  { %vm1665_vm5 = vcmp.gt.f32.partialorder %v1419_v60, 0.0  ;;  %v1729_v38 = vmul.f32 0.01, %v1419_v60  ;;  %v1792_v17 = vsel %vm1664_vm3, %v1416_v55, %v1728_v35 }
 0x1fe   :  { %vm1663_vm6 = vcmp.gt.f32.partialorder %v1411_v62, 0.0  ;;  %v1727_v0 = vmul.f32 0.01, %v1411_v62  ;;  %v1790_v26 = vsel %vm1662_vm4, %v1408_v57, %v1726_v61 }
 0x1ff   :  { %v1793_v41 = vsel %vm1665_vm5, %v1419_v60, %v1729_v38 }
 0x200   :  { %v1855_v25 = vpack.c.bf16 %v1793_v41, %v1792_v17  ;;  %v3477_v3 = vpop.f32.mrb[36].mxu1  ;;  %v1791_v18 = vsel %vm1663_vm6, %v1411_v62, %v1727_v0 }
 0x201   :  { %v1432_v4 = vadd.f32 %v3477_v3, %v4511_v34  ;;  %v1423_v27 = vpop.f32.mrb[37].mxu1  ;;  %v1854_v5 = vpack.c.bf16 %v1791_v18, %v1790_v26 }
 0x202   :  { %v1424_v19 = vadd.f32 %v4511_v34, %v1423_v27  ;;  %v3478_v6 = vpop.f32.mrb[38].mxu1 }
 0x203   :  { %v1732_v29 = vmul.f32 0.01, %v1432_v4  ;;  %v1435_v51 = vadd.f32 %v3478_v6, %v4511_v34  ;;  %v1426_v8 = vpop.f32.mrb[39].mxu1  ;;  %3551 = vmatprep.mubr.bf16.mxu1 %v1854_v5  ;;  %vm1668_vm7 = vcmp.gt.f32.partialorder %v1432_v4, 0.0 }
 0x204   :  { %v1730_v54 = vmul.f32 0.01, %v1424_v19  ;;  %v1427_v9 = vadd.f32 %v4511_v34, %v1426_v8  ;;  %3552 = vmatmul.mubr.bf16.vlgmr.msra.gmra.mrb[96].mxu1 %v1855_v25  ;;  %vm1666_vm8 = vcmp.gt.f32.partialorder %v1424_v19, 0.0 }
 0x205   :  { %vm1669_vm9 = vcmp.gt.f32.partialorder %v1435_v51, 0.0  ;;  %v1733_v20 = vmul.f32 0.01, %v1435_v51  ;;  %v1796_v12 = vsel %vm1668_vm7, %v1432_v4, %v1732_v29 }
 0x206   :  { %vm1667_vm10 = vcmp.gt.f32.partialorder %v1427_v9, 0.0  ;;  %v1731_v59 = vmul.f32 0.01, %v1427_v9  ;;  %v1794_v63 = vsel %vm1666_vm8, %v1424_v19, %v1730_v54 }
 0x207   :  { %v1797_v37 = vsel %vm1669_vm9, %v1435_v51, %v1733_v20 }
 0x208   :  { %v3481_v40 = vpop.f32.mrb[40].mxu1  ;;  %v1795_v42 = vsel %vm1667_vm10, %v1427_v9, %v1731_v59  ;;  %v1857_v43 = vpack.c.bf16 %v1797_v37, %v1796_v12 }
 0x209   :  { %v1448_v44 = vadd.f32 %v3481_v40, %v4511_v34  ;;  %v1439_v28 = vpop.f32.mrb[41].mxu1  ;;  %v1856_v30 = vpack.c.bf16 %v1795_v42, %v1794_v63 }
 0x20a   :  { %v1440_v13 = vadd.f32 %v4511_v34, %v1439_v28  ;;  %v3482_v31 = vpop.f32.mrb[42].mxu1 }
 0x20b   :  { %v1736_v14 = vmul.f32 0.01, %v1448_v44  ;;  %v1451_v32 = vadd.f32 %v3482_v31, %v4511_v34  ;;  %v1442_v21 = vpop.f32.mrb[43].mxu1  ;;  %3555 = vmatprep.mubr.bf16.mxu1 %v1856_v30  ;;  %vm1672_vm11 = vcmp.gt.f32.partialorder %v1448_v44, 0.0 }
 0x20c   :  { %v1734_v10 = vmul.f32 0.01, %v1440_v13  ;;  %v1443_v49 = vadd.f32 %v4511_v34, %v1442_v21  ;;  %3556 = vmatmul.mubr.bf16.gmra.mrb[100].mxu1 %v1857_v43  ;;  %vm1670_vm12 = vcmp.gt.f32.partialorder %v1440_v13, 0.0 }
 0x20d   :  { %vm1673_vm13 = vcmp.gt.f32.partialorder %v1451_v32, 0.0  ;;  %v1737_v39 = vmul.f32 0.01, %v1451_v32  ;;  %v1800_v45 = vsel %vm1672_vm11, %v1448_v44, %v1736_v14 }
 0x20e   :  { %vm1671_vm14 = vcmp.gt.f32.partialorder %v1443_v49, 0.0  ;;  %v1735_v22 = vmul.f32 0.01, %v1443_v49  ;;  %v1798_v23 = vsel %vm1670_vm12, %v1440_v13, %v1734_v10 }
 0x20f   :  { %v1801_v33 = vsel %vm1673_vm13, %v1451_v32, %v1737_v39 }
 0x210   :  { %v3485_v47 = vpop.f32.mrb[44].mxu1  ;;  %v1799_v50 = vsel %vm1671_vm14, %v1443_v49, %v1735_v22  ;;  %v1859_v52 = vpack.c.bf16 %v1801_v33, %v1800_v45 }
 0x211   :  { %v1464_v48 = vadd.f32 %v3485_v47, %v4511_v34  ;;  %v1455_v53 = vpop.f32.mrb[45].mxu1  ;;  %v1858_v16 = vpack.c.bf16 %v1799_v50, %v1798_v23 }
 0x212   :  { %v1456_v24 = vadd.f32 %v4511_v34, %v1455_v53  ;;  %v3486_v55 = vpop.f32.mrb[46].mxu1 }
 0x213   :  { %v1740_v56 = vmul.f32 0.01, %v1464_v48  ;;  %v1467_v57 = vadd.f32 %v3486_v55, %v4511_v34  ;;  %v1458_v58 = vpop.f32.mrb[47].mxu1  ;;  %3559 = vmatprep.mubr.bf16.mxu1 %v1858_v16  ;;  %vm1676_vm15 = vcmp.gt.f32.partialorder %v1464_v48, 0.0 }
 0x214   :  { %v1738_v35 = vmul.f32 0.01, %v1456_v24  ;;  %v1459_v60 = vadd.f32 %v4511_v34, %v1458_v58  ;;  %3560 = vmatmul.mubr.bf16.gmra.mrb[104].mxu1 %v1859_v52  ;;  %vm1674_vm0 = vcmp.gt.f32.partialorder %v1456_v24, 0.0 }
 0x215   :  { %vm1677_vm1 = vcmp.gt.f32.partialorder %v1467_v57, 0.0  ;;  %v1741_v36 = vmul.f32 0.01, %v1467_v57  ;;  %v1804_v62 = vsel %vm1676_vm15, %v1464_v48, %v1740_v56 }
 0x216   :  { %vm1675_vm2 = vcmp.gt.f32.partialorder %v1459_v60, 0.0  ;;  %v1739_v61 = vmul.f32 0.01, %v1459_v60  ;;  %v1802_v1 = vsel %vm1674_vm0, %v1456_v24, %v1738_v35 }
 0x217   :  { %v1805_v38 = vsel %vm1677_vm1, %v1467_v57, %v1741_v36 }
 0x218   :  { %v3489_v0 = vpop.f32.mrb[48].mxu1  ;;  %v1803_v2 = vsel %vm1675_vm2, %v1459_v60, %v1739_v61  ;;  %v1861_v17 = vpack.c.bf16 %v1805_v38, %v1804_v62 }
 0x219   :  { %v1480_v41 = vadd.f32 %v3489_v0, %v4511_v34  ;;  %v1471_v25 = vpop.f32.mrb[49].mxu1  ;;  %v1860_v3 = vpack.c.bf16 %v1803_v2, %v1802_v1 }
 0x21a   :  { %v1472_v26 = vadd.f32 %v4511_v34, %v1471_v25  ;;  %v3490_v18 = vpop.f32.mrb[50].mxu1 }
 0x21b   :  { %v1744_v4 = vmul.f32 0.01, %v1480_v41  ;;  %v1483_v27 = vadd.f32 %v3490_v18, %v4511_v34  ;;  %v1474_v5 = vpop.f32.mrb[51].mxu1  ;;  %3563 = vmatprep.mubr.bf16.mxu1 %v1860_v3  ;;  %vm1680_vm3 = vcmp.gt.f32.partialorder %v1480_v41, 0.0 }
 0x21c   :  { %v1742_v19 = vmul.f32 0.01, %v1472_v26  ;;  %v1475_v6 = vadd.f32 %v4511_v34, %v1474_v5  ;;  %3564 = vmatmul.mubr.bf16.gmra.mrb[108].mxu1 %v1861_v17  ;;  %vm1678_vm4 = vcmp.gt.f32.partialorder %v1472_v26, 0.0 }
 0x21d   :  { %vm1681_vm5 = vcmp.gt.f32.partialorder %v1483_v27, 0.0  ;;  %v1745_v7 = vmul.f32 0.01, %v1483_v27  ;;  %v1808_v51 = vsel %vm1680_vm3, %v1480_v41, %v1744_v4 }
 0x21e   :  { %vm1679_vm6 = vcmp.gt.f32.partialorder %v1475_v6, 0.0  ;;  %v1743_v29 = vmul.f32 0.01, %v1475_v6  ;;  %v1806_v9 = vsel %vm1678_vm4, %v1472_v26, %v1742_v19 }
 0x21f   :  { %v1809_v8 = vsel %vm1681_vm5, %v1483_v27, %v1745_v7 }
 0x220   :  { %v3493_v54 = vpop.f32.mrb[52].mxu1  ;;  %v1807_v20 = vsel %vm1679_vm6, %v1475_v6, %v1743_v29  ;;  %v1863_v59 = vpack.c.bf16 %v1809_v8, %v1808_v51 }
 0x221   :  { %v1496_v11 = vadd.f32 %v3493_v54, %v4511_v34  ;;  %v1487_v12 = vpop.f32.mrb[53].mxu1  ;;  %v1862_v37 = vpack.c.bf16 %v1807_v20, %v1806_v9 }
 0x222   :  { %v1488_v40 = vadd.f32 %v4511_v34, %v1487_v12  ;;  %v3494_v63 = vpop.f32.mrb[54].mxu1 }
 0x223   :  { %v1748_v42 = vmul.f32 0.01, %v1496_v11  ;;  %v1499_v43 = vadd.f32 %v3494_v63, %v4511_v34  ;;  %v1490_v44 = vpop.f32.mrb[55].mxu1  ;;  %3567 = vmatprep.mubr.bf16.mxu1 %v1862_v37  ;;  %vm1684_vm7 = vcmp.gt.f32.partialorder %v1496_v11, 0.0 }
 0x224   :  { %v1746_v28 = vmul.f32 0.01, %v1488_v40  ;;  %v1491_v30 = vadd.f32 %v4511_v34, %v1490_v44  ;;  %3568 = vmatmul.mubr.bf16.gmra.mrb[112].mxu1 %v1863_v59  ;;  %vm1682_vm8 = vcmp.gt.f32.partialorder %v1488_v40, 0.0 }
 0x225   :  { %vm1685_vm9 = vcmp.gt.f32.partialorder %v1499_v43, 0.0  ;;  %v1749_v13 = vmul.f32 0.01, %v1499_v43  ;;  %v1812_v46 = vsel %vm1684_vm7, %v1496_v11, %v1748_v42 }
 0x226   :  { %vm1683_vm10 = vcmp.gt.f32.partialorder %v1491_v30, 0.0  ;;  %v1747_v31 = vmul.f32 0.01, %v1491_v30  ;;  %v1810_v21 = vsel %vm1682_vm8, %v1488_v40, %v1746_v28 }
 0x227   :  { %v1813_v14 = vsel %vm1685_vm9, %v1499_v43, %v1749_v13 }
 0x228   :  { %v3497_v32 = vpop.f32.mrb[56].mxu1  ;;  %v1811_v10 = vsel %vm1683_vm10, %v1491_v30, %v1747_v31  ;;  %v1865_v49 = vpack.c.bf16 %v1813_v14, %v1812_v46 }
 0x229   :  { %v1512_v39 = vadd.f32 %v3497_v32, %v4511_v34  ;;  %v1503_v22 = vpop.f32.mrb[57].mxu1  ;;  %v1864_v15 = vpack.c.bf16 %v1811_v10, %v1810_v21 }
 0x22a   :  { %v1504_v45 = vadd.f32 %v4511_v34, %v1503_v22  ;;  %v3498_v33 = vpop.f32.mrb[58].mxu1 }
 0x22b   :  { %v1752_v47 = vmul.f32 0.01, %v1512_v39  ;;  %v1515_v23 = vadd.f32 %v3498_v33, %v4511_v34  ;;  %v1506_v50 = vpop.f32.mrb[59].mxu1  ;;  %3571 = vmatprep.mubr.bf16.mxu1 %v1864_v15  ;;  %vm1688_vm11 = vcmp.gt.f32.partialorder %v1512_v39, 0.0 }
 0x22c   :  { %v1750_v52 = vmul.f32 0.01, %v1504_v45  ;;  %v1507_v48 = vadd.f32 %v4511_v34, %v1506_v50  ;;  %3572 = vmatmul.mubr.bf16.gmra.mrb[116].mxu1 %v1865_v49  ;;  %vm1686_vm12 = vcmp.gt.f32.partialorder %v1504_v45, 0.0 }
 0x22d   :  { %vm1689_vm13 = vcmp.gt.f32.partialorder %v1515_v23, 0.0  ;;  %v1753_v53 = vmul.f32 0.01, %v1515_v23  ;;  %v1816_v24 = vsel %vm1688_vm11, %v1512_v39, %v1752_v47 }
 0x22e   :  { %vm1687_vm14 = vcmp.gt.f32.partialorder %v1507_v48, 0.0  ;;  %v1751_v16 = vmul.f32 0.01, %v1507_v48  ;;  %v1814_v57 = vsel %vm1686_vm12, %v1504_v45, %v1750_v52 }
 0x22f   :  { %v1817_v55 = vsel %vm1689_vm13, %v1515_v23, %v1753_v53 }
 0x230   :  { %v3501_v56 = vpop.f32.mrb[60].mxu1  ;;  %v1815_v58 = vsel %vm1687_vm14, %v1507_v48, %v1751_v16  ;;  %v1867_v35 = vpack.c.bf16 %v1817_v55, %v1816_v24 }
 0x231   :  { %v1528_v60 = vadd.f32 %v3501_v56, %v4511_v34  ;;  %v1519_v36 = vpop.f32.mrb[61].mxu1  ;;  %v1866_v61 = vpack.c.bf16 %v1815_v58, %v1814_v57 }
 0x232   :  { %v1520_v62 = vadd.f32 %v4511_v34, %v1519_v36  ;;  %v3502_v38 = vpop.f32.mrb[62].mxu1 }
 0x233   :  { %v1756_v0 = vmul.f32 0.01, %v1528_v60  ;;  %v1531_v1 = vadd.f32 %v3502_v38, %v4511_v34  ;;  %v1522_v2 = vpop.f32.mrb[63].mxu1  ;;  %3575 = vmatprep.mubr.bf16.mxu1 %v1866_v61  ;;  %vm1692_vm15 = vcmp.gt.f32.partialorder %v1528_v60, 0.0 }
 0x234   :  { %v1754_v17 = vmul.f32 0.01, %v1520_v62  ;;  %v1523_v41 = vadd.f32 %v4511_v34, %v1522_v2  ;;  %3576 = vmatmul.mubr.bf16.gmra.mrb[120].mxu1 %v1867_v35  ;;  %vm1690_vm0 = vcmp.gt.f32.partialorder %v1520_v62, 0.0 }
 0x235   :  { %vm1693_vm1 = vcmp.gt.f32.partialorder %v1531_v1, 0.0  ;;  %v1757_v25 = vmul.f32 0.01, %v1531_v1  ;;  %v1820_v26 = vsel %vm1692_vm15, %v1528_v60, %v1756_v0 }
 0x236   :  { %vm1691_vm2 = vcmp.gt.f32.partialorder %v1523_v41, 0.0  ;;  %v1755_v3 = vmul.f32 0.01, %v1523_v41  ;;  %v1818_v4 = vsel %vm1690_vm0, %v1520_v62, %v1754_v17 }
 0x237   :  { %v1821_v18 = vsel %vm1693_vm1, %v1531_v1, %v1757_v25 }
 0x238   :  { %v1819_v27 = vsel %vm1691_vm2, %v1523_v41, %v1755_v3  ;;  %v1869_v5 = vpack.c.bf16 %v1821_v18, %v1820_v26 }
 0x239   :  { %v1868_v19 = vpack.c.bf16 %v1819_v27, %v1818_v4 }
 0x23a   :  { %v3505_v6 = vpop.f32.mrb[64].mxu1 }
 0x23b   :  { %v1544_v7 = vadd.f32 %v3505_v6, %v4511_v34  ;;  %v1535_v29 = vpop.f32.mrb[65].mxu1  ;;  %3579 = vmatprep.mubr.bf16.mxu1 %v1868_v19 }
 0x23c   :  { %v1536_v51 = vadd.f32 %v4511_v34, %v1535_v29  ;;  %v3506_v8 = vpop.f32.mrb[66].mxu1  ;;  %3580 = vmatmul.mubr.bf16.gmra.mrb[124].mxu1 %v1869_v5 }
 0x23d   :  { %v1760_v54 = vmul.f32 0.01, %v1544_v7  ;;  %v1547_v9 = vadd.f32 %v3506_v8, %v4511_v34  ;;  %v1538_v20 = vpop.f32.mrb[67].mxu1  ;;  %vm1696_vm3 = vcmp.gt.f32.partialorder %v1544_v7, 0.0 }
 0x23e   :  { %v1758_v59 = vmul.f32 0.01, %v1536_v51  ;;  %v1539_v11 = vadd.f32 %v4511_v34, %v1538_v20  ;;  %vm1694_vm4 = vcmp.gt.f32.partialorder %v1536_v51, 0.0 }
 0x23f   :  { %vm1697_vm5 = vcmp.gt.f32.partialorder %v1547_v9, 0.0  ;;  %v1761_v12 = vmul.f32 0.01, %v1547_v9  ;;  %v1824_v40 = vsel %vm1696_vm3, %v1544_v7, %v1760_v54 }
 0x240   :  { %vm1695_vm6 = vcmp.gt.f32.partialorder %v1539_v11, 0.0  ;;  %v1759_v37 = vmul.f32 0.01, %v1539_v11  ;;  %v1822_v43 = vsel %vm1694_vm4, %v1536_v51, %v1758_v59 }
 0x241   :  { %v1825_v63 = vsel %vm1697_vm5, %v1547_v9, %v1761_v12 }
 0x242   :  { %v3509_v42 = vpop.f32.mrb[68].mxu1  ;;  %v1823_v44 = vsel %vm1695_vm6, %v1539_v11, %v1759_v37  ;;  %v1871_v28 = vpack.c.bf16 %v1825_v63, %v1824_v40 }
 0x243   :  { %v1560_v30 = vadd.f32 %v3509_v42, %v4511_v34  ;;  %v1551_v13 = vpop.f32.mrb[69].mxu1  ;;  %v1870_v31 = vpack.c.bf16 %v1823_v44, %v1822_v43 }
 0x244   :  { %v1552_v46 = vadd.f32 %v4511_v34, %v1551_v13  ;;  %v3510_v14 = vpop.f32.mrb[70].mxu1 }
 0x245   :  { %v1764_v32 = vmul.f32 0.01, %v1560_v30  ;;  %v1563_v21 = vadd.f32 %v3510_v14, %v4511_v34  ;;  %v1554_v10 = vpop.f32.mrb[71].mxu1  ;;  %3583 = vmatprep.mubr.bf16.mxu1 %v1870_v31  ;;  %vm1700_vm7 = vcmp.gt.f32.partialorder %v1560_v30, 0.0 }
 0x246   :  { %v1762_v49 = vmul.f32 0.01, %v1552_v46  ;;  %v1555_v39 = vadd.f32 %v4511_v34, %v1554_v10  ;;  %3584 = vmatmul.mubr.bf16.gmra.mrb[128].mxu1 %v1871_v28  ;;  %vm1698_vm8 = vcmp.gt.f32.partialorder %v1552_v46, 0.0 }
 0x247   :  { %vm1701_vm9 = vcmp.gt.f32.partialorder %v1563_v21, 0.0  ;;  %v1765_v22 = vmul.f32 0.01, %v1563_v21  ;;  %v1828_v45 = vsel %vm1700_vm7, %v1560_v30, %v1764_v32 }
 0x248   :  { %vm1699_vm10 = vcmp.gt.f32.partialorder %v1555_v39, 0.0  ;;  %v1763_v15 = vmul.f32 0.01, %v1555_v39  ;;  %v1826_v23 = vsel %vm1698_vm8, %v1552_v46, %v1762_v49 }
 0x249   :  { %v1829_v33 = vsel %vm1701_vm9, %v1563_v21, %v1765_v22 }
 0x24a   :  { %v3513_v47 = vpop.f32.mrb[72].mxu1  ;;  %v1827_v50 = vsel %vm1699_vm10, %v1555_v39, %v1763_v15  ;;  %v1873_v52 = vpack.c.bf16 %v1829_v33, %v1828_v45 }
 0x24b   :  { %v1576_v48 = vadd.f32 %v3513_v47, %v4511_v34  ;;  %v1567_v53 = vpop.f32.mrb[73].mxu1  ;;  %v1872_v16 = vpack.c.bf16 %v1827_v50, %v1826_v23 }
 0x24c   :  { %v1568_v24 = vadd.f32 %v4511_v34, %v1567_v53  ;;  %v3514_v55 = vpop.f32.mrb[74].mxu1 }
 0x24d   :  { %v1768_v56 = vmul.f32 0.01, %v1576_v48  ;;  %v1579_v57 = vadd.f32 %v3514_v55, %v4511_v34  ;;  %v1570_v58 = vpop.f32.mrb[75].mxu1  ;;  %3587 = vmatprep.mubr.bf16.mxu1 %v1872_v16  ;;  %vm1704_vm11 = vcmp.gt.f32.partialorder %v1576_v48, 0.0 }
 0x24e   :  { %v1766_v35 = vmul.f32 0.01, %v1568_v24  ;;  %v1571_v60 = vadd.f32 %v4511_v34, %v1570_v58  ;;  %3588 = vmatmul.mubr.bf16.gmra.mrb[132].mxu1 %v1873_v52  ;;  %vm1702_vm12 = vcmp.gt.f32.partialorder %v1568_v24, 0.0 }
 0x24f   :  { %vm1705_vm13 = vcmp.gt.f32.partialorder %v1579_v57, 0.0  ;;  %v1769_v36 = vmul.f32 0.01, %v1579_v57  ;;  %v1832_v62 = vsel %vm1704_vm11, %v1576_v48, %v1768_v56 }
 0x250   :  { %vm1703_vm14 = vcmp.gt.f32.partialorder %v1571_v60, 0.0  ;;  %v1767_v61 = vmul.f32 0.01, %v1571_v60  ;;  %v1830_v1 = vsel %vm1702_vm12, %v1568_v24, %v1766_v35 }
 0x251   :  { %v1833_v38 = vsel %vm1705_vm13, %v1579_v57, %v1769_v36 }
 0x252   :  { %v3517_v0 = vpop.f32.mrb[76].mxu1  ;;  %v1831_v2 = vsel %vm1703_vm14, %v1571_v60, %v1767_v61  ;;  %v1875_v17 = vpack.c.bf16 %v1833_v38, %v1832_v62 }
 0x253   :  { %v1592_v41 = vadd.f32 %v3517_v0, %v4511_v34  ;;  %v1583_v25 = vpop.f32.mrb[77].mxu1  ;;  %v1874_v3 = vpack.c.bf16 %v1831_v2, %v1830_v1 }
 0x254   :  { %v1584_v26 = vadd.f32 %v4511_v34, %v1583_v25  ;;  %v3518_v18 = vpop.f32.mrb[78].mxu1 }
 0x255   :  { %v1772_v4 = vmul.f32 0.01, %v1592_v41  ;;  %v1595_v27 = vadd.f32 %v3518_v18, %v4511_v34  ;;  %v1586_v5 = vpop.f32.mrb[79].mxu1  ;;  %3591 = vmatprep.mubr.bf16.mxu1 %v1874_v3  ;;  %vm1708_vm15 = vcmp.gt.f32.partialorder %v1592_v41, 0.0 }
 0x256   :  { %v1770_v19 = vmul.f32 0.01, %v1584_v26  ;;  %v1587_v6 = vadd.f32 %v4511_v34, %v1586_v5  ;;  %3592 = vmatmul.mubr.bf16.gmra.mrb[136].mxu1 %v1875_v17  ;;  %vm1706_vm0 = vcmp.gt.f32.partialorder %v1584_v26, 0.0 }
 0x257   :  { %vm1709_vm1 = vcmp.gt.f32.partialorder %v1595_v27, 0.0  ;;  %v1773_v7 = vmul.f32 0.01, %v1595_v27  ;;  %v1836_v51 = vsel %vm1708_vm15, %v1592_v41, %v1772_v4 }
 0x258   :  { %vm1707_vm2 = vcmp.gt.f32.partialorder %v1587_v6, 0.0  ;;  %v1771_v29 = vmul.f32 0.01, %v1587_v6  ;;  %v1834_v9 = vsel %vm1706_vm0, %v1584_v26, %v1770_v19 }
 0x259   :  { %v1837_v8 = vsel %vm1709_vm1, %v1595_v27, %v1773_v7 }
 0x25a   :  { %v3521_v54 = vpop.f32.mrb[80].mxu1  ;;  %v1835_v20 = vsel %vm1707_vm2, %v1587_v6, %v1771_v29  ;;  %v1877_v59 = vpack.c.bf16 %v1837_v8, %v1836_v51 }
 0x25b   :  { %v1608_v11 = vadd.f32 %v3521_v54, %v4511_v34  ;;  %v1599_v12 = vpop.f32.mrb[81].mxu1  ;;  %v1876_v37 = vpack.c.bf16 %v1835_v20, %v1834_v9 }
 0x25c   :  { %v1600_v40 = vadd.f32 %v4511_v34, %v1599_v12  ;;  %v3522_v63 = vpop.f32.mrb[82].mxu1 }
 0x25d   :  { %v1776_v42 = vmul.f32 0.01, %v1608_v11  ;;  %v1611_v43 = vadd.f32 %v3522_v63, %v4511_v34  ;;  %v1602_v44 = vpop.f32.mrb[83].mxu1  ;;  %3595 = vmatprep.mubr.bf16.mxu1 %v1876_v37  ;;  %vm1712_vm3 = vcmp.gt.f32.partialorder %v1608_v11, 0.0 }
 0x25e   :  { %v1774_v28 = vmul.f32 0.01, %v1600_v40  ;;  %v1603_v30 = vadd.f32 %v4511_v34, %v1602_v44  ;;  %3596 = vmatmul.mubr.bf16.gmra.mrb[140].mxu1 %v1877_v59  ;;  %vm1710_vm4 = vcmp.gt.f32.partialorder %v1600_v40, 0.0 }
 0x25f   :  { %vm1713_vm5 = vcmp.gt.f32.partialorder %v1611_v43, 0.0  ;;  %v1777_v13 = vmul.f32 0.01, %v1611_v43  ;;  %v1840_v46 = vsel %vm1712_vm3, %v1608_v11, %v1776_v42 }
 0x260   :  { %vm1711_vm6 = vcmp.gt.f32.partialorder %v1603_v30, 0.0  ;;  %v1775_v31 = vmul.f32 0.01, %v1603_v30  ;;  %v1838_v21 = vsel %vm1710_vm4, %v1600_v40, %v1774_v28 }
 0x261   :  { %v1841_v14 = vsel %vm1713_vm5, %v1611_v43, %v1777_v13 }
 0x262   :  { %v3525_v32 = vpop.f32.mrb[84].mxu1  ;;  %v1839_v10 = vsel %vm1711_vm6, %v1603_v30, %v1775_v31  ;;  %v1879_v49 = vpack.c.bf16 %v1841_v14, %v1840_v46  ;;  %v4601_v30 = vld [vmem:[%s4997_s5 + $0x2] ss:$0 sm:$0xff] }
 0x263   :  { %v1624_v39 = vadd.f32 %v3525_v32, %v4511_v34  ;;  %v1615_v22 = vpop.f32.mrb[85].mxu1  ;;  %v1878_v15 = vpack.c.bf16 %v1839_v10, %v1838_v21 }
 0x264   :  { %v1616_v45 = vadd.f32 %v4511_v34, %v1615_v22  ;;  %v3526_v33 = vpop.f32.mrb[86].mxu1 }
 0x265   :  { %v1780_v47 = vmul.f32 0.01, %v1624_v39  ;;  %v1627_v23 = vadd.f32 %v3526_v33, %v4511_v34  ;;  %v1618_v50 = vpop.f32.mrb[87].mxu1  ;;  %3599 = vmatprep.mubr.bf16.mxu1 %v1878_v15  ;;  %vm1716_vm7 = vcmp.gt.f32.partialorder %v1624_v39, 0.0 }
 0x266   :  { %v1778_v52 = vmul.f32 0.01, %v1616_v45  ;;  %v1619_v48 = vadd.f32 %v4511_v34, %v1618_v50  ;;  %3600 = vmatmul.mubr.bf16.gmra.mrb[144].mxu1 %v1879_v49  ;;  %vm1714_vm8 = vcmp.gt.f32.partialorder %v1616_v45, 0.0 }
 0x267   :  { %vm1717_vm9 = vcmp.gt.f32.partialorder %v1627_v23, 0.0  ;;  %v1781_v53 = vmul.f32 0.01, %v1627_v23  ;;  %v1844_v24 = vsel %vm1716_vm7, %v1624_v39, %v1780_v47 }
 0x268   :  { %vm1715_vm10 = vcmp.gt.f32.partialorder %v1619_v48, 0.0  ;;  %v1779_v16 = vmul.f32 0.01, %v1619_v48  ;;  %v1842_v57 = vsel %vm1714_vm8, %v1616_v45, %v1778_v52 }
 0x269   :  { %v1845_v55 = vsel %vm1717_vm9, %v1627_v23, %v1781_v53 }
 0x26a   :  { %v3529_v56 = vpop.f32.mrb[88].mxu1  ;;  %v1843_v58 = vsel %vm1715_vm10, %v1619_v48, %v1779_v16  ;;  %v1881_v35 = vpack.c.bf16 %v1845_v55, %v1844_v24 }
 0x26b   :  { %v1640_v60 = vadd.f32 %v3529_v56, %v4511_v34  ;;  %v1631_v36 = vpop.f32.mrb[89].mxu1  ;;  %v1880_v61 = vpack.c.bf16 %v1843_v58, %v1842_v57 }
 0x26c   :  { %v1632_v62 = vadd.f32 %v4511_v34, %v1631_v36  ;;  %v3530_v38 = vpop.f32.mrb[90].mxu1 }
 0x26d   :  { %v1784_v0 = vmul.f32 0.01, %v1640_v60  ;;  %v1643_v1 = vadd.f32 %v3530_v38, %v4511_v34  ;;  %v1634_v2 = vpop.f32.mrb[91].mxu1  ;;  %3603 = vmatprep.mubr.bf16.mxu1 %v1880_v61  ;;  %vm1720_vm11 = vcmp.gt.f32.partialorder %v1640_v60, 0.0 }
 0x26e   :  { %v1782_v17 = vmul.f32 0.01, %v1632_v62  ;;  %v1635_v41 = vadd.f32 %v4511_v34, %v1634_v2  ;;  %3604 = vmatmul.mubr.bf16.gmra.mrb[148].mxu1 %v1881_v35  ;;  %vm1718_vm12 = vcmp.gt.f32.partialorder %v1632_v62, 0.0 }
 0x26f   :  { %vm1721_vm13 = vcmp.gt.f32.partialorder %v1643_v1, 0.0  ;;  %v1785_v25 = vmul.f32 0.01, %v1643_v1  ;;  %v1848_v26 = vsel %vm1720_vm11, %v1640_v60, %v1784_v0 }
 0x270   :  { %vm1719_vm14 = vcmp.gt.f32.partialorder %v1635_v41, 0.0  ;;  %v1783_v3 = vmul.f32 0.01, %v1635_v41  ;;  %v1846_v27 = vsel %vm1718_vm12, %v1632_v62, %v1782_v17 }
 0x271   :  { %v1849_v18 = vsel %vm1721_vm13, %v1643_v1, %v1785_v25 }
 0x272   :  { %v3533_v4 = vpop.f32.mrb[92].mxu1  ;;  %v1847_v5 = vsel %vm1719_vm14, %v1635_v41, %v1783_v3  ;;  %v1883_v19 = vpack.c.bf16 %v1849_v18, %v1848_v26 }
 0x273   :  { %v1656_v6 = vadd.f32 %v3533_v4, %v4511_v34  ;;  %v1647_v7 = vpop.f32.mrb[93].mxu1  ;;  %v1882_v29 = vpack.c.bf16 %v1847_v5, %v1846_v27 }
 0x274   :  { %v1648_v51 = vadd.f32 %v4511_v34, %v1647_v7  ;;  %v3534_v8 = vpop.f32.mrb[94].mxu1 }
 0x275   :  { %v1788_v54 = vmul.f32 0.01, %v1656_v6  ;;  %v1659_v9 = vadd.f32 %v3534_v8, %v4511_v34  ;;  %v1650_v20 = vpop.f32.mrb[95].mxu1  ;;  %3607 = vmatprep.mubr.bf16.mxu1 %v1882_v29  ;;  %vm1724_vm15 = vcmp.gt.f32.partialorder %v1656_v6, 0.0 }
 0x276   :  { %v1786_v59 = vmul.f32 0.01, %v1648_v51  ;;  %v1651_v11 = vadd.f32 %v4511_v34, %v1650_v20  ;;  %3608 = vmatmul.mubr.bf16.gmra.mrb[152].mxu1 %v1883_v19  ;;  %vm1722_vm0 = vcmp.gt.f32.partialorder %v1648_v51, 0.0 }
 0x277   :  { %vm1725_vm1 = vcmp.gt.f32.partialorder %v1659_v9, 0.0  ;;  %v1789_v12 = vmul.f32 0.01, %v1659_v9  ;;  %v1852_v40 = vsel %vm1724_vm15, %v1656_v6, %v1788_v54 }
 0x278   :  { %vm1723_vm2 = vcmp.gt.f32.partialorder %v1651_v11, 0.0  ;;  %v1787_v37 = vmul.f32 0.01, %v1651_v11  ;;  %v1850_v42 = vsel %vm1722_vm0, %v1648_v51, %v1786_v59 }
 0x279   :  { %v1853_v63 = vsel %vm1725_vm1, %v1659_v9, %v1789_v12 }
 0x27a   :  { %v1851_v43 = vsel %vm1723_vm2, %v1651_v11, %v1787_v37  ;;  %v1885_v44 = vpack.c.bf16 %v1853_v63, %v1852_v40 }
 0x27b   :  { %v1884_v28 = vpack.c.bf16 %v1851_v43, %v1850_v42 }
 0x27d   :  { %3611 = vmatprep.mubr.bf16.mxu1 %v1884_v28 }
 0x27e   :  { %3612 = vmatmul.mubr.bf16.gmra.mrb[156].mxu1 %v1885_v44 }
 0x2d7   :  { %v3553_v34 = vpop.f32.mrb[96].mxu1 }
 0x2d8   :  { %v1999_v13 = vadd.f32 %v3553_v34, %v4601_v30  ;;  %v1990_v31 = vpop.f32.mrb[97].mxu1 }
 0x2d9   :  { %v1991_v46 = vadd.f32 %v4601_v30, %v1990_v31  ;;  %v3554_v14 = vpop.f32.mrb[98].mxu1 }
 0x2da   :  { %v2311_v32 = vmul.f32 0.01, %v1999_v13  ;;  %v2002_v21 = vadd.f32 %v3554_v14, %v4601_v30  ;;  %v1993_v10 = vpop.f32.mrb[99].mxu1  ;;  %vm2247_vm3 = vcmp.gt.f32.partialorder %v1999_v13, 0.0 }
 0x2db   :  { %v2309_v49 = vmul.f32 0.01, %v1991_v46  ;;  %v1994_v39 = vadd.f32 %v4601_v30, %v1993_v10  ;;  %vm2245_vm4 = vcmp.gt.f32.partialorder %v1991_v46, 0.0 }
 0x2dc   :  { %vm2248_vm5 = vcmp.gt.f32.partialorder %v2002_v21, 0.0  ;;  %v2312_v22 = vmul.f32 0.01, %v2002_v21  ;;  %v2375_v45 = vsel %vm2247_vm3, %v1999_v13, %v2311_v32 }
 0x2dd   :  { %vm2246_vm6 = vcmp.gt.f32.partialorder %v1994_v39, 0.0  ;;  %v2310_v15 = vmul.f32 0.01, %v1994_v39  ;;  %v2373_v50 = vsel %vm2245_vm4, %v1991_v46, %v2309_v49 }
 0x2de   :  { %v2376_v33 = vsel %vm2248_vm5, %v2002_v21, %v2312_v22 }
 0x2df   :  { %v2438_v47 = vpack.c.bf16 %v2376_v33, %v2375_v45  ;;  %v3557_v23 = vpop.f32.mrb[100].mxu1  ;;  %v2374_v52 = vsel %vm2246_vm6, %v1994_v39, %v2310_v15 }
 0x2e0   :  { %v2015_v48 = vadd.f32 %v3557_v23, %v4601_v30  ;;  %v2006_v53 = vpop.f32.mrb[101].mxu1  ;;  %v2437_v16 = vpack.c.bf16 %v2374_v52, %v2373_v50 }
 0x2e1   :  { %v2007_v24 = vadd.f32 %v4601_v30, %v2006_v53  ;;  %v3558_v55 = vpop.f32.mrb[102].mxu1 }
 0x2e2   :  { %v2315_v56 = vmul.f32 0.01, %v2015_v48  ;;  %v2018_v57 = vadd.f32 %v3558_v55, %v4601_v30  ;;  %v2009_v58 = vpop.f32.mrb[103].mxu1  ;;  %3631 = vmatprep.mubr.bf16.mxu0 %v2437_v16  ;;  %vm2251_vm7 = vcmp.gt.f32.partialorder %v2015_v48, 0.0 }
 0x2e3   :  { %v2313_v35 = vmul.f32 0.01, %v2007_v24  ;;  %v2010_v60 = vadd.f32 %v4601_v30, %v2009_v58  ;;  %3632 = vmatmul.mubr.bf16.vlgmr.msra.gmra.mrb[64].mxu0 %v2438_v47  ;;  %vm2249_vm8 = vcmp.gt.f32.partialorder %v2007_v24, 0.0 }
 0x2e4   :  { %vm2252_vm9 = vcmp.gt.f32.partialorder %v2018_v57, 0.0  ;;  %v2316_v36 = vmul.f32 0.01, %v2018_v57  ;;  %v2379_v62 = vsel %vm2251_vm7, %v2015_v48, %v2315_v56 }
 0x2e5   :  { %vm2250_vm10 = vcmp.gt.f32.partialorder %v2010_v60, 0.0  ;;  %v2314_v61 = vmul.f32 0.01, %v2010_v60  ;;  %v2377_v1 = vsel %vm2249_vm8, %v2007_v24, %v2313_v35 }
 0x2e6   :  { %v2380_v38 = vsel %vm2252_vm9, %v2018_v57, %v2316_v36 }
 0x2e7   :  { %v3561_v0 = vpop.f32.mrb[104].mxu1  ;;  %v2378_v2 = vsel %vm2250_vm10, %v2010_v60, %v2314_v61  ;;  %v2440_v17 = vpack.c.bf16 %v2380_v38, %v2379_v62 }
 0x2e8   :  { %v2031_v41 = vadd.f32 %v3561_v0, %v4601_v30  ;;  %v2022_v25 = vpop.f32.mrb[105].mxu1  ;;  %v2439_v3 = vpack.c.bf16 %v2378_v2, %v2377_v1 }
 0x2e9   :  { %v2023_v26 = vadd.f32 %v4601_v30, %v2022_v25  ;;  %v3562_v18 = vpop.f32.mrb[106].mxu1 }
 0x2ea   :  { %v2319_v4 = vmul.f32 0.01, %v2031_v41  ;;  %v2034_v27 = vadd.f32 %v3562_v18, %v4601_v30  ;;  %v2025_v5 = vpop.f32.mrb[107].mxu1  ;;  %3635 = vmatprep.mubr.bf16.mxu0 %v2439_v3  ;;  %vm2255_vm11 = vcmp.gt.f32.partialorder %v2031_v41, 0.0 }
 0x2eb   :  { %v2317_v19 = vmul.f32 0.01, %v2023_v26  ;;  %v2026_v6 = vadd.f32 %v4601_v30, %v2025_v5  ;;  %3636 = vmatmul.mubr.bf16.gmra.mrb[68].mxu0 %v2440_v17  ;;  %vm2253_vm12 = vcmp.gt.f32.partialorder %v2023_v26, 0.0 }
 0x2ec   :  { %vm2256_vm13 = vcmp.gt.f32.partialorder %v2034_v27, 0.0  ;;  %v2320_v7 = vmul.f32 0.01, %v2034_v27  ;;  %v2383_v51 = vsel %vm2255_vm11, %v2031_v41, %v2319_v4 }
 0x2ed   :  { %vm2254_vm14 = vcmp.gt.f32.partialorder %v2026_v6, 0.0  ;;  %v2318_v29 = vmul.f32 0.01, %v2026_v6  ;;  %v2381_v9 = vsel %vm2253_vm12, %v2023_v26, %v2317_v19 }
 0x2ee   :  { %v2384_v8 = vsel %vm2256_vm13, %v2034_v27, %v2320_v7 }
 0x2ef   :  { %v3565_v54 = vpop.f32.mrb[108].mxu1  ;;  %v2382_v20 = vsel %vm2254_vm14, %v2026_v6, %v2318_v29  ;;  %v2442_v59 = vpack.c.bf16 %v2384_v8, %v2383_v51 }
 0x2f0   :  { %v2047_v11 = vadd.f32 %v3565_v54, %v4601_v30  ;;  %v2038_v12 = vpop.f32.mrb[109].mxu1  ;;  %v2441_v37 = vpack.c.bf16 %v2382_v20, %v2381_v9 }
 0x2f1   :  { %v2039_v40 = vadd.f32 %v4601_v30, %v2038_v12  ;;  %v3566_v63 = vpop.f32.mrb[110].mxu1 }
 0x2f2   :  { %v2323_v42 = vmul.f32 0.01, %v2047_v11  ;;  %v2050_v43 = vadd.f32 %v3566_v63, %v4601_v30  ;;  %v2041_v44 = vpop.f32.mrb[111].mxu1  ;;  %3639 = vmatprep.mubr.bf16.mxu0 %v2441_v37  ;;  %vm2259_vm15 = vcmp.gt.f32.partialorder %v2047_v11, 0.0 }
 0x2f3   :  { %v2321_v28 = vmul.f32 0.01, %v2039_v40  ;;  %v2042_v34 = vadd.f32 %v4601_v30, %v2041_v44  ;;  %3640 = vmatmul.mubr.bf16.gmra.mrb[72].mxu0 %v2442_v59  ;;  %vm2257_vm0 = vcmp.gt.f32.partialorder %v2039_v40, 0.0 }
 0x2f4   :  { %vm2260_vm1 = vcmp.gt.f32.partialorder %v2050_v43, 0.0  ;;  %v2324_v13 = vmul.f32 0.01, %v2050_v43  ;;  %v2387_v46 = vsel %vm2259_vm15, %v2047_v11, %v2323_v42 }
 0x2f5   :  { %vm2258_vm2 = vcmp.gt.f32.partialorder %v2042_v34, 0.0  ;;  %v2322_v31 = vmul.f32 0.01, %v2042_v34  ;;  %v2385_v21 = vsel %vm2257_vm0, %v2039_v40, %v2321_v28 }
 0x2f6   :  { %v2388_v14 = vsel %vm2260_vm1, %v2050_v43, %v2324_v13 }
 0x2f7   :  { %v3569_v32 = vpop.f32.mrb[112].mxu1  ;;  %v2386_v10 = vsel %vm2258_vm2, %v2042_v34, %v2322_v31  ;;  %v2444_v49 = vpack.c.bf16 %v2388_v14, %v2387_v46 }
 0x2f8   :  { %v2063_v39 = vadd.f32 %v3569_v32, %v4601_v30  ;;  %v2054_v22 = vpop.f32.mrb[113].mxu1  ;;  %v2443_v15 = vpack.c.bf16 %v2386_v10, %v2385_v21 }
 0x2f9   :  { %v2055_v45 = vadd.f32 %v4601_v30, %v2054_v22  ;;  %v3570_v33 = vpop.f32.mrb[114].mxu1 }
 0x2fa   :  { %v2327_v47 = vmul.f32 0.01, %v2063_v39  ;;  %v2066_v23 = vadd.f32 %v3570_v33, %v4601_v30  ;;  %v2057_v50 = vpop.f32.mrb[115].mxu1  ;;  %3643 = vmatprep.mubr.bf16.mxu0 %v2443_v15  ;;  %vm2263_vm3 = vcmp.gt.f32.partialorder %v2063_v39, 0.0 }
 0x2fb   :  { %v2325_v52 = vmul.f32 0.01, %v2055_v45  ;;  %v2058_v48 = vadd.f32 %v4601_v30, %v2057_v50  ;;  %3644 = vmatmul.mubr.bf16.gmra.mrb[76].mxu0 %v2444_v49  ;;  %vm2261_vm4 = vcmp.gt.f32.partialorder %v2055_v45, 0.0 }
 0x2fc   :  { %vm2264_vm5 = vcmp.gt.f32.partialorder %v2066_v23, 0.0  ;;  %v2328_v53 = vmul.f32 0.01, %v2066_v23  ;;  %v2391_v24 = vsel %vm2263_vm3, %v2063_v39, %v2327_v47 }
 0x2fd   :  { %vm2262_vm6 = vcmp.gt.f32.partialorder %v2058_v48, 0.0  ;;  %v2326_v16 = vmul.f32 0.01, %v2058_v48  ;;  %v2389_v57 = vsel %vm2261_vm4, %v2055_v45, %v2325_v52 }
 0x2fe   :  { %v2392_v55 = vsel %vm2264_vm5, %v2066_v23, %v2328_v53 }
 0x2ff   :  { %v3573_v56 = vpop.f32.mrb[116].mxu1  ;;  %v2390_v58 = vsel %vm2262_vm6, %v2058_v48, %v2326_v16  ;;  %v2446_v35 = vpack.c.bf16 %v2392_v55, %v2391_v24 }
 0x300   :  { %v2079_v60 = vadd.f32 %v3573_v56, %v4601_v30  ;;  %v2070_v36 = vpop.f32.mrb[117].mxu1  ;;  %v2445_v61 = vpack.c.bf16 %v2390_v58, %v2389_v57 }
 0x301   :  { %v2071_v62 = vadd.f32 %v4601_v30, %v2070_v36  ;;  %v3574_v38 = vpop.f32.mrb[118].mxu1 }
 0x302   :  { %v2331_v0 = vmul.f32 0.01, %v2079_v60  ;;  %v2082_v1 = vadd.f32 %v3574_v38, %v4601_v30  ;;  %v2073_v2 = vpop.f32.mrb[119].mxu1  ;;  %3647 = vmatprep.mubr.bf16.mxu0 %v2445_v61  ;;  %vm2267_vm7 = vcmp.gt.f32.partialorder %v2079_v60, 0.0 }
 0x303   :  { %v2329_v17 = vmul.f32 0.01, %v2071_v62  ;;  %v2074_v41 = vadd.f32 %v4601_v30, %v2073_v2  ;;  %3648 = vmatmul.mubr.bf16.gmra.mrb[80].mxu0 %v2446_v35  ;;  %vm2265_vm8 = vcmp.gt.f32.partialorder %v2071_v62, 0.0 }
 0x304   :  { %vm2268_vm9 = vcmp.gt.f32.partialorder %v2082_v1, 0.0  ;;  %v2332_v25 = vmul.f32 0.01, %v2082_v1  ;;  %v2395_v26 = vsel %vm2267_vm7, %v2079_v60, %v2331_v0 }
 0x305   :  { %vm2266_vm10 = vcmp.gt.f32.partialorder %v2074_v41, 0.0  ;;  %v2330_v3 = vmul.f32 0.01, %v2074_v41  ;;  %v2393_v27 = vsel %vm2265_vm8, %v2071_v62, %v2329_v17 }
 0x306   :  { %v2396_v18 = vsel %vm2268_vm9, %v2082_v1, %v2332_v25 }
 0x307   :  { %v3577_v4 = vpop.f32.mrb[120].mxu1  ;;  %v2394_v5 = vsel %vm2266_vm10, %v2074_v41, %v2330_v3  ;;  %v2448_v19 = vpack.c.bf16 %v2396_v18, %v2395_v26 }
 0x308   :  { %v2095_v6 = vadd.f32 %v3577_v4, %v4601_v30  ;;  %v2086_v7 = vpop.f32.mrb[121].mxu1  ;;  %v2447_v29 = vpack.c.bf16 %v2394_v5, %v2393_v27 }
 0x309   :  { %v2087_v51 = vadd.f32 %v4601_v30, %v2086_v7  ;;  %v3578_v8 = vpop.f32.mrb[122].mxu1 }
 0x30a   :  { %v2335_v54 = vmul.f32 0.01, %v2095_v6  ;;  %v2098_v9 = vadd.f32 %v3578_v8, %v4601_v30  ;;  %v2089_v20 = vpop.f32.mrb[123].mxu1  ;;  %3651 = vmatprep.mubr.bf16.mxu0 %v2447_v29  ;;  %vm2271_vm11 = vcmp.gt.f32.partialorder %v2095_v6, 0.0 }
 0x30b   :  { %v2333_v59 = vmul.f32 0.01, %v2087_v51  ;;  %v2090_v11 = vadd.f32 %v4601_v30, %v2089_v20  ;;  %3652 = vmatmul.mubr.bf16.gmra.mrb[84].mxu0 %v2448_v19  ;;  %vm2269_vm12 = vcmp.gt.f32.partialorder %v2087_v51, 0.0 }
 0x30c   :  { %vm2272_vm13 = vcmp.gt.f32.partialorder %v2098_v9, 0.0  ;;  %v2336_v12 = vmul.f32 0.01, %v2098_v9  ;;  %v2399_v40 = vsel %vm2271_vm11, %v2095_v6, %v2335_v54 }
 0x30d   :  { %vm2270_vm14 = vcmp.gt.f32.partialorder %v2090_v11, 0.0  ;;  %v2334_v37 = vmul.f32 0.01, %v2090_v11  ;;  %v2397_v43 = vsel %vm2269_vm12, %v2087_v51, %v2333_v59 }
 0x30e   :  { %v2400_v63 = vsel %vm2272_vm13, %v2098_v9, %v2336_v12 }
 0x30f   :  { %v3581_v42 = vpop.f32.mrb[124].mxu1  ;;  %v2398_v44 = vsel %vm2270_vm14, %v2090_v11, %v2334_v37  ;;  %v2450_v28 = vpack.c.bf16 %v2400_v63, %v2399_v40 }
 0x310   :  { %v2111_v34 = vadd.f32 %v3581_v42, %v4601_v30  ;;  %v2102_v13 = vpop.f32.mrb[125].mxu1  ;;  %v2449_v31 = vpack.c.bf16 %v2398_v44, %v2397_v43 }
 0x311   :  { %v2103_v46 = vadd.f32 %v4601_v30, %v2102_v13  ;;  %v3582_v14 = vpop.f32.mrb[126].mxu1 }
 0x312   :  { %v2339_v32 = vmul.f32 0.01, %v2111_v34  ;;  %v2114_v21 = vadd.f32 %v3582_v14, %v4601_v30  ;;  %v2105_v10 = vpop.f32.mrb[127].mxu1  ;;  %3655 = vmatprep.mubr.bf16.mxu0 %v2449_v31  ;;  %vm2275_vm15 = vcmp.gt.f32.partialorder %v2111_v34, 0.0 }
 0x313   :  { %v2337_v49 = vmul.f32 0.01, %v2103_v46  ;;  %v2106_v39 = vadd.f32 %v4601_v30, %v2105_v10  ;;  %3656 = vmatmul.mubr.bf16.gmra.mrb[88].mxu0 %v2450_v28  ;;  %vm2273_vm0 = vcmp.gt.f32.partialorder %v2103_v46, 0.0 }
 0x314   :  { %vm2276_vm1 = vcmp.gt.f32.partialorder %v2114_v21, 0.0  ;;  %v2340_v22 = vmul.f32 0.01, %v2114_v21  ;;  %v2403_v45 = vsel %vm2275_vm15, %v2111_v34, %v2339_v32 }
 0x315   :  { %vm2274_vm2 = vcmp.gt.f32.partialorder %v2106_v39, 0.0  ;;  %v2338_v15 = vmul.f32 0.01, %v2106_v39  ;;  %v2401_v47 = vsel %vm2273_vm0, %v2103_v46, %v2337_v49 }
 0x316   :  { %v2404_v33 = vsel %vm2276_vm1, %v2114_v21, %v2340_v22 }
 0x317   :  { %v2402_v23 = vsel %vm2274_vm2, %v2106_v39, %v2338_v15  ;;  %v2452_v50 = vpack.c.bf16 %v2404_v33, %v2403_v45 }
 0x318   :  { %v2451_v52 = vpack.c.bf16 %v2402_v23, %v2401_v47 }
 0x319   :  { %v3585_v48 = vpop.f32.mrb[128].mxu1 }
 0x31a   :  { %v2127_v53 = vadd.f32 %v3585_v48, %v4601_v30  ;;  %v2118_v16 = vpop.f32.mrb[129].mxu1  ;;  %3659 = vmatprep.mubr.bf16.mxu0 %v2451_v52 }
 0x31b   :  { %v2119_v24 = vadd.f32 %v4601_v30, %v2118_v16  ;;  %v3586_v55 = vpop.f32.mrb[130].mxu1  ;;  %3660 = vmatmul.mubr.bf16.gmra.mrb[92].mxu0 %v2452_v50 }
 0x31c   :  { %v2343_v56 = vmul.f32 0.01, %v2127_v53  ;;  %v2130_v57 = vadd.f32 %v3586_v55, %v4601_v30  ;;  %v2121_v58 = vpop.f32.mrb[131].mxu1  ;;  %vm2279_vm3 = vcmp.gt.f32.partialorder %v2127_v53, 0.0 }
 0x31d   :  { %v2341_v35 = vmul.f32 0.01, %v2119_v24  ;;  %v2122_v60 = vadd.f32 %v4601_v30, %v2121_v58  ;;  %vm2277_vm4 = vcmp.gt.f32.partialorder %v2119_v24, 0.0 }
 0x31e   :  { %vm2280_vm5 = vcmp.gt.f32.partialorder %v2130_v57, 0.0  ;;  %v2344_v36 = vmul.f32 0.01, %v2130_v57  ;;  %v2407_v62 = vsel %vm2279_vm3, %v2127_v53, %v2343_v56 }
 0x31f   :  { %vm2278_vm6 = vcmp.gt.f32.partialorder %v2122_v60, 0.0  ;;  %v2342_v61 = vmul.f32 0.01, %v2122_v60  ;;  %v2405_v1 = vsel %vm2277_vm4, %v2119_v24, %v2341_v35 }
 0x320   :  { %v2408_v38 = vsel %vm2280_vm5, %v2130_v57, %v2344_v36 }
 0x321   :  { %v3589_v0 = vpop.f32.mrb[132].mxu1  ;;  %v2406_v2 = vsel %vm2278_vm6, %v2122_v60, %v2342_v61  ;;  %v2454_v17 = vpack.c.bf16 %v2408_v38, %v2407_v62 }
 0x322   :  { %v2143_v41 = vadd.f32 %v3589_v0, %v4601_v30  ;;  %v2134_v25 = vpop.f32.mrb[133].mxu1  ;;  %v2453_v3 = vpack.c.bf16 %v2406_v2, %v2405_v1 }
 0x323   :  { %v2135_v26 = vadd.f32 %v4601_v30, %v2134_v25  ;;  %v3590_v18 = vpop.f32.mrb[134].mxu1 }
 0x324   :  { %v2347_v4 = vmul.f32 0.01, %v2143_v41  ;;  %v2146_v27 = vadd.f32 %v3590_v18, %v4601_v30  ;;  %v2137_v5 = vpop.f32.mrb[135].mxu1  ;;  %3663 = vmatprep.mubr.bf16.mxu0 %v2453_v3  ;;  %vm2283_vm7 = vcmp.gt.f32.partialorder %v2143_v41, 0.0 }
 0x325   :  { %v2345_v19 = vmul.f32 0.01, %v2135_v26  ;;  %v2138_v6 = vadd.f32 %v4601_v30, %v2137_v5  ;;  %3664 = vmatmul.mubr.bf16.gmra.mrb[96].mxu0 %v2454_v17  ;;  %vm2281_vm8 = vcmp.gt.f32.partialorder %v2135_v26, 0.0 }
 0x326   :  { %vm2284_vm9 = vcmp.gt.f32.partialorder %v2146_v27, 0.0  ;;  %v2348_v7 = vmul.f32 0.01, %v2146_v27  ;;  %v2411_v51 = vsel %vm2283_vm7, %v2143_v41, %v2347_v4 }
 0x327   :  { %vm2282_vm10 = vcmp.gt.f32.partialorder %v2138_v6, 0.0  ;;  %v2346_v29 = vmul.f32 0.01, %v2138_v6  ;;  %v2409_v9 = vsel %vm2281_vm8, %v2135_v26, %v2345_v19 }
 0x328   :  { %v2412_v8 = vsel %vm2284_vm9, %v2146_v27, %v2348_v7 }
 0x329   :  { %v3593_v54 = vpop.f32.mrb[136].mxu1  ;;  %v2410_v20 = vsel %vm2282_vm10, %v2138_v6, %v2346_v29  ;;  %v2456_v59 = vpack.c.bf16 %v2412_v8, %v2411_v51 }
 0x32a   :  { %v2159_v11 = vadd.f32 %v3593_v54, %v4601_v30  ;;  %v2150_v12 = vpop.f32.mrb[137].mxu1  ;;  %v2455_v37 = vpack.c.bf16 %v2410_v20, %v2409_v9 }
 0x32b   :  { %v2151_v40 = vadd.f32 %v4601_v30, %v2150_v12  ;;  %v3594_v63 = vpop.f32.mrb[138].mxu1 }
 0x32c   :  { %v2351_v42 = vmul.f32 0.01, %v2159_v11  ;;  %v2162_v43 = vadd.f32 %v3594_v63, %v4601_v30  ;;  %v2153_v44 = vpop.f32.mrb[139].mxu1  ;;  %3667 = vmatprep.mubr.bf16.mxu0 %v2455_v37  ;;  %vm2287_vm11 = vcmp.gt.f32.partialorder %v2159_v11, 0.0 }
 0x32d   :  { %v2349_v28 = vmul.f32 0.01, %v2151_v40  ;;  %v2154_v34 = vadd.f32 %v4601_v30, %v2153_v44  ;;  %3668 = vmatmul.mubr.bf16.gmra.mrb[100].mxu0 %v2456_v59  ;;  %vm2285_vm12 = vcmp.gt.f32.partialorder %v2151_v40, 0.0 }
 0x32e   :  { %vm2288_vm13 = vcmp.gt.f32.partialorder %v2162_v43, 0.0  ;;  %v2352_v13 = vmul.f32 0.01, %v2162_v43  ;;  %v2415_v46 = vsel %vm2287_vm11, %v2159_v11, %v2351_v42 }
 0x32f   :  { %vm2286_vm14 = vcmp.gt.f32.partialorder %v2154_v34, 0.0  ;;  %v2350_v31 = vmul.f32 0.01, %v2154_v34  ;;  %v2413_v21 = vsel %vm2285_vm12, %v2151_v40, %v2349_v28 }
 0x330   :  { %v2416_v14 = vsel %vm2288_vm13, %v2162_v43, %v2352_v13 }
 0x331   :  { %v3597_v32 = vpop.f32.mrb[140].mxu1  ;;  %v2414_v10 = vsel %vm2286_vm14, %v2154_v34, %v2350_v31  ;;  %v2458_v49 = vpack.c.bf16 %v2416_v14, %v2415_v46 }
 0x332   :  { %v2175_v39 = vadd.f32 %v3597_v32, %v4601_v30  ;;  %v2166_v22 = vpop.f32.mrb[141].mxu1  ;;  %v2457_v15 = vpack.c.bf16 %v2414_v10, %v2413_v21 }
 0x333   :  { %v2167_v45 = vadd.f32 %v4601_v30, %v2166_v22  ;;  %v3598_v33 = vpop.f32.mrb[142].mxu1 }
 0x334   :  { %v2355_v47 = vmul.f32 0.01, %v2175_v39  ;;  %v2178_v23 = vadd.f32 %v3598_v33, %v4601_v30  ;;  %v2169_v50 = vpop.f32.mrb[143].mxu1  ;;  %3671 = vmatprep.mubr.bf16.mxu0 %v2457_v15  ;;  %vm2291_vm15 = vcmp.gt.f32.partialorder %v2175_v39, 0.0 }
 0x335   :  { %v2353_v52 = vmul.f32 0.01, %v2167_v45  ;;  %v2170_v48 = vadd.f32 %v4601_v30, %v2169_v50  ;;  %3672 = vmatmul.mubr.bf16.gmra.mrb[104].mxu0 %v2458_v49  ;;  %vm2289_vm0 = vcmp.gt.f32.partialorder %v2167_v45, 0.0 }
 0x336   :  { %vm2292_vm1 = vcmp.gt.f32.partialorder %v2178_v23, 0.0  ;;  %v2356_v53 = vmul.f32 0.01, %v2178_v23  ;;  %v2419_v24 = vsel %vm2291_vm15, %v2175_v39, %v2355_v47 }
 0x337   :  { %vm2290_vm2 = vcmp.gt.f32.partialorder %v2170_v48, 0.0  ;;  %v2354_v16 = vmul.f32 0.01, %v2170_v48  ;;  %v2417_v57 = vsel %vm2289_vm0, %v2167_v45, %v2353_v52 }
 0x338   :  { %v2420_v55 = vsel %vm2292_vm1, %v2178_v23, %v2356_v53 }
 0x339   :  { %v3601_v56 = vpop.f32.mrb[144].mxu1  ;;  %v2418_v58 = vsel %vm2290_vm2, %v2170_v48, %v2354_v16  ;;  %v2460_v35 = vpack.c.bf16 %v2420_v55, %v2419_v24 }
 0x33a   :  { %v2191_v60 = vadd.f32 %v3601_v56, %v4601_v30  ;;  %v2182_v36 = vpop.f32.mrb[145].mxu1  ;;  %v2459_v61 = vpack.c.bf16 %v2418_v58, %v2417_v57 }
 0x33b   :  { %v2183_v62 = vadd.f32 %v4601_v30, %v2182_v36  ;;  %v3602_v38 = vpop.f32.mrb[146].mxu1 }
 0x33c   :  { %v2359_v0 = vmul.f32 0.01, %v2191_v60  ;;  %v2194_v1 = vadd.f32 %v3602_v38, %v4601_v30  ;;  %v2185_v2 = vpop.f32.mrb[147].mxu1  ;;  %3675 = vmatprep.mubr.bf16.mxu0 %v2459_v61  ;;  %vm2295_vm3 = vcmp.gt.f32.partialorder %v2191_v60, 0.0 }
 0x33d   :  { %v2357_v17 = vmul.f32 0.01, %v2183_v62  ;;  %v2186_v41 = vadd.f32 %v4601_v30, %v2185_v2  ;;  %3676 = vmatmul.mubr.bf16.gmra.mrb[108].mxu0 %v2460_v35  ;;  %vm2293_vm4 = vcmp.gt.f32.partialorder %v2183_v62, 0.0 }
 0x33e   :  { %vm2296_vm5 = vcmp.gt.f32.partialorder %v2194_v1, 0.0  ;;  %v2360_v25 = vmul.f32 0.01, %v2194_v1  ;;  %v2423_v26 = vsel %vm2295_vm3, %v2191_v60, %v2359_v0  ;;  %vm2955_vm3 = vcmask 7168  }
 0x33f   :  { %vm2294_vm6 = vcmp.gt.f32.partialorder %v2186_v41, 0.0  ;;  %v2358_v3 = vmul.f32 0.01, %v2186_v41  ;;  %v2421_v27 = vsel %vm2293_vm4, %v2183_v62, %v2357_v17 }
 0x340   :  { %v2424_v18 = vsel %vm2296_vm5, %v2194_v1, %v2360_v25 }
 0x341   :  { %v3605_v4 = vpop.f32.mrb[148].mxu1  ;;  %v2422_v5 = vsel %vm2294_vm6, %v2186_v41, %v2358_v3  ;;  %v2462_v19 = vpack.c.bf16 %v2424_v18, %v2423_v26  ;;  %v4670_v41 = vld [vmem:[%s4997_s5 + $0x3] ss:$0 sm:$0xff] }
 0x342   :  { %v2207_v6 = vadd.f32 %v3605_v4, %v4601_v30  ;;  %v2198_v7 = vpop.f32.mrb[149].mxu1  ;;  %v2461_v29 = vpack.c.bf16 %v2422_v5, %v2421_v27 }
 0x343   :  { %v2199_v51 = vadd.f32 %v4601_v30, %v2198_v7  ;;  %v3606_v8 = vpop.f32.mrb[150].mxu1 }
 0x344   :  { %v2363_v54 = vmul.f32 0.01, %v2207_v6  ;;  %v2210_v9 = vadd.f32 %v3606_v8, %v4601_v30  ;;  %v2201_v20 = vpop.f32.mrb[151].mxu1  ;;  %3679 = vmatprep.mubr.bf16.mxu0 %v2461_v29  ;;  %vm2299_vm7 = vcmp.gt.f32.partialorder %v2207_v6, 0.0 }
 0x345   :  { %v2361_v59 = vmul.f32 0.01, %v2199_v51  ;;  %v2202_v11 = vadd.f32 %v4601_v30, %v2201_v20  ;;  %3680 = vmatmul.mubr.bf16.gmra.mrb[112].mxu0 %v2462_v19  ;;  %vm2297_vm8 = vcmp.gt.f32.partialorder %v2199_v51, 0.0 }
 0x346   :  { %vm2300_vm9 = vcmp.gt.f32.partialorder %v2210_v9, 0.0  ;;  %v2364_v12 = vmul.f32 0.01, %v2210_v9  ;;  %v2427_v40 = vsel %vm2299_vm7, %v2207_v6, %v2363_v54 }
 0x347   :  { %vm2298_vm10 = vcmp.gt.f32.partialorder %v2202_v11, 0.0  ;;  %v2362_v37 = vmul.f32 0.01, %v2202_v11  ;;  %v2425_v43 = vsel %vm2297_vm8, %v2199_v51, %v2361_v59 }
 0x348   :  { %v2428_v63 = vsel %vm2300_vm9, %v2210_v9, %v2364_v12 }
 0x349   :  { %v3609_v42 = vpop.f32.mrb[152].mxu1  ;;  %v2426_v44 = vsel %vm2298_vm10, %v2202_v11, %v2362_v37  ;;  %v2464_v28 = vpack.c.bf16 %v2428_v63, %v2427_v40 }
 0x34a   :  { %v2223_v34 = vadd.f32 %v3609_v42, %v4601_v30  ;;  %v2214_v13 = vpop.f32.mrb[153].mxu1  ;;  %v2463_v31 = vpack.c.bf16 %v2426_v44, %v2425_v43 }
 0x34b   :  { %v2215_v46 = vadd.f32 %v4601_v30, %v2214_v13  ;;  %v3610_v14 = vpop.f32.mrb[154].mxu1 }
 0x34c   :  { %v2367_v32 = vmul.f32 0.01, %v2223_v34  ;;  %v2226_v21 = vadd.f32 %v3610_v14, %v4601_v30  ;;  %v2217_v10 = vpop.f32.mrb[155].mxu1  ;;  %3683 = vmatprep.mubr.bf16.mxu0 %v2463_v31  ;;  %vm2303_vm11 = vcmp.gt.f32.partialorder %v2223_v34, 0.0 }
 0x34d   :  { %v2365_v49 = vmul.f32 0.01, %v2215_v46  ;;  %v2218_v39 = vadd.f32 %v4601_v30, %v2217_v10  ;;  %3684 = vmatmul.mubr.bf16.gmra.mrb[116].mxu0 %v2464_v28  ;;  %vm2301_vm12 = vcmp.gt.f32.partialorder %v2215_v46, 0.0 }
 0x34e   :  { %vm2304_vm13 = vcmp.gt.f32.partialorder %v2226_v21, 0.0  ;;  %v2368_v22 = vmul.f32 0.01, %v2226_v21  ;;  %v2431_v45 = vsel %vm2303_vm11, %v2223_v34, %v2367_v32 }
 0x34f   :  { %vm2302_vm14 = vcmp.gt.f32.partialorder %v2218_v39, 0.0  ;;  %v2366_v15 = vmul.f32 0.01, %v2218_v39  ;;  %v2429_v23 = vsel %vm2301_vm12, %v2215_v46, %v2365_v49 }
 0x350   :  { %v2432_v33 = vsel %vm2304_vm13, %v2226_v21, %v2368_v22 }
 0x351   :  { %v3613_v47 = vpop.f32.mrb[156].mxu1  ;;  %v2430_v50 = vsel %vm2302_vm14, %v2218_v39, %v2366_v15  ;;  %v2466_v52 = vpack.c.bf16 %v2432_v33, %v2431_v45 }
 0x352   :  { %v2239_v48 = vadd.f32 %v3613_v47, %v4601_v30  ;;  %v2230_v53 = vpop.f32.mrb[157].mxu1  ;;  %v2465_v16 = vpack.c.bf16 %v2430_v50, %v2429_v23 }
 0x353   :  { %v2231_v24 = vadd.f32 %v4601_v30, %v2230_v53  ;;  %v3614_v55 = vpop.f32.mrb[158].mxu1 }
 0x354   :  { %v2371_v56 = vmul.f32 0.01, %v2239_v48  ;;  %v2242_v57 = vadd.f32 %v3614_v55, %v4601_v30  ;;  %v2233_v58 = vpop.f32.mrb[159].mxu1  ;;  %3687 = vmatprep.mubr.bf16.mxu0 %v2465_v16  ;;  %vm2307_vm15 = vcmp.gt.f32.partialorder %v2239_v48, 0.0 }
 0x355   :  { %v2369_v35 = vmul.f32 0.01, %v2231_v24  ;;  %v2234_v60 = vadd.f32 %v4601_v30, %v2233_v58  ;;  %3688 = vmatmul.mubr.bf16.gmra.mrb[120].mxu0 %v2466_v52  ;;  %vm2305_vm0 = vcmp.gt.f32.partialorder %v2231_v24, 0.0 }
 0x356   :  { %vm2308_vm1 = vcmp.gt.f32.partialorder %v2242_v57, 0.0  ;;  %v2372_v36 = vmul.f32 0.01, %v2242_v57  ;;  %v2435_v62 = vsel %vm2307_vm15, %v2239_v48, %v2371_v56 }
 0x357   :  { %vm2306_vm2 = vcmp.gt.f32.partialorder %v2234_v60, 0.0  ;;  %v2370_v61 = vmul.f32 0.01, %v2234_v60  ;;  %v2433_v0 = vsel %vm2305_vm0, %v2231_v24, %v2369_v35 }
 0x358   :  { %v2436_v38 = vsel %vm2308_vm1, %v2242_v57, %v2372_v36 }
 0x359   :  { %v2434_v1 = vsel %vm2306_vm2, %v2234_v60, %v2370_v61  ;;  %v2468_v2 = vpack.c.bf16 %v2436_v38, %v2435_v62 }
 0x35a   :  { %v2467_v17 = vpack.c.bf16 %v2434_v1, %v2433_v0 }
 0x35c   :  { %3691 = vmatprep.mubr.bf16.mxu0 %v2467_v17 }
 0x35d   :  { %3692 = vmatmul.mubr.bf16.gmra.mrb[124].mxu0 %v2468_v2 }
 0x3b6   :  { %v3633_v30 = vpop.f32.mrb[64].mxu0 }
 0x3b7   :  { %v2829_v25 = vadd.f32 %v3633_v30, %v4670_v41  ;;  %v2567_v3 = vpop.f32.mrb[65].mxu0 }
 0x3b8   :  { %v2827_v26 = vadd.f32 %v4670_v41, %v2567_v3  ;;  %v3634_v18 = vpop.f32.mrb[66].mxu0 }
 0x3b9   :  { %v2893_v4 = vmax.f32 %v2829_v25, 0.0  ;;  %v2830_v27 = vadd.f32 %v3634_v18, %v4670_v41  ;;  %v2570_v5 = vpop.f32.mrb[67].mxu0 }
 0x3ba   :  { %v2891_v19 = vmax.f32 %v2827_v26, 0.0  ;;  %v2828_v6 = vadd.f32 %v4670_v41, %v2570_v5 }
 0x3bb   :  { %2958 = vst.msk [vmem:[%s4999_s7 + $0x10] sm:$0xff] %vm2955_vm3, %v2893_v4  ;;  %v2894_v7 = vmax.f32 %v2830_v27, 0.0 }
 0x3bc   :  { %2956 = vst.msk [vmem:[%s4999_s7] sm:$0xff] %vm2955_vm3, %v2891_v19  ;;  %v2892_v29 = vmax.f32 %v2828_v6, 0.0 }
 0x3bd   :  { %2959 = vst.msk [vmem:[%s4999_s7 + $0x18] sm:$0xff] %vm2955_vm3, %v2894_v7 }
 0x3be   :  { %2957 = vst.msk [vmem:[%s4999_s7 + $0x8] sm:$0xff] %vm2955_vm3, %v2892_v29  ;;  %v3637_v51 = vpop.f32.mrb[68].mxu0 }
 0x3bf   :  { %v2833_v8 = vadd.f32 %v3637_v51, %v4670_v41  ;;  %v2583_v54 = vpop.f32.mrb[69].mxu0 }
 0x3c0   :  { %v2831_v9 = vadd.f32 %v4670_v41, %v2583_v54  ;;  %v3638_v20 = vpop.f32.mrb[70].mxu0 }
 0x3c1   :  { %v2897_v59 = vmax.f32 %v2833_v8, 0.0  ;;  %v2834_v11 = vadd.f32 %v3638_v20, %v4670_v41  ;;  %v2586_v12 = vpop.f32.mrb[71].mxu0 }
 0x3c2   :  { %v2895_v37 = vmax.f32 %v2831_v9, 0.0  ;;  %v2832_v40 = vadd.f32 %v4670_v41, %v2586_v12 }
 0x3c3   :  { %2962 = vst.msk [vmem:[%s4999_s7 + $0x30] sm:$0xff] %vm2955_vm3, %v2897_v59  ;;  %v2898_v63 = vmax.f32 %v2834_v11, 0.0 }
 0x3c4   :  { %2960 = vst.msk [vmem:[%s4999_s7 + $0x20] sm:$0xff] %vm2955_vm3, %v2895_v37  ;;  %v2896_v42 = vmax.f32 %v2832_v40, 0.0 }
 0x3c5   :  { %2963 = vst.msk [vmem:[%s4999_s7 + $0x38] sm:$0xff] %vm2955_vm3, %v2898_v63 }
 0x3c6   :  { %2961 = vst.msk [vmem:[%s4999_s7 + $0x28] sm:$0xff] %vm2955_vm3, %v2896_v42  ;;  %v3641_v43 = vpop.f32.mrb[72].mxu0 }
 0x3c7   :  { %v2837_v44 = vadd.f32 %v3641_v43, %v4670_v41  ;;  %v2599_v28 = vpop.f32.mrb[73].mxu0 }
 0x3c8   :  { %v2835_v34 = vadd.f32 %v4670_v41, %v2599_v28  ;;  %v3642_v13 = vpop.f32.mrb[74].mxu0 }
 0x3c9   :  { %v2901_v31 = vmax.f32 %v2837_v44, 0.0  ;;  %v2838_v46 = vadd.f32 %v3642_v13, %v4670_v41  ;;  %v2602_v14 = vpop.f32.mrb[75].mxu0 }
 0x3ca   :  { %v2899_v32 = vmax.f32 %v2835_v34, 0.0  ;;  %v2836_v21 = vadd.f32 %v4670_v41, %v2602_v14 }
 0x3cb   :  { %2966 = vst.msk [vmem:[%s4999_s7 + $0x50] sm:$0xff] %vm2955_vm3, %v2901_v31  ;;  %v2902_v10 = vmax.f32 %v2838_v46, 0.0 }
 0x3cc   :  { %2964 = vst.msk [vmem:[%s4999_s7 + $0x40] sm:$0xff] %vm2955_vm3, %v2899_v32  ;;  %v2900_v49 = vmax.f32 %v2836_v21, 0.0 }
 0x3cd   :  { %2967 = vst.msk [vmem:[%s4999_s7 + $0x58] sm:$0xff] %vm2955_vm3, %v2902_v10 }
 0x3ce   :  { %2965 = vst.msk [vmem:[%s4999_s7 + $0x48] sm:$0xff] %vm2955_vm3, %v2900_v49  ;;  %v3645_v39 = vpop.f32.mrb[76].mxu0 }
 0x3cf   :  { %v2841_v22 = vadd.f32 %v3645_v39, %v4670_v41  ;;  %v2615_v15 = vpop.f32.mrb[77].mxu0 }
 0x3d0   :  { %v2839_v45 = vadd.f32 %v4670_v41, %v2615_v15  ;;  %v3646_v33 = vpop.f32.mrb[78].mxu0 }
 0x3d1   :  { %v2905_v47 = vmax.f32 %v2841_v22, 0.0  ;;  %v2842_v23 = vadd.f32 %v3646_v33, %v4670_v41  ;;  %v2618_v50 = vpop.f32.mrb[79].mxu0 }
 0x3d2   :  { %v2903_v52 = vmax.f32 %v2839_v45, 0.0  ;;  %v2840_v48 = vadd.f32 %v4670_v41, %v2618_v50 }
 0x3d3   :  { %2970 = vst.msk [vmem:[%s4999_s7 + $0x70] sm:$0xff] %vm2955_vm3, %v2905_v47  ;;  %v2906_v53 = vmax.f32 %v2842_v23, 0.0 }
 0x3d4   :  { %2968 = vst.msk [vmem:[%s4999_s7 + $0x60] sm:$0xff] %vm2955_vm3, %v2903_v52  ;;  %v2904_v16 = vmax.f32 %v2840_v48, 0.0 }
 0x3d5   :  { %2971 = vst.msk [vmem:[%s4999_s7 + $0x78] sm:$0xff] %vm2955_vm3, %v2906_v53 }
 0x3d6   :  { %2969 = vst.msk [vmem:[%s4999_s7 + $0x68] sm:$0xff] %vm2955_vm3, %v2904_v16  ;;  %v3649_v24 = vpop.f32.mrb[80].mxu0 }
 0x3d7   :  { %v2845_v55 = vadd.f32 %v3649_v24, %v4670_v41  ;;  %v2631_v56 = vpop.f32.mrb[81].mxu0 }
 0x3d8   :  { %v2843_v57 = vadd.f32 %v4670_v41, %v2631_v56  ;;  %v3650_v58 = vpop.f32.mrb[82].mxu0 }
 0x3d9   :  { %v2909_v35 = vmax.f32 %v2845_v55, 0.0  ;;  %v2846_v60 = vadd.f32 %v3650_v58, %v4670_v41  ;;  %v2634_v36 = vpop.f32.mrb[83].mxu0 }
 0x3da   :  { %v2907_v61 = vmax.f32 %v2843_v57, 0.0  ;;  %v2844_v62 = vadd.f32 %v4670_v41, %v2634_v36 }
 0x3db   :  { %2974 = vst.msk [vmem:[%s4999_s7 + $0x90] sm:$0xff] %vm2955_vm3, %v2909_v35  ;;  %v2910_v38 = vmax.f32 %v2846_v60, 0.0 }
 0x3dc   :  { %2972 = vst.msk [vmem:[%s4999_s7 + $0x80] sm:$0xff] %vm2955_vm3, %v2907_v61  ;;  %v2908_v0 = vmax.f32 %v2844_v62, 0.0 }
 0x3dd   :  { %2975 = vst.msk [vmem:[%s4999_s7 + $0x98] sm:$0xff] %vm2955_vm3, %v2910_v38 }
 0x3de   :  { %2973 = vst.msk [vmem:[%s4999_s7 + $0x88] sm:$0xff] %vm2955_vm3, %v2908_v0  ;;  %v3653_v1 = vpop.f32.mrb[84].mxu0 }
 0x3df   :  { %v2849_v2 = vadd.f32 %v3653_v1, %v4670_v41  ;;  %v2647_v17 = vpop.f32.mrb[85].mxu0 }
 0x3e0   :  { %v2847_v30 = vadd.f32 %v4670_v41, %v2647_v17  ;;  %v3654_v25 = vpop.f32.mrb[86].mxu0 }
 0x3e1   :  { %v2913_v3 = vmax.f32 %v2849_v2, 0.0  ;;  %v2850_v26 = vadd.f32 %v3654_v25, %v4670_v41  ;;  %v2650_v18 = vpop.f32.mrb[87].mxu0 }
 0x3e2   :  { %v2911_v4 = vmax.f32 %v2847_v30, 0.0  ;;  %v2848_v27 = vadd.f32 %v4670_v41, %v2650_v18 }
 0x3e3   :  { %2978 = vst.msk [vmem:[%s4999_s7 + $0xb0] sm:$0xff] %vm2955_vm3, %v2913_v3  ;;  %v2914_v5 = vmax.f32 %v2850_v26, 0.0 }
 0x3e4   :  { %2976 = vst.msk [vmem:[%s4999_s7 + $0xa0] sm:$0xff] %vm2955_vm3, %v2911_v4  ;;  %v2912_v19 = vmax.f32 %v2848_v27, 0.0 }
 0x3e5   :  { %2979 = vst.msk [vmem:[%s4999_s7 + $0xb8] sm:$0xff] %vm2955_vm3, %v2914_v5 }
 0x3e6   :  { %2977 = vst.msk [vmem:[%s4999_s7 + $0xa8] sm:$0xff] %vm2955_vm3, %v2912_v19  ;;  %v3657_v6 = vpop.f32.mrb[88].mxu0 }
 0x3e7   :  { %v2853_v7 = vadd.f32 %v3657_v6, %v4670_v41  ;;  %v2663_v29 = vpop.f32.mrb[89].mxu0 }
 0x3e8   :  { %v2851_v51 = vadd.f32 %v4670_v41, %v2663_v29  ;;  %v3658_v8 = vpop.f32.mrb[90].mxu0 }
 0x3e9   :  { %v2917_v54 = vmax.f32 %v2853_v7, 0.0  ;;  %v2854_v9 = vadd.f32 %v3658_v8, %v4670_v41  ;;  %v2666_v20 = vpop.f32.mrb[91].mxu0 }
 0x3ea   :  { %v2915_v59 = vmax.f32 %v2851_v51, 0.0  ;;  %v2852_v11 = vadd.f32 %v4670_v41, %v2666_v20 }
 0x3eb   :  { %2982 = vst.msk [vmem:[%s4999_s7 + $0xd0] sm:$0xff] %vm2955_vm3, %v2917_v54  ;;  %v2918_v12 = vmax.f32 %v2854_v9, 0.0 }
 0x3ec   :  { %2980 = vst.msk [vmem:[%s4999_s7 + $0xc0] sm:$0xff] %vm2955_vm3, %v2915_v59  ;;  %v2916_v37 = vmax.f32 %v2852_v11, 0.0 }
 0x3ed   :  { %2983 = vst.msk [vmem:[%s4999_s7 + $0xd8] sm:$0xff] %vm2955_vm3, %v2918_v12 }
 0x3ee   :  { %2981 = vst.msk [vmem:[%s4999_s7 + $0xc8] sm:$0xff] %vm2955_vm3, %v2916_v37  ;;  %v3661_v40 = vpop.f32.mrb[92].mxu0 }
 0x3ef   :  { %v2857_v63 = vadd.f32 %v3661_v40, %v4670_v41  ;;  %v2679_v42 = vpop.f32.mrb[93].mxu0 }
 0x3f0   :  { %v2855_v43 = vadd.f32 %v4670_v41, %v2679_v42  ;;  %v3662_v44 = vpop.f32.mrb[94].mxu0 }
 0x3f1   :  { %v2921_v28 = vmax.f32 %v2857_v63, 0.0  ;;  %v2858_v34 = vadd.f32 %v3662_v44, %v4670_v41  ;;  %v2682_v13 = vpop.f32.mrb[95].mxu0 }
 0x3f2   :  { %v2919_v31 = vmax.f32 %v2855_v43, 0.0  ;;  %v2856_v46 = vadd.f32 %v4670_v41, %v2682_v13 }
 0x3f3   :  { %2986 = vst.msk [vmem:[%s4999_s7 + $0xf0] sm:$0xff] %vm2955_vm3, %v2921_v28  ;;  %v2922_v14 = vmax.f32 %v2858_v34, 0.0 }
 0x3f4   :  { %2984 = vst.msk [vmem:[%s4999_s7 + $0xe0] sm:$0xff] %vm2955_vm3, %v2919_v31  ;;  %v2920_v32 = vmax.f32 %v2856_v46, 0.0 }
 0x3f5   :  { %2987 = vst.msk [vmem:[%s4999_s7 + $0xf8] sm:$0xff] %vm2955_vm3, %v2922_v14 }
 0x3f6   :  { %2985 = vst.msk [vmem:[%s4999_s7 + $0xe8] sm:$0xff] %vm2955_vm3, %v2920_v32 }
 0x3f8   :  { %v3665_v21 = vpop.f32.mrb[96].mxu0 }
 0x3f9   :  { %v2861_v10 = vadd.f32 %v3665_v21, %v4670_v41  ;;  %v2695_v49 = vpop.f32.mrb[97].mxu0 }
 0x3fa   :  { %v2859_v39 = vadd.f32 %v4670_v41, %v2695_v49  ;;  %v3666_v22 = vpop.f32.mrb[98].mxu0 }
 0x3fb   :  { %v2925_v15 = vmax.f32 %v2861_v10, 0.0  ;;  %v2862_v45 = vadd.f32 %v3666_v22, %v4670_v41  ;;  %v2698_v33 = vpop.f32.mrb[99].mxu0 }
 0x3fc   :  { %v2923_v47 = vmax.f32 %v2859_v39, 0.0  ;;  %v2860_v23 = vadd.f32 %v4670_v41, %v2698_v33 }
 0x3fd   :  { %2990 = vst.msk [vmem:[%s4999_s7 + $0x110] sm:$0xff] %vm2955_vm3, %v2925_v15  ;;  %v2926_v50 = vmax.f32 %v2862_v45, 0.0 }
 0x3fe   :  { %2988 = vst.msk [vmem:[%s4999_s7 + $0x100] sm:$0xff] %vm2955_vm3, %v2923_v47  ;;  %v2924_v52 = vmax.f32 %v2860_v23, 0.0 }
 0x3ff   :  { %2991 = vst.msk [vmem:[%s4999_s7 + $0x118] sm:$0xff] %vm2955_vm3, %v2926_v50 }
 0x400   :  { %2989 = vst.msk [vmem:[%s4999_s7 + $0x108] sm:$0xff] %vm2955_vm3, %v2924_v52  ;;  %v3669_v48 = vpop.f32.mrb[100].mxu0 }
 0x401   :  { %v2865_v53 = vadd.f32 %v3669_v48, %v4670_v41  ;;  %v2711_v16 = vpop.f32.mrb[101].mxu0 }
 0x402   :  { %v2863_v24 = vadd.f32 %v4670_v41, %v2711_v16  ;;  %v3670_v55 = vpop.f32.mrb[102].mxu0 }
 0x403   :  { %v2929_v56 = vmax.f32 %v2865_v53, 0.0  ;;  %v2866_v57 = vadd.f32 %v3670_v55, %v4670_v41  ;;  %v2714_v58 = vpop.f32.mrb[103].mxu0 }
 0x404   :  { %v2927_v35 = vmax.f32 %v2863_v24, 0.0  ;;  %v2864_v60 = vadd.f32 %v4670_v41, %v2714_v58 }
 0x405   :  { %2994 = vst.msk [vmem:[%s4999_s7 + $0x130] sm:$0xff] %vm2955_vm3, %v2929_v56  ;;  %v2930_v36 = vmax.f32 %v2866_v57, 0.0 }
 0x406   :  { %2992 = vst.msk [vmem:[%s4999_s7 + $0x120] sm:$0xff] %vm2955_vm3, %v2927_v35  ;;  %v2928_v61 = vmax.f32 %v2864_v60, 0.0 }
 0x407   :  { %2995 = vst.msk [vmem:[%s4999_s7 + $0x138] sm:$0xff] %vm2955_vm3, %v2930_v36 }
 0x408   :  { %2993 = vst.msk [vmem:[%s4999_s7 + $0x128] sm:$0xff] %vm2955_vm3, %v2928_v61  ;;  %v3673_v62 = vpop.f32.mrb[104].mxu0 }
 0x409   :  { %v2869_v38 = vadd.f32 %v3673_v62, %v4670_v41  ;;  %v2727_v0 = vpop.f32.mrb[105].mxu0 }
 0x40a   :  { %v2867_v1 = vadd.f32 %v4670_v41, %v2727_v0  ;;  %v3674_v2 = vpop.f32.mrb[106].mxu0 }
 0x40b   :  { %v2933_v17 = vmax.f32 %v2869_v38, 0.0  ;;  %v2870_v30 = vadd.f32 %v3674_v2, %v4670_v41  ;;  %v2730_v25 = vpop.f32.mrb[107].mxu0 }
 0x40c   :  { %v2931_v3 = vmax.f32 %v2867_v1, 0.0  ;;  %v2868_v26 = vadd.f32 %v4670_v41, %v2730_v25 }
 0x40d   :  { %2998 = vst.msk [vmem:[%s4999_s7 + $0x150] sm:$0xff] %vm2955_vm3, %v2933_v17  ;;  %v2934_v18 = vmax.f32 %v2870_v30, 0.0 }
 0x40e   :  { %2996 = vst.msk [vmem:[%s4999_s7 + $0x140] sm:$0xff] %vm2955_vm3, %v2931_v3  ;;  %v2932_v4 = vmax.f32 %v2868_v26, 0.0 }
 0x40f   :  { %2999 = vst.msk [vmem:[%s4999_s7 + $0x158] sm:$0xff] %vm2955_vm3, %v2934_v18 }
 0x410   :  { %2997 = vst.msk [vmem:[%s4999_s7 + $0x148] sm:$0xff] %vm2955_vm3, %v2932_v4  ;;  %v3677_v27 = vpop.f32.mrb[108].mxu0 }
 0x411   :  { %v2873_v5 = vadd.f32 %v3677_v27, %v4670_v41  ;;  %v2743_v19 = vpop.f32.mrb[109].mxu0 }
 0x412   :  { %v2871_v6 = vadd.f32 %v4670_v41, %v2743_v19  ;;  %v3678_v7 = vpop.f32.mrb[110].mxu0 }
 0x413   :  { %v2937_v29 = vmax.f32 %v2873_v5, 0.0  ;;  %v2874_v51 = vadd.f32 %v3678_v7, %v4670_v41  ;;  %v2746_v8 = vpop.f32.mrb[111].mxu0 }
 0x414   :  { %v2935_v54 = vmax.f32 %v2871_v6, 0.0  ;;  %v2872_v9 = vadd.f32 %v4670_v41, %v2746_v8 }
 0x415   :  { %3002 = vst.msk [vmem:[%s4999_s7 + $0x170] sm:$0xff] %vm2955_vm3, %v2937_v29  ;;  %v2938_v20 = vmax.f32 %v2874_v51, 0.0 }
 0x416   :  { %3000 = vst.msk [vmem:[%s4999_s7 + $0x160] sm:$0xff] %vm2955_vm3, %v2935_v54  ;;  %v2936_v59 = vmax.f32 %v2872_v9, 0.0 }
 0x417   :  { %3003 = vst.msk [vmem:[%s4999_s7 + $0x178] sm:$0xff] %vm2955_vm3, %v2938_v20 }
 0x418   :  { %3001 = vst.msk [vmem:[%s4999_s7 + $0x168] sm:$0xff] %vm2955_vm3, %v2936_v59  ;;  %v3681_v11 = vpop.f32.mrb[112].mxu0 }
 0x419   :  { %v2877_v12 = vadd.f32 %v3681_v11, %v4670_v41  ;;  %v2759_v37 = vpop.f32.mrb[113].mxu0 }
 0x41a   :  { %v2875_v40 = vadd.f32 %v4670_v41, %v2759_v37  ;;  %v3682_v63 = vpop.f32.mrb[114].mxu0 }
 0x41b   :  { %v2941_v42 = vmax.f32 %v2877_v12, 0.0  ;;  %v2878_v43 = vadd.f32 %v3682_v63, %v4670_v41  ;;  %v2762_v44 = vpop.f32.mrb[115].mxu0 }
 0x41c   :  { %v2939_v28 = vmax.f32 %v2875_v40, 0.0  ;;  %v2876_v34 = vadd.f32 %v4670_v41, %v2762_v44 }
 0x41d   :  { %3006 = vst.msk [vmem:[%s4999_s7 + $0x190] sm:$0xff] %vm2955_vm3, %v2941_v42  ;;  %v2942_v13 = vmax.f32 %v2878_v43, 0.0 }
 0x41e   :  { %3004 = vst.msk [vmem:[%s4999_s7 + $0x180] sm:$0xff] %vm2955_vm3, %v2939_v28  ;;  %v2940_v31 = vmax.f32 %v2876_v34, 0.0 }
 0x41f   :  { %3007 = vst.msk [vmem:[%s4999_s7 + $0x198] sm:$0xff] %vm2955_vm3, %v2942_v13 }
 0x420   :  { %3005 = vst.msk [vmem:[%s4999_s7 + $0x188] sm:$0xff] %vm2955_vm3, %v2940_v31  ;;  %v3685_v46 = vpop.f32.mrb[116].mxu0 }
 0x421   :  { %v2881_v14 = vadd.f32 %v3685_v46, %v4670_v41  ;;  %v2775_v32 = vpop.f32.mrb[117].mxu0 }
 0x422   :  { %v2879_v21 = vadd.f32 %v4670_v41, %v2775_v32  ;;  %v3686_v10 = vpop.f32.mrb[118].mxu0 }
 0x423   :  { %v2945_v49 = vmax.f32 %v2881_v14, 0.0  ;;  %v2882_v39 = vadd.f32 %v3686_v10, %v4670_v41  ;;  %v2778_v22 = vpop.f32.mrb[119].mxu0 }
 0x424   :  { %v2943_v15 = vmax.f32 %v2879_v21, 0.0  ;;  %v2880_v45 = vadd.f32 %v4670_v41, %v2778_v22 }
 0x425   :  { %3010 = vst.msk [vmem:[%s4999_s7 + $0x1b0] sm:$0xff] %vm2955_vm3, %v2945_v49  ;;  %v2946_v33 = vmax.f32 %v2882_v39, 0.0 }
 0x426   :  { %3008 = vst.msk [vmem:[%s4999_s7 + $0x1a0] sm:$0xff] %vm2955_vm3, %v2943_v15  ;;  %v2944_v47 = vmax.f32 %v2880_v45, 0.0 }
 0x427   :  { %3011 = vst.msk [vmem:[%s4999_s7 + $0x1b8] sm:$0xff] %vm2955_vm3, %v2946_v33 }
 0x428   :  { %3009 = vst.msk [vmem:[%s4999_s7 + $0x1a8] sm:$0xff] %vm2955_vm3, %v2944_v47  ;;  %v3689_v23 = vpop.f32.mrb[120].mxu0 }
 0x429   :  { %v2885_v50 = vadd.f32 %v3689_v23, %v4670_v41  ;;  %v2791_v52 = vpop.f32.mrb[121].mxu0 }
 0x42a   :  { %v2883_v48 = vadd.f32 %v4670_v41, %v2791_v52  ;;  %v3690_v53 = vpop.f32.mrb[122].mxu0 }
 0x42b   :  { %v2949_v16 = vmax.f32 %v2885_v50, 0.0  ;;  %v2886_v24 = vadd.f32 %v3690_v53, %v4670_v41  ;;  %v2794_v55 = vpop.f32.mrb[123].mxu0 }
 0x42c   :  { %v2947_v56 = vmax.f32 %v2883_v48, 0.0  ;;  %v2884_v57 = vadd.f32 %v4670_v41, %v2794_v55 }
 0x42d   :  { %3014 = vst.msk [vmem:[%s4999_s7 + $0x1d0] sm:$0xff] %vm2955_vm3, %v2949_v16  ;;  %v2950_v58 = vmax.f32 %v2886_v24, 0.0 }
 0x42e   :  { %3012 = vst.msk [vmem:[%s4999_s7 + $0x1c0] sm:$0xff] %vm2955_vm3, %v2947_v56  ;;  %v2948_v35 = vmax.f32 %v2884_v57, 0.0 }
 0x42f   :  { %3015 = vst.msk [vmem:[%s4999_s7 + $0x1d8] sm:$0xff] %vm2955_vm3, %v2950_v58 }
 0x430   :  { %3013 = vst.msk [vmem:[%s4999_s7 + $0x1c8] sm:$0xff] %vm2955_vm3, %v2948_v35  ;;  %v3693_v60 = vpop.f32.mrb[124].mxu0 }
 0x431   :  { %v2889_v36 = vadd.f32 %v3693_v60, %v4670_v41  ;;  %v2807_v61 = vpop.f32.mrb[125].mxu0 }
 0x432   :  { %v2887_v62 = vadd.f32 %v4670_v41, %v2807_v61  ;;  %v3694_v38 = vpop.f32.mrb[126].mxu0 }
 0x433   :  { %v2953_v0 = vmax.f32 %v2889_v36, 0.0  ;;  %v2890_v1 = vadd.f32 %v3694_v38, %v4670_v41  ;;  %v2810_v2 = vpop.f32.mrb[127].mxu0 }
 0x434   :  { %v2951_v17 = vmax.f32 %v2887_v62, 0.0  ;;  %v2888_v30 = vadd.f32 %v4670_v41, %v2810_v2 }
 0x435   :  { %3018 = vst.msk [vmem:[%s4999_s7 + $0x1f0] sm:$0xff] %vm2955_vm3, %v2953_v0  ;;  %v2954_v25 = vmax.f32 %v2890_v1, 0.0 }
 0x436   :  { %3016 = vst.msk [vmem:[%s4999_s7 + $0x1e0] sm:$0xff] %vm2955_vm3, %v2951_v17  ;;  %v2952_v3 = vmax.f32 %v2888_v30, 0.0 }
 0x437   :  { %3019 = vst.msk [vmem:[%s4999_s7 + $0x1f8] sm:$0xff] %vm2955_vm3, %v2954_v25 }
 0x438   :  { %3017 = vst.msk [vmem:[%s4999_s7 + $0x1e8] sm:$0xff] %vm2955_vm3, %v2952_v3 }

</bundles_post_ra>
